<compile_context>
chip_gen: v7x
topology: tpu7x:2x2x1
jax: 0.10.0
libtpu: 0.0.40
codegen_flags: <defaults>
</compile_context>

<pallas_src>
import jax
import jax.numpy as jnp
from jax import lax
from jax.experimental import pallas as pl
from jax.experimental.pallas import tpu as pltpu

N_LAYERS = 3
KSIZE = 3
EPS = 1e-5
TAPS = tuple((ky - 1, kx - 1) for ky in range(KSIZE) for kx in range(KSIZE))


def attribute_feature_processor(x, w, b, gamma, beta):
    """x: (N,C,H,W) f32.  w: (L,C,C,3,3) (OIHW per layer).  b/gamma/beta: (L,C).

    The conv bias `b` is accepted for API parity but is mathematically a no-op under
    train-mode BatchNorm (it cancels in the mean subtraction), so the kernel omits it.
    """
    N, C, H, W = x.shape
    L = N_LAYERS
    HW = H * W
    NHW = N * HW
    KK = KSIZE * KSIZE

    # ---- wrapper-side layout plumbing (lane-dense trailing dim) -----------------
    x2d = x.astype(jnp.float32).transpose(1, 0, 2, 3).reshape(C, NHW)

    # wcols[d, (l*9 + ki)*C + c] = w[l, d, c, ky, kx]   with ki = ky*3 + kx
    wcols = w.astype(jnp.float32).transpose(1, 0, 3, 4, 2).reshape(C, L * KK * C)
    gammas = gamma.astype(jnp.float32).T          # (C, L)
    betas = beta.astype(jnp.float32).T            # (C, L)

    # 0/1 validity masks for the 9 taps on the flattened (n,h,w) axis (zero-pad halo).
    q = jnp.arange(NHW, dtype=jnp.int32)
    hh = (q % HW) // W
    ww = q % W
    masks = jnp.stack([
        (((hh + dy) >= 0) & ((hh + dy) < H) &
         ((ww + dx) >= 0) & ((ww + dx) < W)).astype(jnp.float32)
        for (dy, dx) in TAPS
    ])                                            # (9, NHW)

    def kernel(x_ref, w_ref, g_ref, bt_ref, m_ref, o_ref):
        act = x_ref[...]                          # (C, NHW) f32, lane-dense
        WT = w_ref[...]                           # (C, L*9*C)  -- all weights hoisted once
        G = g_ref[...]                            # (C, L)
        B = bt_ref[...]                           # (C, L)
        M = m_ref[...]                            # (9, NHW)
        # Hoist the (1,NHW)->(C,NHW) mask broadcasts out of the layer loop (no CSE in JAX).
        mrows = [jnp.broadcast_to(M[k:k + 1, :], (C, NHW)) for k in range(KK)]

        for l in range(L):
            acc = None
            for ki, (dy, dx) in enumerate(TAPS):
                off = dy * W + dx
                if off == 0:
                    sh = act                      # center tap: no shift, mask == 1
                else:
                    # XLU lane roll + one VPU mask multiply implement the zero halo.
                    sh = pltpu.roll(act, shift=(-off) % NHW, axis=1) * mrows[ki]
                tap = None
                base = (l * KK + ki) * C
                for c in range(C):
                    # (1,NHW) shifted input-channel row  x  (C_out,1) weight column.
                    contrib = sh[c:c + 1, :] * WT[:, base + c:base + c + 1]
                    tap = contrib if tap is None else tap + contrib
                acc = tap if acc is None else acc + tap

            # Train-mode BatchNorm (biased var over N,H,W) fused to scale/shift, then ReLU.
            # Conv bias omitted: it cancels exactly in (acc - mean).
            mean = jnp.mean(acc, axis=1, keepdims=True)          # (C,1) all channels at once
            cent = acc - mean
            var = jnp.mean(cent * cent, axis=1, keepdims=True)   # (C,1)
            inv = lax.rsqrt(var + EPS)                           # EUP
            scale = G[:, l:l + 1] * inv
            shift = B[:, l:l + 1] - mean * scale
            act = jnp.maximum(acc * scale + shift, 0.0)

        o_ref[...] = act                          # lane-dense (NHW % 128 == 0) store

    vmem = pl.BlockSpec(memory_space=pltpu.MemorySpace.VMEM)
    out2d = pl.pallas_call(
        kernel,
        out_shape=jax.ShapeDtypeStruct((C, NHW), jnp.float32),
        in_specs=[vmem, vmem, vmem, vmem, vmem],
        out_specs=vmem,
    )(x2d, wcols, gammas, betas, masks)

    return out2d.reshape(C, N, H, W).transpose(1, 0, 2, 3)


def reference_forward(x, w, b, gamma, beta):
    """Pure-JAX reference matching PyTorch semantics (train-mode BN, with conv bias)."""
    out = x.astype(jnp.float32)
    for l in range(N_LAYERS):
        out = lax.conv_general_dilated(
            out, w[l].astype(jnp.float32), window_strides=(1, 1), padding="SAME",
            dimension_numbers=("NCHW", "OIHW", "NCHW"),
        ) + b[l][None, :, None, None]
        mean = out.mean(axis=(0, 2, 3), keepdims=True)
        var = ((out - mean) ** 2).mean(axis=(0, 2, 3), keepdims=True)
        out = (out - mean) * lax.rsqrt(var + EPS)
        out = out * gamma[l][None, :, None, None] + beta[l][None, :, None, None]
        out = jnp.maximum(out, 0.0)
    return out


if __name__ == "__main__":
    N, C, H, W = 2, 4, 16, 16

    key = jax.random.PRNGKey(0)
    k_x, k_w, k_b = jax.random.split(key, 3)

    x = jax.random.normal(k_x, (N, C, H, W), dtype=jnp.float32)

    # Deterministic synthetic parameters (shapes match nn.Conv2d / nn.BatchNorm2d init).
    fan_in = C * KSIZE * KSIZE
    bound = 1.0 / jnp.sqrt(jnp.float32(fan_in))
    w = jax.random.uniform(k_w, (N_LAYERS, C, C, KSIZE, KSIZE),
                           minval=-bound, maxval=bound, dtype=jnp.float32)
    b = jax.random.uniform(k_b, (N_LAYERS, C), minval=-bound, maxval=bound,
                           dtype=jnp.float32)
    gamma = jnp.ones((N_LAYERS, C), dtype=jnp.float32)   # BatchNorm weight init
    beta = jnp.zeros((N_LAYERS, C), dtype=jnp.float32)   # BatchNorm bias init

    out = attribute_feature_processor(x, w, b, gamma, beta)
    out = jax.block_until_ready(out)

    ref = reference_forward(x, w, b, gamma, beta)
    assert out.shape == (N, C, H, W)
    assert jnp.allclose(out, ref, rtol=1e-4, atol=1e-4), "mismatch vs JAX reference"

    print("KERNEL_OK")
</pallas_src>

<mosaic_0001>
module attributes {stable_mosaic.version = 11 : i64} {
  func.func @kernel(%arg0: memref<4x512xf32, #tpu.memory_space<vmem>>, %arg1: memref<4x108xf32, #tpu.memory_space<vmem>>, %arg2: memref<4x3xf32, #tpu.memory_space<vmem>>, %arg3: memref<4x3xf32, #tpu.memory_space<vmem>>, %arg4: memref<9x512xf32, #tpu.memory_space<vmem>>, %arg5: memref<4x512xf32, #tpu.memory_space<vmem>>) attributes {dimension_semantics = [], scalar_prefetch = 0 : i64, scratch_operands = 0 : i64, tpu.core_type = #tpu.core_type<tc>} {
    %c0 = arith.constant 0 : index
    %c0_0 = arith.constant 0 : index
    %0 = vector.load %arg0[%c0, %c0_0] : memref<4x512xf32, #tpu.memory_space<vmem>>, vector<4x512xf32>
    %c0_1 = arith.constant 0 : index
    %c0_2 = arith.constant 0 : index
    %1 = vector.load %arg1[%c0_1, %c0_2] : memref<4x108xf32, #tpu.memory_space<vmem>>, vector<4x108xf32>
    %c0_3 = arith.constant 0 : index
    %c0_4 = arith.constant 0 : index
    %2 = vector.load %arg2[%c0_3, %c0_4] : memref<4x3xf32, #tpu.memory_space<vmem>>, vector<4x3xf32>
    %c0_5 = arith.constant 0 : index
    %c0_6 = arith.constant 0 : index
    %3 = vector.load %arg3[%c0_5, %c0_6] : memref<4x3xf32, #tpu.memory_space<vmem>>, vector<4x3xf32>
    %c0_7 = arith.constant 0 : index
    %c0_8 = arith.constant 0 : index
    %4 = vector.load %arg4[%c0_7, %c0_8] : memref<9x512xf32, #tpu.memory_space<vmem>>, vector<9x512xf32>
    %5 = vector.extract_strided_slice %4 {offsets = [0, 0], sizes = [1, 512], strides = [1, 1]} : vector<9x512xf32> to vector<1x512xf32>
    %6 = vector.shape_cast %5 : vector<1x512xf32> to vector<1x512xf32>
    %7 = vector.broadcast %6 : vector<1x512xf32> to vector<4x512xf32>
    %8 = vector.extract_strided_slice %4 {offsets = [1, 0], sizes = [1, 512], strides = [1, 1]} : vector<9x512xf32> to vector<1x512xf32>
    %9 = vector.shape_cast %8 : vector<1x512xf32> to vector<1x512xf32>
    %10 = vector.broadcast %9 : vector<1x512xf32> to vector<4x512xf32>
    %11 = vector.extract_strided_slice %4 {offsets = [2, 0], sizes = [1, 512], strides = [1, 1]} : vector<9x512xf32> to vector<1x512xf32>
    %12 = vector.shape_cast %11 : vector<1x512xf32> to vector<1x512xf32>
    %13 = vector.broadcast %12 : vector<1x512xf32> to vector<4x512xf32>
    %14 = vector.extract_strided_slice %4 {offsets = [3, 0], sizes = [1, 512], strides = [1, 1]} : vector<9x512xf32> to vector<1x512xf32>
    %15 = vector.shape_cast %14 : vector<1x512xf32> to vector<1x512xf32>
    %16 = vector.broadcast %15 : vector<1x512xf32> to vector<4x512xf32>
    %17 = vector.extract_strided_slice %4 {offsets = [5, 0], sizes = [1, 512], strides = [1, 1]} : vector<9x512xf32> to vector<1x512xf32>
    %18 = vector.shape_cast %17 : vector<1x512xf32> to vector<1x512xf32>
    %19 = vector.broadcast %18 : vector<1x512xf32> to vector<4x512xf32>
    %20 = vector.extract_strided_slice %4 {offsets = [6, 0], sizes = [1, 512], strides = [1, 1]} : vector<9x512xf32> to vector<1x512xf32>
    %21 = vector.shape_cast %20 : vector<1x512xf32> to vector<1x512xf32>
    %22 = vector.broadcast %21 : vector<1x512xf32> to vector<4x512xf32>
    %23 = vector.extract_strided_slice %4 {offsets = [7, 0], sizes = [1, 512], strides = [1, 1]} : vector<9x512xf32> to vector<1x512xf32>
    %24 = vector.shape_cast %23 : vector<1x512xf32> to vector<1x512xf32>
    %25 = vector.broadcast %24 : vector<1x512xf32> to vector<4x512xf32>
    %26 = vector.extract_strided_slice %4 {offsets = [8, 0], sizes = [1, 512], strides = [1, 1]} : vector<9x512xf32> to vector<1x512xf32>
    %27 = vector.shape_cast %26 : vector<1x512xf32> to vector<1x512xf32>
    %28 = vector.broadcast %27 : vector<1x512xf32> to vector<4x512xf32>
    %c17_i32 = arith.constant 17 : i32
    %29 = tpu.dynamic_rotate %0 by %c17_i32 dim 1 : vector<4x512xf32>, i32 -> vector<4x512xf32>
    %30 = arith.mulf %29, %7 : vector<4x512xf32>
    %31 = vector.extract_strided_slice %30 {offsets = [0, 0], sizes = [1, 512], strides = [1, 1]} : vector<4x512xf32> to vector<1x512xf32>
    %32 = vector.extract_strided_slice %1 {offsets = [0, 0], sizes = [4, 1], strides = [1, 1]} : vector<4x108xf32> to vector<4x1xf32>
    %33 = vector.broadcast %31 : vector<1x512xf32> to vector<4x512xf32>
    %34 = vector.broadcast %32 : vector<4x1xf32> to vector<4x512xf32>
    %35 = arith.mulf %33, %34 : vector<4x512xf32>
    %36 = vector.extract_strided_slice %30 {offsets = [1, 0], sizes = [1, 512], strides = [1, 1]} : vector<4x512xf32> to vector<1x512xf32>
    %37 = vector.extract_strided_slice %1 {offsets = [0, 1], sizes = [4, 1], strides = [1, 1]} : vector<4x108xf32> to vector<4x1xf32>
    %38 = vector.broadcast %36 : vector<1x512xf32> to vector<4x512xf32>
    %39 = vector.broadcast %37 : vector<4x1xf32> to vector<4x512xf32>
    %40 = arith.mulf %38, %39 : vector<4x512xf32>
    %41 = arith.addf %35, %40 : vector<4x512xf32>
    %42 = vector.extract_strided_slice %30 {offsets = [2, 0], sizes = [1, 512], strides = [1, 1]} : vector<4x512xf32> to vector<1x512xf32>
    %43 = vector.extract_strided_slice %1 {offsets = [0, 2], sizes = [4, 1], strides = [1, 1]} : vector<4x108xf32> to vector<4x1xf32>
    %44 = vector.broadcast %42 : vector<1x512xf32> to vector<4x512xf32>
    %45 = vector.broadcast %43 : vector<4x1xf32> to vector<4x512xf32>
    %46 = arith.mulf %44, %45 : vector<4x512xf32>
    %47 = arith.addf %41, %46 : vector<4x512xf32>
    %48 = vector.extract_strided_slice %30 {offsets = [3, 0], sizes = [1, 512], strides = [1, 1]} : vector<4x512xf32> to vector<1x512xf32>
    %49 = vector.extract_strided_slice %1 {offsets = [0, 3], sizes = [4, 1], strides = [1, 1]} : vector<4x108xf32> to vector<4x1xf32>
    %50 = vector.broadcast %48 : vector<1x512xf32> to vector<4x512xf32>
    %51 = vector.broadcast %49 : vector<4x1xf32> to vector<4x512xf32>
    %52 = arith.mulf %50, %51 : vector<4x512xf32>
    %53 = arith.addf %47, %52 : vector<4x512xf32>
    %c16_i32 = arith.constant 16 : i32
    %54 = tpu.dynamic_rotate %0 by %c16_i32 dim 1 : vector<4x512xf32>, i32 -> vector<4x512xf32>
    %55 = arith.mulf %54, %10 : vector<4x512xf32>
    %56 = vector.extract_strided_slice %55 {offsets = [0, 0], sizes = [1, 512], strides = [1, 1]} : vector<4x512xf32> to vector<1x512xf32>
    %57 = vector.extract_strided_slice %1 {offsets = [0, 4], sizes = [4, 1], strides = [1, 1]} : vector<4x108xf32> to vector<4x1xf32>
    %58 = vector.broadcast %56 : vector<1x512xf32> to vector<4x512xf32>
    %59 = vector.broadcast %57 : vector<4x1xf32> to vector<4x512xf32>
    %60 = arith.mulf %58, %59 : vector<4x512xf32>
    %61 = vector.extract_strided_slice %55 {offsets = [1, 0], sizes = [1, 512], strides = [1, 1]} : vector<4x512xf32> to vector<1x512xf32>
    %62 = vector.extract_strided_slice %1 {offsets = [0, 5], sizes = [4, 1], strides = [1, 1]} : vector<4x108xf32> to vector<4x1xf32>
    %63 = vector.broadcast %61 : vector<1x512xf32> to vector<4x512xf32>
    %64 = vector.broadcast %62 : vector<4x1xf32> to vector<4x512xf32>
    %65 = arith.mulf %63, %64 : vector<4x512xf32>
    %66 = arith.addf %60, %65 : vector<4x512xf32>
    %67 = vector.extract_strided_slice %55 {offsets = [2, 0], sizes = [1, 512], strides = [1, 1]} : vector<4x512xf32> to vector<1x512xf32>
    %68 = vector.extract_strided_slice %1 {offsets = [0, 6], sizes = [4, 1], strides = [1, 1]} : vector<4x108xf32> to vector<4x1xf32>
    %69 = vector.broadcast %67 : vector<1x512xf32> to vector<4x512xf32>
    %70 = vector.broadcast %68 : vector<4x1xf32> to vector<4x512xf32>
    %71 = arith.mulf %69, %70 : vector<4x512xf32>
    %72 = arith.addf %66, %71 : vector<4x512xf32>
    %73 = vector.extract_strided_slice %55 {offsets = [3, 0], sizes = [1, 512], strides = [1, 1]} : vector<4x512xf32> to vector<1x512xf32>
    %74 = vector.extract_strided_slice %1 {offsets = [0, 7], sizes = [4, 1], strides = [1, 1]} : vector<4x108xf32> to vector<4x1xf32>
    %75 = vector.broadcast %73 : vector<1x512xf32> to vector<4x512xf32>
    %76 = vector.broadcast %74 : vector<4x1xf32> to vector<4x512xf32>
    %77 = arith.mulf %75, %76 : vector<4x512xf32>
    %78 = arith.addf %72, %77 : vector<4x512xf32>
    %79 = arith.addf %53, %78 : vector<4x512xf32>
    %c15_i32 = arith.constant 15 : i32
    %80 = tpu.dynamic_rotate %0 by %c15_i32 dim 1 : vector<4x512xf32>, i32 -> vector<4x512xf32>
    %81 = arith.mulf %80, %13 : vector<4x512xf32>
    %82 = vector.extract_strided_slice %81 {offsets = [0, 0], sizes = [1, 512], strides = [1, 1]} : vector<4x512xf32> to vector<1x512xf32>
    %83 = vector.extract_strided_slice %1 {offsets = [0, 8], sizes = [4, 1], strides = [1, 1]} : vector<4x108xf32> to vector<4x1xf32>
    %84 = vector.broadcast %82 : vector<1x512xf32> to vector<4x512xf32>
    %85 = vector.broadcast %83 : vector<4x1xf32> to vector<4x512xf32>
    %86 = arith.mulf %84, %85 : vector<4x512xf32>
    %87 = vector.extract_strided_slice %81 {offsets = [1, 0], sizes = [1, 512], strides = [1, 1]} : vector<4x512xf32> to vector<1x512xf32>
    %88 = vector.extract_strided_slice %1 {offsets = [0, 9], sizes = [4, 1], strides = [1, 1]} : vector<4x108xf32> to vector<4x1xf32>
    %89 = vector.broadcast %87 : vector<1x512xf32> to vector<4x512xf32>
    %90 = vector.broadcast %88 : vector<4x1xf32> to vector<4x512xf32>
    %91 = arith.mulf %89, %90 : vector<4x512xf32>
    %92 = arith.addf %86, %91 : vector<4x512xf32>
    %93 = vector.extract_strided_slice %81 {offsets = [2, 0], sizes = [1, 512], strides = [1, 1]} : vector<4x512xf32> to vector<1x512xf32>
    %94 = vector.extract_strided_slice %1 {offsets = [0, 10], sizes = [4, 1], strides = [1, 1]} : vector<4x108xf32> to vector<4x1xf32>
    %95 = vector.broadcast %93 : vector<1x512xf32> to vector<4x512xf32>
    %96 = vector.broadcast %94 : vector<4x1xf32> to vector<4x512xf32>
    %97 = arith.mulf %95, %96 : vector<4x512xf32>
    %98 = arith.addf %92, %97 : vector<4x512xf32>
    %99 = vector.extract_strided_slice %81 {offsets = [3, 0], sizes = [1, 512], strides = [1, 1]} : vector<4x512xf32> to vector<1x512xf32>
    %100 = vector.extract_strided_slice %1 {offsets = [0, 11], sizes = [4, 1], strides = [1, 1]} : vector<4x108xf32> to vector<4x1xf32>
    %101 = vector.broadcast %99 : vector<1x512xf32> to vector<4x512xf32>
    %102 = vector.broadcast %100 : vector<4x1xf32> to vector<4x512xf32>
    %103 = arith.mulf %101, %102 : vector<4x512xf32>
    %104 = arith.addf %98, %103 : vector<4x512xf32>
    %105 = arith.addf %79, %104 : vector<4x512xf32>
    %c1_i32 = arith.constant 1 : i32
    %106 = tpu.dynamic_rotate %0 by %c1_i32 dim 1 : vector<4x512xf32>, i32 -> vector<4x512xf32>
    %107 = arith.mulf %106, %16 : vector<4x512xf32>
    %108 = vector.extract_strided_slice %107 {offsets = [0, 0], sizes = [1, 512], strides = [1, 1]} : vector<4x512xf32> to vector<1x512xf32>
    %109 = vector.extract_strided_slice %1 {offsets = [0, 12], sizes = [4, 1], strides = [1, 1]} : vector<4x108xf32> to vector<4x1xf32>
    %110 = vector.broadcast %108 : vector<1x512xf32> to vector<4x512xf32>
    %111 = vector.broadcast %109 : vector<4x1xf32> to vector<4x512xf32>
    %112 = arith.mulf %110, %111 : vector<4x512xf32>
    %113 = vector.extract_strided_slice %107 {offsets = [1, 0], sizes = [1, 512], strides = [1, 1]} : vector<4x512xf32> to vector<1x512xf32>
    %114 = vector.extract_strided_slice %1 {offsets = [0, 13], sizes = [4, 1], strides = [1, 1]} : vector<4x108xf32> to vector<4x1xf32>
    %115 = vector.broadcast %113 : vector<1x512xf32> to vector<4x512xf32>
    %116 = vector.broadcast %114 : vector<4x1xf32> to vector<4x512xf32>
    %117 = arith.mulf %115, %116 : vector<4x512xf32>
    %118 = arith.addf %112, %117 : vector<4x512xf32>
    %119 = vector.extract_strided_slice %107 {offsets = [2, 0], sizes = [1, 512], strides = [1, 1]} : vector<4x512xf32> to vector<1x512xf32>
    %120 = vector.extract_strided_slice %1 {offsets = [0, 14], sizes = [4, 1], strides = [1, 1]} : vector<4x108xf32> to vector<4x1xf32>
    %121 = vector.broadcast %119 : vector<1x512xf32> to vector<4x512xf32>
    %122 = vector.broadcast %120 : vector<4x1xf32> to vector<4x512xf32>
    %123 = arith.mulf %121, %122 : vector<4x512xf32>
    %124 = arith.addf %118, %123 : vector<4x512xf32>
    %125 = vector.extract_strided_slice %107 {offsets = [3, 0], sizes = [1, 512], strides = [1, 1]} : vector<4x512xf32> to vector<1x512xf32>
    %126 = vector.extract_strided_slice %1 {offsets = [0, 15], sizes = [4, 1], strides = [1, 1]} : vector<4x108xf32> to vector<4x1xf32>
    %127 = vector.broadcast %125 : vector<1x512xf32> to vector<4x512xf32>
    %128 = vector.broadcast %126 : vector<4x1xf32> to vector<4x512xf32>
    %129 = arith.mulf %127, %128 : vector<4x512xf32>
    %130 = arith.addf %124, %129 : vector<4x512xf32>
    %131 = arith.addf %105, %130 : vector<4x512xf32>
    %132 = vector.extract_strided_slice %0 {offsets = [0, 0], sizes = [1, 512], strides = [1, 1]} : vector<4x512xf32> to vector<1x512xf32>
    %133 = vector.extract_strided_slice %1 {offsets = [0, 16], sizes = [4, 1], strides = [1, 1]} : vector<4x108xf32> to vector<4x1xf32>
    %134 = vector.broadcast %132 : vector<1x512xf32> to vector<4x512xf32>
    %135 = vector.broadcast %133 : vector<4x1xf32> to vector<4x512xf32>
    %136 = arith.mulf %134, %135 : vector<4x512xf32>
    %137 = vector.extract_strided_slice %0 {offsets = [1, 0], sizes = [1, 512], strides = [1, 1]} : vector<4x512xf32> to vector<1x512xf32>
    %138 = vector.extract_strided_slice %1 {offsets = [0, 17], sizes = [4, 1], strides = [1, 1]} : vector<4x108xf32> to vector<4x1xf32>
    %139 = vector.broadcast %137 : vector<1x512xf32> to vector<4x512xf32>
    %140 = vector.broadcast %138 : vector<4x1xf32> to vector<4x512xf32>
    %141 = arith.mulf %139, %140 : vector<4x512xf32>
    %142 = arith.addf %136, %141 : vector<4x512xf32>
    %143 = vector.extract_strided_slice %0 {offsets = [2, 0], sizes = [1, 512], strides = [1, 1]} : vector<4x512xf32> to vector<1x512xf32>
    %144 = vector.extract_strided_slice %1 {offsets = [0, 18], sizes = [4, 1], strides = [1, 1]} : vector<4x108xf32> to vector<4x1xf32>
    %145 = vector.broadcast %143 : vector<1x512xf32> to vector<4x512xf32>
    %146 = vector.broadcast %144 : vector<4x1xf32> to vector<4x512xf32>
    %147 = arith.mulf %145, %146 : vector<4x512xf32>
    %148 = arith.addf %142, %147 : vector<4x512xf32>
    %149 = vector.extract_strided_slice %0 {offsets = [3, 0], sizes = [1, 512], strides = [1, 1]} : vector<4x512xf32> to vector<1x512xf32>
    %150 = vector.extract_strided_slice %1 {offsets = [0, 19], sizes = [4, 1], strides = [1, 1]} : vector<4x108xf32> to vector<4x1xf32>
    %151 = vector.broadcast %149 : vector<1x512xf32> to vector<4x512xf32>
    %152 = vector.broadcast %150 : vector<4x1xf32> to vector<4x512xf32>
    %153 = arith.mulf %151, %152 : vector<4x512xf32>
    %154 = arith.addf %148, %153 : vector<4x512xf32>
    %155 = arith.addf %131, %154 : vector<4x512xf32>
    %c511_i32 = arith.constant 511 : i32
    %156 = tpu.dynamic_rotate %0 by %c511_i32 dim 1 : vector<4x512xf32>, i32 -> vector<4x512xf32>
    %157 = arith.mulf %156, %19 : vector<4x512xf32>
    %158 = vector.extract_strided_slice %157 {offsets = [0, 0], sizes = [1, 512], strides = [1, 1]} : vector<4x512xf32> to vector<1x512xf32>
    %159 = vector.extract_strided_slice %1 {offsets = [0, 20], sizes = [4, 1], strides = [1, 1]} : vector<4x108xf32> to vector<4x1xf32>
    %160 = vector.broadcast %158 : vector<1x512xf32> to vector<4x512xf32>
    %161 = vector.broadcast %159 : vector<4x1xf32> to vector<4x512xf32>
    %162 = arith.mulf %160, %161 : vector<4x512xf32>
    %163 = vector.extract_strided_slice %157 {offsets = [1, 0], sizes = [1, 512], strides = [1, 1]} : vector<4x512xf32> to vector<1x512xf32>
    %164 = vector.extract_strided_slice %1 {offsets = [0, 21], sizes = [4, 1], strides = [1, 1]} : vector<4x108xf32> to vector<4x1xf32>
    %165 = vector.broadcast %163 : vector<1x512xf32> to vector<4x512xf32>
    %166 = vector.broadcast %164 : vector<4x1xf32> to vector<4x512xf32>
    %167 = arith.mulf %165, %166 : vector<4x512xf32>
    %168 = arith.addf %162, %167 : vector<4x512xf32>
    %169 = vector.extract_strided_slice %157 {offsets = [2, 0], sizes = [1, 512], strides = [1, 1]} : vector<4x512xf32> to vector<1x512xf32>
    %170 = vector.extract_strided_slice %1 {offsets = [0, 22], sizes = [4, 1], strides = [1, 1]} : vector<4x108xf32> to vector<4x1xf32>
    %171 = vector.broadcast %169 : vector<1x512xf32> to vector<4x512xf32>
    %172 = vector.broadcast %170 : vector<4x1xf32> to vector<4x512xf32>
    %173 = arith.mulf %171, %172 : vector<4x512xf32>
    %174 = arith.addf %168, %173 : vector<4x512xf32>
    %175 = vector.extract_strided_slice %157 {offsets = [3, 0], sizes = [1, 512], strides = [1, 1]} : vector<4x512xf32> to vector<1x512xf32>
    %176 = vector.extract_strided_slice %1 {offsets = [0, 23], sizes = [4, 1], strides = [1, 1]} : vector<4x108xf32> to vector<4x1xf32>
    %177 = vector.broadcast %175 : vector<1x512xf32> to vector<4x512xf32>
    %178 = vector.broadcast %176 : vector<4x1xf32> to vector<4x512xf32>
    %179 = arith.mulf %177, %178 : vector<4x512xf32>
    %180 = arith.addf %174, %179 : vector<4x512xf32>
    %181 = arith.addf %155, %180 : vector<4x512xf32>
    %c497_i32 = arith.constant 497 : i32
    %182 = tpu.dynamic_rotate %0 by %c497_i32 dim 1 : vector<4x512xf32>, i32 -> vector<4x512xf32>
    %183 = arith.mulf %182, %22 : vector<4x512xf32>
    %184 = vector.extract_strided_slice %183 {offsets = [0, 0], sizes = [1, 512], strides = [1, 1]} : vector<4x512xf32> to vector<1x512xf32>
    %185 = vector.extract_strided_slice %1 {offsets = [0, 24], sizes = [4, 1], strides = [1, 1]} : vector<4x108xf32> to vector<4x1xf32>
    %186 = vector.broadcast %184 : vector<1x512xf32> to vector<4x512xf32>
    %187 = vector.broadcast %185 : vector<4x1xf32> to vector<4x512xf32>
    %188 = arith.mulf %186, %187 : vector<4x512xf32>
    %189 = vector.extract_strided_slice %183 {offsets = [1, 0], sizes = [1, 512], strides = [1, 1]} : vector<4x512xf32> to vector<1x512xf32>
    %190 = vector.extract_strided_slice %1 {offsets = [0, 25], sizes = [4, 1], strides = [1, 1]} : vector<4x108xf32> to vector<4x1xf32>
    %191 = vector.broadcast %189 : vector<1x512xf32> to vector<4x512xf32>
    %192 = vector.broadcast %190 : vector<4x1xf32> to vector<4x512xf32>
    %193 = arith.mulf %191, %192 : vector<4x512xf32>
    %194 = arith.addf %188, %193 : vector<4x512xf32>
    %195 = vector.extract_strided_slice %183 {offsets = [2, 0], sizes = [1, 512], strides = [1, 1]} : vector<4x512xf32> to vector<1x512xf32>
    %196 = vector.extract_strided_slice %1 {offsets = [0, 26], sizes = [4, 1], strides = [1, 1]} : vector<4x108xf32> to vector<4x1xf32>
    %197 = vector.broadcast %195 : vector<1x512xf32> to vector<4x512xf32>
    %198 = vector.broadcast %196 : vector<4x1xf32> to vector<4x512xf32>
    %199 = arith.mulf %197, %198 : vector<4x512xf32>
    %200 = arith.addf %194, %199 : vector<4x512xf32>
    %201 = vector.extract_strided_slice %183 {offsets = [3, 0], sizes = [1, 512], strides = [1, 1]} : vector<4x512xf32> to vector<1x512xf32>
    %202 = vector.extract_strided_slice %1 {offsets = [0, 27], sizes = [4, 1], strides = [1, 1]} : vector<4x108xf32> to vector<4x1xf32>
    %203 = vector.broadcast %201 : vector<1x512xf32> to vector<4x512xf32>
    %204 = vector.broadcast %202 : vector<4x1xf32> to vector<4x512xf32>
    %205 = arith.mulf %203, %204 : vector<4x512xf32>
    %206 = arith.addf %200, %205 : vector<4x512xf32>
    %207 = arith.addf %181, %206 : vector<4x512xf32>
    %c496_i32 = arith.constant 496 : i32
    %208 = tpu.dynamic_rotate %0 by %c496_i32 dim 1 : vector<4x512xf32>, i32 -> vector<4x512xf32>
    %209 = arith.mulf %208, %25 : vector<4x512xf32>
    %210 = vector.extract_strided_slice %209 {offsets = [0, 0], sizes = [1, 512], strides = [1, 1]} : vector<4x512xf32> to vector<1x512xf32>
    %211 = vector.extract_strided_slice %1 {offsets = [0, 28], sizes = [4, 1], strides = [1, 1]} : vector<4x108xf32> to vector<4x1xf32>
    %212 = vector.broadcast %210 : vector<1x512xf32> to vector<4x512xf32>
    %213 = vector.broadcast %211 : vector<4x1xf32> to vector<4x512xf32>
    %214 = arith.mulf %212, %213 : vector<4x512xf32>
    %215 = vector.extract_strided_slice %209 {offsets = [1, 0], sizes = [1, 512], strides = [1, 1]} : vector<4x512xf32> to vector<1x512xf32>
    %216 = vector.extract_strided_slice %1 {offsets = [0, 29], sizes = [4, 1], strides = [1, 1]} : vector<4x108xf32> to vector<4x1xf32>
    %217 = vector.broadcast %215 : vector<1x512xf32> to vector<4x512xf32>
    %218 = vector.broadcast %216 : vector<4x1xf32> to vector<4x512xf32>
    %219 = arith.mulf %217, %218 : vector<4x512xf32>
    %220 = arith.addf %214, %219 : vector<4x512xf32>
    %221 = vector.extract_strided_slice %209 {offsets = [2, 0], sizes = [1, 512], strides = [1, 1]} : vector<4x512xf32> to vector<1x512xf32>
    %222 = vector.extract_strided_slice %1 {offsets = [0, 30], sizes = [4, 1], strides = [1, 1]} : vector<4x108xf32> to vector<4x1xf32>
    %223 = vector.broadcast %221 : vector<1x512xf32> to vector<4x512xf32>
    %224 = vector.broadcast %222 : vector<4x1xf32> to vector<4x512xf32>
    %225 = arith.mulf %223, %224 : vector<4x512xf32>
    %226 = arith.addf %220, %225 : vector<4x512xf32>
    %227 = vector.extract_strided_slice %209 {offsets = [3, 0], sizes = [1, 512], strides = [1, 1]} : vector<4x512xf32> to vector<1x512xf32>
    %228 = vector.extract_strided_slice %1 {offsets = [0, 31], sizes = [4, 1], strides = [1, 1]} : vector<4x108xf32> to vector<4x1xf32>
    %229 = vector.broadcast %227 : vector<1x512xf32> to vector<4x512xf32>
    %230 = vector.broadcast %228 : vector<4x1xf32> to vector<4x512xf32>
    %231 = arith.mulf %229, %230 : vector<4x512xf32>
    %232 = arith.addf %226, %231 : vector<4x512xf32>
    %233 = arith.addf %207, %232 : vector<4x512xf32>
    %c495_i32 = arith.constant 495 : i32
    %234 = tpu.dynamic_rotate %0 by %c495_i32 dim 1 : vector<4x512xf32>, i32 -> vector<4x512xf32>
    %235 = arith.mulf %234, %28 : vector<4x512xf32>
    %236 = vector.extract_strided_slice %235 {offsets = [0, 0], sizes = [1, 512], strides = [1, 1]} : vector<4x512xf32> to vector<1x512xf32>
    %237 = vector.extract_strided_slice %1 {offsets = [0, 32], sizes = [4, 1], strides = [1, 1]} : vector<4x108xf32> to vector<4x1xf32>
    %238 = vector.broadcast %236 : vector<1x512xf32> to vector<4x512xf32>
    %239 = vector.broadcast %237 : vector<4x1xf32> to vector<4x512xf32>
    %240 = arith.mulf %238, %239 : vector<4x512xf32>
    %241 = vector.extract_strided_slice %235 {offsets = [1, 0], sizes = [1, 512], strides = [1, 1]} : vector<4x512xf32> to vector<1x512xf32>
    %242 = vector.extract_strided_slice %1 {offsets = [0, 33], sizes = [4, 1], strides = [1, 1]} : vector<4x108xf32> to vector<4x1xf32>
    %243 = vector.broadcast %241 : vector<1x512xf32> to vector<4x512xf32>
    %244 = vector.broadcast %242 : vector<4x1xf32> to vector<4x512xf32>
    %245 = arith.mulf %243, %244 : vector<4x512xf32>
    %246 = arith.addf %240, %245 : vector<4x512xf32>
    %247 = vector.extract_strided_slice %235 {offsets = [2, 0], sizes = [1, 512], strides = [1, 1]} : vector<4x512xf32> to vector<1x512xf32>
    %248 = vector.extract_strided_slice %1 {offsets = [0, 34], sizes = [4, 1], strides = [1, 1]} : vector<4x108xf32> to vector<4x1xf32>
    %249 = vector.broadcast %247 : vector<1x512xf32> to vector<4x512xf32>
    %250 = vector.broadcast %248 : vector<4x1xf32> to vector<4x512xf32>
    %251 = arith.mulf %249, %250 : vector<4x512xf32>
    %252 = arith.addf %246, %251 : vector<4x512xf32>
    %253 = vector.extract_strided_slice %235 {offsets = [3, 0], sizes = [1, 512], strides = [1, 1]} : vector<4x512xf32> to vector<1x512xf32>
    %254 = vector.extract_strided_slice %1 {offsets = [0, 35], sizes = [4, 1], strides = [1, 1]} : vector<4x108xf32> to vector<4x1xf32>
    %255 = vector.broadcast %253 : vector<1x512xf32> to vector<4x512xf32>
    %256 = vector.broadcast %254 : vector<4x1xf32> to vector<4x512xf32>
    %257 = arith.mulf %255, %256 : vector<4x512xf32>
    %258 = arith.addf %252, %257 : vector<4x512xf32>
    %259 = arith.addf %233, %258 : vector<4x512xf32>
    %cst = arith.constant dense<0.000000e+00> : vector<4xf32>
    %260 = vector.multi_reduction <add>, %259, %cst [1] : vector<4x512xf32> to vector<4xf32>
    %261 = vector.shape_cast %260 : vector<4xf32> to vector<4x1xf32>
    %cst_9 = arith.constant 5.120000e+02 : f32
    %262 = vector.broadcast %cst_9 : f32 to vector<4x1xf32>
    %263 = arith.divf %261, %262 : vector<4x1xf32>
    %264 = vector.broadcast %263 : vector<4x1xf32> to vector<4x512xf32>
    %265 = arith.subf %259, %264 : vector<4x512xf32>
    %266 = arith.mulf %265, %265 : vector<4x512xf32>
    %cst_10 = arith.constant dense<0.000000e+00> : vector<4xf32>
    %267 = vector.multi_reduction <add>, %266, %cst_10 [1] : vector<4x512xf32> to vector<4xf32>
    %268 = vector.shape_cast %267 : vector<4xf32> to vector<4x1xf32>
    %cst_11 = arith.constant 5.120000e+02 : f32
    %269 = vector.broadcast %cst_11 : f32 to vector<4x1xf32>
    %270 = arith.divf %268, %269 : vector<4x1xf32>
    %cst_12 = arith.constant 9.99999974E-6 : f32
    %271 = vector.broadcast %cst_12 : f32 to vector<4x1xf32>
    %272 = arith.addf %270, %271 : vector<4x1xf32>
    %273 = math.rsqrt %272 : vector<4x1xf32>
    %274 = vector.extract_strided_slice %2 {offsets = [0, 0], sizes = [4, 1], strides = [1, 1]} : vector<4x3xf32> to vector<4x1xf32>
    %275 = arith.mulf %274, %273 : vector<4x1xf32>
    %276 = vector.extract_strided_slice %3 {offsets = [0, 0], sizes = [4, 1], strides = [1, 1]} : vector<4x3xf32> to vector<4x1xf32>
    %277 = arith.mulf %263, %275 : vector<4x1xf32>
    %278 = arith.subf %276, %277 : vector<4x1xf32>
    %279 = vector.broadcast %275 : vector<4x1xf32> to vector<4x512xf32>
    %280 = arith.mulf %259, %279 : vector<4x512xf32>
    %281 = vector.broadcast %278 : vector<4x1xf32> to vector<4x512xf32>
    %282 = arith.addf %280, %281 : vector<4x512xf32>
    %cst_13 = arith.constant 0.000000e+00 : f32
    %283 = vector.broadcast %cst_13 : f32 to vector<4x512xf32>
    %284 = arith.maximumf %282, %283 : vector<4x512xf32>
    %c17_i32_14 = arith.constant 17 : i32
    %285 = tpu.dynamic_rotate %284 by %c17_i32_14 dim 1 : vector<4x512xf32>, i32 -> vector<4x512xf32>
    %286 = arith.mulf %285, %7 : vector<4x512xf32>
    %287 = vector.extract_strided_slice %286 {offsets = [0, 0], sizes = [1, 512], strides = [1, 1]} : vector<4x512xf32> to vector<1x512xf32>
    %288 = vector.extract_strided_slice %1 {offsets = [0, 36], sizes = [4, 1], strides = [1, 1]} : vector<4x108xf32> to vector<4x1xf32>
    %289 = vector.broadcast %287 : vector<1x512xf32> to vector<4x512xf32>
    %290 = vector.broadcast %288 : vector<4x1xf32> to vector<4x512xf32>
    %291 = arith.mulf %289, %290 : vector<4x512xf32>
    %292 = vector.extract_strided_slice %286 {offsets = [1, 0], sizes = [1, 512], strides = [1, 1]} : vector<4x512xf32> to vector<1x512xf32>
    %293 = vector.extract_strided_slice %1 {offsets = [0, 37], sizes = [4, 1], strides = [1, 1]} : vector<4x108xf32> to vector<4x1xf32>
    %294 = vector.broadcast %292 : vector<1x512xf32> to vector<4x512xf32>
    %295 = vector.broadcast %293 : vector<4x1xf32> to vector<4x512xf32>
    %296 = arith.mulf %294, %295 : vector<4x512xf32>
    %297 = arith.addf %291, %296 : vector<4x512xf32>
    %298 = vector.extract_strided_slice %286 {offsets = [2, 0], sizes = [1, 512], strides = [1, 1]} : vector<4x512xf32> to vector<1x512xf32>
    %299 = vector.extract_strided_slice %1 {offsets = [0, 38], sizes = [4, 1], strides = [1, 1]} : vector<4x108xf32> to vector<4x1xf32>
    %300 = vector.broadcast %298 : vector<1x512xf32> to vector<4x512xf32>
    %301 = vector.broadcast %299 : vector<4x1xf32> to vector<4x512xf32>
    %302 = arith.mulf %300, %301 : vector<4x512xf32>
    %303 = arith.addf %297, %302 : vector<4x512xf32>
    %304 = vector.extract_strided_slice %286 {offsets = [3, 0], sizes = [1, 512], strides = [1, 1]} : vector<4x512xf32> to vector<1x512xf32>
    %305 = vector.extract_strided_slice %1 {offsets = [0, 39], sizes = [4, 1], strides = [1, 1]} : vector<4x108xf32> to vector<4x1xf32>
    %306 = vector.broadcast %304 : vector<1x512xf32> to vector<4x512xf32>
    %307 = vector.broadcast %305 : vector<4x1xf32> to vector<4x512xf32>
    %308 = arith.mulf %306, %307 : vector<4x512xf32>
    %309 = arith.addf %303, %308 : vector<4x512xf32>
    %c16_i32_15 = arith.constant 16 : i32
    %310 = tpu.dynamic_rotate %284 by %c16_i32_15 dim 1 : vector<4x512xf32>, i32 -> vector<4x512xf32>
    %311 = arith.mulf %310, %10 : vector<4x512xf32>
    %312 = vector.extract_strided_slice %311 {offsets = [0, 0], sizes = [1, 512], strides = [1, 1]} : vector<4x512xf32> to vector<1x512xf32>
    %313 = vector.extract_strided_slice %1 {offsets = [0, 40], sizes = [4, 1], strides = [1, 1]} : vector<4x108xf32> to vector<4x1xf32>
    %314 = vector.broadcast %312 : vector<1x512xf32> to vector<4x512xf32>
    %315 = vector.broadcast %313 : vector<4x1xf32> to vector<4x512xf32>
    %316 = arith.mulf %314, %315 : vector<4x512xf32>
    %317 = vector.extract_strided_slice %311 {offsets = [1, 0], sizes = [1, 512], strides = [1, 1]} : vector<4x512xf32> to vector<1x512xf32>
    %318 = vector.extract_strided_slice %1 {offsets = [0, 41], sizes = [4, 1], strides = [1, 1]} : vector<4x108xf32> to vector<4x1xf32>
    %319 = vector.broadcast %317 : vector<1x512xf32> to vector<4x512xf32>
    %320 = vector.broadcast %318 : vector<4x1xf32> to vector<4x512xf32>
    %321 = arith.mulf %319, %320 : vector<4x512xf32>
    %322 = arith.addf %316, %321 : vector<4x512xf32>
    %323 = vector.extract_strided_slice %311 {offsets = [2, 0], sizes = [1, 512], strides = [1, 1]} : vector<4x512xf32> to vector<1x512xf32>
    %324 = vector.extract_strided_slice %1 {offsets = [0, 42], sizes = [4, 1], strides = [1, 1]} : vector<4x108xf32> to vector<4x1xf32>
    %325 = vector.broadcast %323 : vector<1x512xf32> to vector<4x512xf32>
    %326 = vector.broadcast %324 : vector<4x1xf32> to vector<4x512xf32>
    %327 = arith.mulf %325, %326 : vector<4x512xf32>
    %328 = arith.addf %322, %327 : vector<4x512xf32>
    %329 = vector.extract_strided_slice %311 {offsets = [3, 0], sizes = [1, 512], strides = [1, 1]} : vector<4x512xf32> to vector<1x512xf32>
    %330 = vector.extract_strided_slice %1 {offsets = [0, 43], sizes = [4, 1], strides = [1, 1]} : vector<4x108xf32> to vector<4x1xf32>
    %331 = vector.broadcast %329 : vector<1x512xf32> to vector<4x512xf32>
    %332 = vector.broadcast %330 : vector<4x1xf32> to vector<4x512xf32>
    %333 = arith.mulf %331, %332 : vector<4x512xf32>
    %334 = arith.addf %328, %333 : vector<4x512xf32>
    %335 = arith.addf %309, %334 : vector<4x512xf32>
    %c15_i32_16 = arith.constant 15 : i32
    %336 = tpu.dynamic_rotate %284 by %c15_i32_16 dim 1 : vector<4x512xf32>, i32 -> vector<4x512xf32>
    %337 = arith.mulf %336, %13 : vector<4x512xf32>
    %338 = vector.extract_strided_slice %337 {offsets = [0, 0], sizes = [1, 512], strides = [1, 1]} : vector<4x512xf32> to vector<1x512xf32>
    %339 = vector.extract_strided_slice %1 {offsets = [0, 44], sizes = [4, 1], strides = [1, 1]} : vector<4x108xf32> to vector<4x1xf32>
    %340 = vector.broadcast %338 : vector<1x512xf32> to vector<4x512xf32>
    %341 = vector.broadcast %339 : vector<4x1xf32> to vector<4x512xf32>
    %342 = arith.mulf %340, %341 : vector<4x512xf32>
    %343 = vector.extract_strided_slice %337 {offsets = [1, 0], sizes = [1, 512], strides = [1, 1]} : vector<4x512xf32> to vector<1x512xf32>
    %344 = vector.extract_strided_slice %1 {offsets = [0, 45], sizes = [4, 1], strides = [1, 1]} : vector<4x108xf32> to vector<4x1xf32>
    %345 = vector.broadcast %343 : vector<1x512xf32> to vector<4x512xf32>
    %346 = vector.broadcast %344 : vector<4x1xf32> to vector<4x512xf32>
    %347 = arith.mulf %345, %346 : vector<4x512xf32>
    %348 = arith.addf %342, %347 : vector<4x512xf32>
    %349 = vector.extract_strided_slice %337 {offsets = [2, 0], sizes = [1, 512], strides = [1, 1]} : vector<4x512xf32> to vector<1x512xf32>
    %350 = vector.extract_strided_slice %1 {offsets = [0, 46], sizes = [4, 1], strides = [1, 1]} : vector<4x108xf32> to vector<4x1xf32>
    %351 = vector.broadcast %349 : vector<1x512xf32> to vector<4x512xf32>
    %352 = vector.broadcast %350 : vector<4x1xf32> to vector<4x512xf32>
    %353 = arith.mulf %351, %352 : vector<4x512xf32>
    %354 = arith.addf %348, %353 : vector<4x512xf32>
    %355 = vector.extract_strided_slice %337 {offsets = [3, 0], sizes = [1, 512], strides = [1, 1]} : vector<4x512xf32> to vector<1x512xf32>
    %356 = vector.extract_strided_slice %1 {offsets = [0, 47], sizes = [4, 1], strides = [1, 1]} : vector<4x108xf32> to vector<4x1xf32>
    %357 = vector.broadcast %355 : vector<1x512xf32> to vector<4x512xf32>
    %358 = vector.broadcast %356 : vector<4x1xf32> to vector<4x512xf32>
    %359 = arith.mulf %357, %358 : vector<4x512xf32>
    %360 = arith.addf %354, %359 : vector<4x512xf32>
    %361 = arith.addf %335, %360 : vector<4x512xf32>
    %c1_i32_17 = arith.constant 1 : i32
    %362 = tpu.dynamic_rotate %284 by %c1_i32_17 dim 1 : vector<4x512xf32>, i32 -> vector<4x512xf32>
    %363 = arith.mulf %362, %16 : vector<4x512xf32>
    %364 = vector.extract_strided_slice %363 {offsets = [0, 0], sizes = [1, 512], strides = [1, 1]} : vector<4x512xf32> to vector<1x512xf32>
    %365 = vector.extract_strided_slice %1 {offsets = [0, 48], sizes = [4, 1], strides = [1, 1]} : vector<4x108xf32> to vector<4x1xf32>
    %366 = vector.broadcast %364 : vector<1x512xf32> to vector<4x512xf32>
    %367 = vector.broadcast %365 : vector<4x1xf32> to vector<4x512xf32>
    %368 = arith.mulf %366, %367 : vector<4x512xf32>
    %369 = vector.extract_strided_slice %363 {offsets = [1, 0], sizes = [1, 512], strides = [1, 1]} : vector<4x512xf32> to vector<1x512xf32>
    %370 = vector.extract_strided_slice %1 {offsets = [0, 49], sizes = [4, 1], strides = [1, 1]} : vector<4x108xf32> to vector<4x1xf32>
    %371 = vector.broadcast %369 : vector<1x512xf32> to vector<4x512xf32>
    %372 = vector.broadcast %370 : vector<4x1xf32> to vector<4x512xf32>
    %373 = arith.mulf %371, %372 : vector<4x512xf32>
    %374 = arith.addf %368, %373 : vector<4x512xf32>
    %375 = vector.extract_strided_slice %363 {offsets = [2, 0], sizes = [1, 512], strides = [1, 1]} : vector<4x512xf32> to vector<1x512xf32>
    %376 = vector.extract_strided_slice %1 {offsets = [0, 50], sizes = [4, 1], strides = [1, 1]} : vector<4x108xf32> to vector<4x1xf32>
    %377 = vector.broadcast %375 : vector<1x512xf32> to vector<4x512xf32>
    %378 = vector.broadcast %376 : vector<4x1xf32> to vector<4x512xf32>
    %379 = arith.mulf %377, %378 : vector<4x512xf32>
    %380 = arith.addf %374, %379 : vector<4x512xf32>
    %381 = vector.extract_strided_slice %363 {offsets = [3, 0], sizes = [1, 512], strides = [1, 1]} : vector<4x512xf32> to vector<1x512xf32>
    %382 = vector.extract_strided_slice %1 {offsets = [0, 51], sizes = [4, 1], strides = [1, 1]} : vector<4x108xf32> to vector<4x1xf32>
    %383 = vector.broadcast %381 : vector<1x512xf32> to vector<4x512xf32>
    %384 = vector.broadcast %382 : vector<4x1xf32> to vector<4x512xf32>
    %385 = arith.mulf %383, %384 : vector<4x512xf32>
    %386 = arith.addf %380, %385 : vector<4x512xf32>
    %387 = arith.addf %361, %386 : vector<4x512xf32>
    %388 = vector.extract_strided_slice %284 {offsets = [0, 0], sizes = [1, 512], strides = [1, 1]} : vector<4x512xf32> to vector<1x512xf32>
    %389 = vector.extract_strided_slice %1 {offsets = [0, 52], sizes = [4, 1], strides = [1, 1]} : vector<4x108xf32> to vector<4x1xf32>
    %390 = vector.broadcast %388 : vector<1x512xf32> to vector<4x512xf32>
    %391 = vector.broadcast %389 : vector<4x1xf32> to vector<4x512xf32>
    %392 = arith.mulf %390, %391 : vector<4x512xf32>
    %393 = vector.extract_strided_slice %284 {offsets = [1, 0], sizes = [1, 512], strides = [1, 1]} : vector<4x512xf32> to vector<1x512xf32>
    %394 = vector.extract_strided_slice %1 {offsets = [0, 53], sizes = [4, 1], strides = [1, 1]} : vector<4x108xf32> to vector<4x1xf32>
    %395 = vector.broadcast %393 : vector<1x512xf32> to vector<4x512xf32>
    %396 = vector.broadcast %394 : vector<4x1xf32> to vector<4x512xf32>
    %397 = arith.mulf %395, %396 : vector<4x512xf32>
    %398 = arith.addf %392, %397 : vector<4x512xf32>
    %399 = vector.extract_strided_slice %284 {offsets = [2, 0], sizes = [1, 512], strides = [1, 1]} : vector<4x512xf32> to vector<1x512xf32>
    %400 = vector.extract_strided_slice %1 {offsets = [0, 54], sizes = [4, 1], strides = [1, 1]} : vector<4x108xf32> to vector<4x1xf32>
    %401 = vector.broadcast %399 : vector<1x512xf32> to vector<4x512xf32>
    %402 = vector.broadcast %400 : vector<4x1xf32> to vector<4x512xf32>
    %403 = arith.mulf %401, %402 : vector<4x512xf32>
    %404 = arith.addf %398, %403 : vector<4x512xf32>
    %405 = vector.extract_strided_slice %284 {offsets = [3, 0], sizes = [1, 512], strides = [1, 1]} : vector<4x512xf32> to vector<1x512xf32>
    %406 = vector.extract_strided_slice %1 {offsets = [0, 55], sizes = [4, 1], strides = [1, 1]} : vector<4x108xf32> to vector<4x1xf32>
    %407 = vector.broadcast %405 : vector<1x512xf32> to vector<4x512xf32>
    %408 = vector.broadcast %406 : vector<4x1xf32> to vector<4x512xf32>
    %409 = arith.mulf %407, %408 : vector<4x512xf32>
    %410 = arith.addf %404, %409 : vector<4x512xf32>
    %411 = arith.addf %387, %410 : vector<4x512xf32>
    %c511_i32_18 = arith.constant 511 : i32
    %412 = tpu.dynamic_rotate %284 by %c511_i32_18 dim 1 : vector<4x512xf32>, i32 -> vector<4x512xf32>
    %413 = arith.mulf %412, %19 : vector<4x512xf32>
    %414 = vector.extract_strided_slice %413 {offsets = [0, 0], sizes = [1, 512], strides = [1, 1]} : vector<4x512xf32> to vector<1x512xf32>
    %415 = vector.extract_strided_slice %1 {offsets = [0, 56], sizes = [4, 1], strides = [1, 1]} : vector<4x108xf32> to vector<4x1xf32>
    %416 = vector.broadcast %414 : vector<1x512xf32> to vector<4x512xf32>
    %417 = vector.broadcast %415 : vector<4x1xf32> to vector<4x512xf32>
    %418 = arith.mulf %416, %417 : vector<4x512xf32>
    %419 = vector.extract_strided_slice %413 {offsets = [1, 0], sizes = [1, 512], strides = [1, 1]} : vector<4x512xf32> to vector<1x512xf32>
    %420 = vector.extract_strided_slice %1 {offsets = [0, 57], sizes = [4, 1], strides = [1, 1]} : vector<4x108xf32> to vector<4x1xf32>
    %421 = vector.broadcast %419 : vector<1x512xf32> to vector<4x512xf32>
    %422 = vector.broadcast %420 : vector<4x1xf32> to vector<4x512xf32>
    %423 = arith.mulf %421, %422 : vector<4x512xf32>
    %424 = arith.addf %418, %423 : vector<4x512xf32>
    %425 = vector.extract_strided_slice %413 {offsets = [2, 0], sizes = [1, 512], strides = [1, 1]} : vector<4x512xf32> to vector<1x512xf32>
    %426 = vector.extract_strided_slice %1 {offsets = [0, 58], sizes = [4, 1], strides = [1, 1]} : vector<4x108xf32> to vector<4x1xf32>
    %427 = vector.broadcast %425 : vector<1x512xf32> to vector<4x512xf32>
    %428 = vector.broadcast %426 : vector<4x1xf32> to vector<4x512xf32>
    %429 = arith.mulf %427, %428 : vector<4x512xf32>
    %430 = arith.addf %424, %429 : vector<4x512xf32>
    %431 = vector.extract_strided_slice %413 {offsets = [3, 0], sizes = [1, 512], strides = [1, 1]} : vector<4x512xf32> to vector<1x512xf32>
    %432 = vector.extract_strided_slice %1 {offsets = [0, 59], sizes = [4, 1], strides = [1, 1]} : vector<4x108xf32> to vector<4x1xf32>
    %433 = vector.broadcast %431 : vector<1x512xf32> to vector<4x512xf32>
    %434 = vector.broadcast %432 : vector<4x1xf32> to vector<4x512xf32>
    %435 = arith.mulf %433, %434 : vector<4x512xf32>
    %436 = arith.addf %430, %435 : vector<4x512xf32>
    %437 = arith.addf %411, %436 : vector<4x512xf32>
    %c497_i32_19 = arith.constant 497 : i32
    %438 = tpu.dynamic_rotate %284 by %c497_i32_19 dim 1 : vector<4x512xf32>, i32 -> vector<4x512xf32>
    %439 = arith.mulf %438, %22 : vector<4x512xf32>
    %440 = vector.extract_strided_slice %439 {offsets = [0, 0], sizes = [1, 512], strides = [1, 1]} : vector<4x512xf32> to vector<1x512xf32>
    %441 = vector.extract_strided_slice %1 {offsets = [0, 60], sizes = [4, 1], strides = [1, 1]} : vector<4x108xf32> to vector<4x1xf32>
    %442 = vector.broadcast %440 : vector<1x512xf32> to vector<4x512xf32>
    %443 = vector.broadcast %441 : vector<4x1xf32> to vector<4x512xf32>
    %444 = arith.mulf %442, %443 : vector<4x512xf32>
    %445 = vector.extract_strided_slice %439 {offsets = [1, 0], sizes = [1, 512], strides = [1, 1]} : vector<4x512xf32> to vector<1x512xf32>
    %446 = vector.extract_strided_slice %1 {offsets = [0, 61], sizes = [4, 1], strides = [1, 1]} : vector<4x108xf32> to vector<4x1xf32>
    %447 = vector.broadcast %445 : vector<1x512xf32> to vector<4x512xf32>
    %448 = vector.broadcast %446 : vector<4x1xf32> to vector<4x512xf32>
    %449 = arith.mulf %447, %448 : vector<4x512xf32>
    %450 = arith.addf %444, %449 : vector<4x512xf32>
    %451 = vector.extract_strided_slice %439 {offsets = [2, 0], sizes = [1, 512], strides = [1, 1]} : vector<4x512xf32> to vector<1x512xf32>
    %452 = vector.extract_strided_slice %1 {offsets = [0, 62], sizes = [4, 1], strides = [1, 1]} : vector<4x108xf32> to vector<4x1xf32>
    %453 = vector.broadcast %451 : vector<1x512xf32> to vector<4x512xf32>
    %454 = vector.broadcast %452 : vector<4x1xf32> to vector<4x512xf32>
    %455 = arith.mulf %453, %454 : vector<4x512xf32>
    %456 = arith.addf %450, %455 : vector<4x512xf32>
    %457 = vector.extract_strided_slice %439 {offsets = [3, 0], sizes = [1, 512], strides = [1, 1]} : vector<4x512xf32> to vector<1x512xf32>
    %458 = vector.extract_strided_slice %1 {offsets = [0, 63], sizes = [4, 1], strides = [1, 1]} : vector<4x108xf32> to vector<4x1xf32>
    %459 = vector.broadcast %457 : vector<1x512xf32> to vector<4x512xf32>
    %460 = vector.broadcast %458 : vector<4x1xf32> to vector<4x512xf32>
    %461 = arith.mulf %459, %460 : vector<4x512xf32>
    %462 = arith.addf %456, %461 : vector<4x512xf32>
    %463 = arith.addf %437, %462 : vector<4x512xf32>
    %c496_i32_20 = arith.constant 496 : i32
    %464 = tpu.dynamic_rotate %284 by %c496_i32_20 dim 1 : vector<4x512xf32>, i32 -> vector<4x512xf32>
    %465 = arith.mulf %464, %25 : vector<4x512xf32>
    %466 = vector.extract_strided_slice %465 {offsets = [0, 0], sizes = [1, 512], strides = [1, 1]} : vector<4x512xf32> to vector<1x512xf32>
    %467 = vector.extract_strided_slice %1 {offsets = [0, 64], sizes = [4, 1], strides = [1, 1]} : vector<4x108xf32> to vector<4x1xf32>
    %468 = vector.broadcast %466 : vector<1x512xf32> to vector<4x512xf32>
    %469 = vector.broadcast %467 : vector<4x1xf32> to vector<4x512xf32>
    %470 = arith.mulf %468, %469 : vector<4x512xf32>
    %471 = vector.extract_strided_slice %465 {offsets = [1, 0], sizes = [1, 512], strides = [1, 1]} : vector<4x512xf32> to vector<1x512xf32>
    %472 = vector.extract_strided_slice %1 {offsets = [0, 65], sizes = [4, 1], strides = [1, 1]} : vector<4x108xf32> to vector<4x1xf32>
    %473 = vector.broadcast %471 : vector<1x512xf32> to vector<4x512xf32>
    %474 = vector.broadcast %472 : vector<4x1xf32> to vector<4x512xf32>
    %475 = arith.mulf %473, %474 : vector<4x512xf32>
    %476 = arith.addf %470, %475 : vector<4x512xf32>
    %477 = vector.extract_strided_slice %465 {offsets = [2, 0], sizes = [1, 512], strides = [1, 1]} : vector<4x512xf32> to vector<1x512xf32>
    %478 = vector.extract_strided_slice %1 {offsets = [0, 66], sizes = [4, 1], strides = [1, 1]} : vector<4x108xf32> to vector<4x1xf32>
    %479 = vector.broadcast %477 : vector<1x512xf32> to vector<4x512xf32>
    %480 = vector.broadcast %478 : vector<4x1xf32> to vector<4x512xf32>
    %481 = arith.mulf %479, %480 : vector<4x512xf32>
    %482 = arith.addf %476, %481 : vector<4x512xf32>
    %483 = vector.extract_strided_slice %465 {offsets = [3, 0], sizes = [1, 512], strides = [1, 1]} : vector<4x512xf32> to vector<1x512xf32>
    %484 = vector.extract_strided_slice %1 {offsets = [0, 67], sizes = [4, 1], strides = [1, 1]} : vector<4x108xf32> to vector<4x1xf32>
    %485 = vector.broadcast %483 : vector<1x512xf32> to vector<4x512xf32>
    %486 = vector.broadcast %484 : vector<4x1xf32> to vector<4x512xf32>
    %487 = arith.mulf %485, %486 : vector<4x512xf32>
    %488 = arith.addf %482, %487 : vector<4x512xf32>
    %489 = arith.addf %463, %488 : vector<4x512xf32>
    %c495_i32_21 = arith.constant 495 : i32
    %490 = tpu.dynamic_rotate %284 by %c495_i32_21 dim 1 : vector<4x512xf32>, i32 -> vector<4x512xf32>
    %491 = arith.mulf %490, %28 : vector<4x512xf32>
    %492 = vector.extract_strided_slice %491 {offsets = [0, 0], sizes = [1, 512], strides = [1, 1]} : vector<4x512xf32> to vector<1x512xf32>
    %493 = vector.extract_strided_slice %1 {offsets = [0, 68], sizes = [4, 1], strides = [1, 1]} : vector<4x108xf32> to vector<4x1xf32>
    %494 = vector.broadcast %492 : vector<1x512xf32> to vector<4x512xf32>
    %495 = vector.broadcast %493 : vector<4x1xf32> to vector<4x512xf32>
    %496 = arith.mulf %494, %495 : vector<4x512xf32>
    %497 = vector.extract_strided_slice %491 {offsets = [1, 0], sizes = [1, 512], strides = [1, 1]} : vector<4x512xf32> to vector<1x512xf32>
    %498 = vector.extract_strided_slice %1 {offsets = [0, 69], sizes = [4, 1], strides = [1, 1]} : vector<4x108xf32> to vector<4x1xf32>
    %499 = vector.broadcast %497 : vector<1x512xf32> to vector<4x512xf32>
    %500 = vector.broadcast %498 : vector<4x1xf32> to vector<4x512xf32>
    %501 = arith.mulf %499, %500 : vector<4x512xf32>
    %502 = arith.addf %496, %501 : vector<4x512xf32>
    %503 = vector.extract_strided_slice %491 {offsets = [2, 0], sizes = [1, 512], strides = [1, 1]} : vector<4x512xf32> to vector<1x512xf32>
    %504 = vector.extract_strided_slice %1 {offsets = [0, 70], sizes = [4, 1], strides = [1, 1]} : vector<4x108xf32> to vector<4x1xf32>
    %505 = vector.broadcast %503 : vector<1x512xf32> to vector<4x512xf32>
    %506 = vector.broadcast %504 : vector<4x1xf32> to vector<4x512xf32>
    %507 = arith.mulf %505, %506 : vector<4x512xf32>
    %508 = arith.addf %502, %507 : vector<4x512xf32>
    %509 = vector.extract_strided_slice %491 {offsets = [3, 0], sizes = [1, 512], strides = [1, 1]} : vector<4x512xf32> to vector<1x512xf32>
    %510 = vector.extract_strided_slice %1 {offsets = [0, 71], sizes = [4, 1], strides = [1, 1]} : vector<4x108xf32> to vector<4x1xf32>
    %511 = vector.broadcast %509 : vector<1x512xf32> to vector<4x512xf32>
    %512 = vector.broadcast %510 : vector<4x1xf32> to vector<4x512xf32>
    %513 = arith.mulf %511, %512 : vector<4x512xf32>
    %514 = arith.addf %508, %513 : vector<4x512xf32>
    %515 = arith.addf %489, %514 : vector<4x512xf32>
    %cst_22 = arith.constant dense<0.000000e+00> : vector<4xf32>
    %516 = vector.multi_reduction <add>, %515, %cst_22 [1] : vector<4x512xf32> to vector<4xf32>
    %517 = vector.shape_cast %516 : vector<4xf32> to vector<4x1xf32>
    %cst_23 = arith.constant 5.120000e+02 : f32
    %518 = vector.broadcast %cst_23 : f32 to vector<4x1xf32>
    %519 = arith.divf %517, %518 : vector<4x1xf32>
    %520 = vector.broadcast %519 : vector<4x1xf32> to vector<4x512xf32>
    %521 = arith.subf %515, %520 : vector<4x512xf32>
    %522 = arith.mulf %521, %521 : vector<4x512xf32>
    %cst_24 = arith.constant dense<0.000000e+00> : vector<4xf32>
    %523 = vector.multi_reduction <add>, %522, %cst_24 [1] : vector<4x512xf32> to vector<4xf32>
    %524 = vector.shape_cast %523 : vector<4xf32> to vector<4x1xf32>
    %cst_25 = arith.constant 5.120000e+02 : f32
    %525 = vector.broadcast %cst_25 : f32 to vector<4x1xf32>
    %526 = arith.divf %524, %525 : vector<4x1xf32>
    %cst_26 = arith.constant 9.99999974E-6 : f32
    %527 = vector.broadcast %cst_26 : f32 to vector<4x1xf32>
    %528 = arith.addf %526, %527 : vector<4x1xf32>
    %529 = math.rsqrt %528 : vector<4x1xf32>
    %530 = vector.extract_strided_slice %2 {offsets = [0, 1], sizes = [4, 1], strides = [1, 1]} : vector<4x3xf32> to vector<4x1xf32>
    %531 = arith.mulf %530, %529 : vector<4x1xf32>
    %532 = vector.extract_strided_slice %3 {offsets = [0, 1], sizes = [4, 1], strides = [1, 1]} : vector<4x3xf32> to vector<4x1xf32>
    %533 = arith.mulf %519, %531 : vector<4x1xf32>
    %534 = arith.subf %532, %533 : vector<4x1xf32>
    %535 = vector.broadcast %531 : vector<4x1xf32> to vector<4x512xf32>
    %536 = arith.mulf %515, %535 : vector<4x512xf32>
    %537 = vector.broadcast %534 : vector<4x1xf32> to vector<4x512xf32>
    %538 = arith.addf %536, %537 : vector<4x512xf32>
    %cst_27 = arith.constant 0.000000e+00 : f32
    %539 = vector.broadcast %cst_27 : f32 to vector<4x512xf32>
    %540 = arith.maximumf %538, %539 : vector<4x512xf32>
    %c17_i32_28 = arith.constant 17 : i32
    %541 = tpu.dynamic_rotate %540 by %c17_i32_28 dim 1 : vector<4x512xf32>, i32 -> vector<4x512xf32>
    %542 = arith.mulf %541, %7 : vector<4x512xf32>
    %543 = vector.extract_strided_slice %542 {offsets = [0, 0], sizes = [1, 512], strides = [1, 1]} : vector<4x512xf32> to vector<1x512xf32>
    %544 = vector.extract_strided_slice %1 {offsets = [0, 72], sizes = [4, 1], strides = [1, 1]} : vector<4x108xf32> to vector<4x1xf32>
    %545 = vector.broadcast %543 : vector<1x512xf32> to vector<4x512xf32>
    %546 = vector.broadcast %544 : vector<4x1xf32> to vector<4x512xf32>
    %547 = arith.mulf %545, %546 : vector<4x512xf32>
    %548 = vector.extract_strided_slice %542 {offsets = [1, 0], sizes = [1, 512], strides = [1, 1]} : vector<4x512xf32> to vector<1x512xf32>
    %549 = vector.extract_strided_slice %1 {offsets = [0, 73], sizes = [4, 1], strides = [1, 1]} : vector<4x108xf32> to vector<4x1xf32>
    %550 = vector.broadcast %548 : vector<1x512xf32> to vector<4x512xf32>
    %551 = vector.broadcast %549 : vector<4x1xf32> to vector<4x512xf32>
    %552 = arith.mulf %550, %551 : vector<4x512xf32>
    %553 = arith.addf %547, %552 : vector<4x512xf32>
    %554 = vector.extract_strided_slice %542 {offsets = [2, 0], sizes = [1, 512], strides = [1, 1]} : vector<4x512xf32> to vector<1x512xf32>
    %555 = vector.extract_strided_slice %1 {offsets = [0, 74], sizes = [4, 1], strides = [1, 1]} : vector<4x108xf32> to vector<4x1xf32>
    %556 = vector.broadcast %554 : vector<1x512xf32> to vector<4x512xf32>
    %557 = vector.broadcast %555 : vector<4x1xf32> to vector<4x512xf32>
    %558 = arith.mulf %556, %557 : vector<4x512xf32>
    %559 = arith.addf %553, %558 : vector<4x512xf32>
    %560 = vector.extract_strided_slice %542 {offsets = [3, 0], sizes = [1, 512], strides = [1, 1]} : vector<4x512xf32> to vector<1x512xf32>
    %561 = vector.extract_strided_slice %1 {offsets = [0, 75], sizes = [4, 1], strides = [1, 1]} : vector<4x108xf32> to vector<4x1xf32>
    %562 = vector.broadcast %560 : vector<1x512xf32> to vector<4x512xf32>
    %563 = vector.broadcast %561 : vector<4x1xf32> to vector<4x512xf32>
    %564 = arith.mulf %562, %563 : vector<4x512xf32>
    %565 = arith.addf %559, %564 : vector<4x512xf32>
    %c16_i32_29 = arith.constant 16 : i32
    %566 = tpu.dynamic_rotate %540 by %c16_i32_29 dim 1 : vector<4x512xf32>, i32 -> vector<4x512xf32>
    %567 = arith.mulf %566, %10 : vector<4x512xf32>
    %568 = vector.extract_strided_slice %567 {offsets = [0, 0], sizes = [1, 512], strides = [1, 1]} : vector<4x512xf32> to vector<1x512xf32>
    %569 = vector.extract_strided_slice %1 {offsets = [0, 76], sizes = [4, 1], strides = [1, 1]} : vector<4x108xf32> to vector<4x1xf32>
    %570 = vector.broadcast %568 : vector<1x512xf32> to vector<4x512xf32>
    %571 = vector.broadcast %569 : vector<4x1xf32> to vector<4x512xf32>
    %572 = arith.mulf %570, %571 : vector<4x512xf32>
    %573 = vector.extract_strided_slice %567 {offsets = [1, 0], sizes = [1, 512], strides = [1, 1]} : vector<4x512xf32> to vector<1x512xf32>
    %574 = vector.extract_strided_slice %1 {offsets = [0, 77], sizes = [4, 1], strides = [1, 1]} : vector<4x108xf32> to vector<4x1xf32>
    %575 = vector.broadcast %573 : vector<1x512xf32> to vector<4x512xf32>
    %576 = vector.broadcast %574 : vector<4x1xf32> to vector<4x512xf32>
    %577 = arith.mulf %575, %576 : vector<4x512xf32>
    %578 = arith.addf %572, %577 : vector<4x512xf32>
    %579 = vector.extract_strided_slice %567 {offsets = [2, 0], sizes = [1, 512], strides = [1, 1]} : vector<4x512xf32> to vector<1x512xf32>
    %580 = vector.extract_strided_slice %1 {offsets = [0, 78], sizes = [4, 1], strides = [1, 1]} : vector<4x108xf32> to vector<4x1xf32>
    %581 = vector.broadcast %579 : vector<1x512xf32> to vector<4x512xf32>
    %582 = vector.broadcast %580 : vector<4x1xf32> to vector<4x512xf32>
    %583 = arith.mulf %581, %582 : vector<4x512xf32>
    %584 = arith.addf %578, %583 : vector<4x512xf32>
    %585 = vector.extract_strided_slice %567 {offsets = [3, 0], sizes = [1, 512], strides = [1, 1]} : vector<4x512xf32> to vector<1x512xf32>
    %586 = vector.extract_strided_slice %1 {offsets = [0, 79], sizes = [4, 1], strides = [1, 1]} : vector<4x108xf32> to vector<4x1xf32>
    %587 = vector.broadcast %585 : vector<1x512xf32> to vector<4x512xf32>
    %588 = vector.broadcast %586 : vector<4x1xf32> to vector<4x512xf32>
    %589 = arith.mulf %587, %588 : vector<4x512xf32>
    %590 = arith.addf %584, %589 : vector<4x512xf32>
    %591 = arith.addf %565, %590 : vector<4x512xf32>
    %c15_i32_30 = arith.constant 15 : i32
    %592 = tpu.dynamic_rotate %540 by %c15_i32_30 dim 1 : vector<4x512xf32>, i32 -> vector<4x512xf32>
    %593 = arith.mulf %592, %13 : vector<4x512xf32>
    %594 = vector.extract_strided_slice %593 {offsets = [0, 0], sizes = [1, 512], strides = [1, 1]} : vector<4x512xf32> to vector<1x512xf32>
    %595 = vector.extract_strided_slice %1 {offsets = [0, 80], sizes = [4, 1], strides = [1, 1]} : vector<4x108xf32> to vector<4x1xf32>
    %596 = vector.broadcast %594 : vector<1x512xf32> to vector<4x512xf32>
    %597 = vector.broadcast %595 : vector<4x1xf32> to vector<4x512xf32>
    %598 = arith.mulf %596, %597 : vector<4x512xf32>
    %599 = vector.extract_strided_slice %593 {offsets = [1, 0], sizes = [1, 512], strides = [1, 1]} : vector<4x512xf32> to vector<1x512xf32>
    %600 = vector.extract_strided_slice %1 {offsets = [0, 81], sizes = [4, 1], strides = [1, 1]} : vector<4x108xf32> to vector<4x1xf32>
    %601 = vector.broadcast %599 : vector<1x512xf32> to vector<4x512xf32>
    %602 = vector.broadcast %600 : vector<4x1xf32> to vector<4x512xf32>
    %603 = arith.mulf %601, %602 : vector<4x512xf32>
    %604 = arith.addf %598, %603 : vector<4x512xf32>
    %605 = vector.extract_strided_slice %593 {offsets = [2, 0], sizes = [1, 512], strides = [1, 1]} : vector<4x512xf32> to vector<1x512xf32>
    %606 = vector.extract_strided_slice %1 {offsets = [0, 82], sizes = [4, 1], strides = [1, 1]} : vector<4x108xf32> to vector<4x1xf32>
    %607 = vector.broadcast %605 : vector<1x512xf32> to vector<4x512xf32>
    %608 = vector.broadcast %606 : vector<4x1xf32> to vector<4x512xf32>
    %609 = arith.mulf %607, %608 : vector<4x512xf32>
    %610 = arith.addf %604, %609 : vector<4x512xf32>
    %611 = vector.extract_strided_slice %593 {offsets = [3, 0], sizes = [1, 512], strides = [1, 1]} : vector<4x512xf32> to vector<1x512xf32>
    %612 = vector.extract_strided_slice %1 {offsets = [0, 83], sizes = [4, 1], strides = [1, 1]} : vector<4x108xf32> to vector<4x1xf32>
    %613 = vector.broadcast %611 : vector<1x512xf32> to vector<4x512xf32>
    %614 = vector.broadcast %612 : vector<4x1xf32> to vector<4x512xf32>
    %615 = arith.mulf %613, %614 : vector<4x512xf32>
    %616 = arith.addf %610, %615 : vector<4x512xf32>
    %617 = arith.addf %591, %616 : vector<4x512xf32>
    %c1_i32_31 = arith.constant 1 : i32
    %618 = tpu.dynamic_rotate %540 by %c1_i32_31 dim 1 : vector<4x512xf32>, i32 -> vector<4x512xf32>
    %619 = arith.mulf %618, %16 : vector<4x512xf32>
    %620 = vector.extract_strided_slice %619 {offsets = [0, 0], sizes = [1, 512], strides = [1, 1]} : vector<4x512xf32> to vector<1x512xf32>
    %621 = vector.extract_strided_slice %1 {offsets = [0, 84], sizes = [4, 1], strides = [1, 1]} : vector<4x108xf32> to vector<4x1xf32>
    %622 = vector.broadcast %620 : vector<1x512xf32> to vector<4x512xf32>
    %623 = vector.broadcast %621 : vector<4x1xf32> to vector<4x512xf32>
    %624 = arith.mulf %622, %623 : vector<4x512xf32>
    %625 = vector.extract_strided_slice %619 {offsets = [1, 0], sizes = [1, 512], strides = [1, 1]} : vector<4x512xf32> to vector<1x512xf32>
    %626 = vector.extract_strided_slice %1 {offsets = [0, 85], sizes = [4, 1], strides = [1, 1]} : vector<4x108xf32> to vector<4x1xf32>
    %627 = vector.broadcast %625 : vector<1x512xf32> to vector<4x512xf32>
    %628 = vector.broadcast %626 : vector<4x1xf32> to vector<4x512xf32>
    %629 = arith.mulf %627, %628 : vector<4x512xf32>
    %630 = arith.addf %624, %629 : vector<4x512xf32>
    %631 = vector.extract_strided_slice %619 {offsets = [2, 0], sizes = [1, 512], strides = [1, 1]} : vector<4x512xf32> to vector<1x512xf32>
    %632 = vector.extract_strided_slice %1 {offsets = [0, 86], sizes = [4, 1], strides = [1, 1]} : vector<4x108xf32> to vector<4x1xf32>
    %633 = vector.broadcast %631 : vector<1x512xf32> to vector<4x512xf32>
    %634 = vector.broadcast %632 : vector<4x1xf32> to vector<4x512xf32>
    %635 = arith.mulf %633, %634 : vector<4x512xf32>
    %636 = arith.addf %630, %635 : vector<4x512xf32>
    %637 = vector.extract_strided_slice %619 {offsets = [3, 0], sizes = [1, 512], strides = [1, 1]} : vector<4x512xf32> to vector<1x512xf32>
    %638 = vector.extract_strided_slice %1 {offsets = [0, 87], sizes = [4, 1], strides = [1, 1]} : vector<4x108xf32> to vector<4x1xf32>
    %639 = vector.broadcast %637 : vector<1x512xf32> to vector<4x512xf32>
    %640 = vector.broadcast %638 : vector<4x1xf32> to vector<4x512xf32>
    %641 = arith.mulf %639, %640 : vector<4x512xf32>
    %642 = arith.addf %636, %641 : vector<4x512xf32>
    %643 = arith.addf %617, %642 : vector<4x512xf32>
    %644 = vector.extract_strided_slice %540 {offsets = [0, 0], sizes = [1, 512], strides = [1, 1]} : vector<4x512xf32> to vector<1x512xf32>
    %645 = vector.extract_strided_slice %1 {offsets = [0, 88], sizes = [4, 1], strides = [1, 1]} : vector<4x108xf32> to vector<4x1xf32>
    %646 = vector.broadcast %644 : vector<1x512xf32> to vector<4x512xf32>
    %647 = vector.broadcast %645 : vector<4x1xf32> to vector<4x512xf32>
    %648 = arith.mulf %646, %647 : vector<4x512xf32>
    %649 = vector.extract_strided_slice %540 {offsets = [1, 0], sizes = [1, 512], strides = [1, 1]} : vector<4x512xf32> to vector<1x512xf32>
    %650 = vector.extract_strided_slice %1 {offsets = [0, 89], sizes = [4, 1], strides = [1, 1]} : vector<4x108xf32> to vector<4x1xf32>
    %651 = vector.broadcast %649 : vector<1x512xf32> to vector<4x512xf32>
    %652 = vector.broadcast %650 : vector<4x1xf32> to vector<4x512xf32>
    %653 = arith.mulf %651, %652 : vector<4x512xf32>
    %654 = arith.addf %648, %653 : vector<4x512xf32>
    %655 = vector.extract_strided_slice %540 {offsets = [2, 0], sizes = [1, 512], strides = [1, 1]} : vector<4x512xf32> to vector<1x512xf32>
    %656 = vector.extract_strided_slice %1 {offsets = [0, 90], sizes = [4, 1], strides = [1, 1]} : vector<4x108xf32> to vector<4x1xf32>
    %657 = vector.broadcast %655 : vector<1x512xf32> to vector<4x512xf32>
    %658 = vector.broadcast %656 : vector<4x1xf32> to vector<4x512xf32>
    %659 = arith.mulf %657, %658 : vector<4x512xf32>
    %660 = arith.addf %654, %659 : vector<4x512xf32>
    %661 = vector.extract_strided_slice %540 {offsets = [3, 0], sizes = [1, 512], strides = [1, 1]} : vector<4x512xf32> to vector<1x512xf32>
    %662 = vector.extract_strided_slice %1 {offsets = [0, 91], sizes = [4, 1], strides = [1, 1]} : vector<4x108xf32> to vector<4x1xf32>
    %663 = vector.broadcast %661 : vector<1x512xf32> to vector<4x512xf32>
    %664 = vector.broadcast %662 : vector<4x1xf32> to vector<4x512xf32>
    %665 = arith.mulf %663, %664 : vector<4x512xf32>
    %666 = arith.addf %660, %665 : vector<4x512xf32>
    %667 = arith.addf %643, %666 : vector<4x512xf32>
    %c511_i32_32 = arith.constant 511 : i32
    %668 = tpu.dynamic_rotate %540 by %c511_i32_32 dim 1 : vector<4x512xf32>, i32 -> vector<4x512xf32>
    %669 = arith.mulf %668, %19 : vector<4x512xf32>
    %670 = vector.extract_strided_slice %669 {offsets = [0, 0], sizes = [1, 512], strides = [1, 1]} : vector<4x512xf32> to vector<1x512xf32>
    %671 = vector.extract_strided_slice %1 {offsets = [0, 92], sizes = [4, 1], strides = [1, 1]} : vector<4x108xf32> to vector<4x1xf32>
    %672 = vector.broadcast %670 : vector<1x512xf32> to vector<4x512xf32>
    %673 = vector.broadcast %671 : vector<4x1xf32> to vector<4x512xf32>
    %674 = arith.mulf %672, %673 : vector<4x512xf32>
    %675 = vector.extract_strided_slice %669 {offsets = [1, 0], sizes = [1, 512], strides = [1, 1]} : vector<4x512xf32> to vector<1x512xf32>
    %676 = vector.extract_strided_slice %1 {offsets = [0, 93], sizes = [4, 1], strides = [1, 1]} : vector<4x108xf32> to vector<4x1xf32>
    %677 = vector.broadcast %675 : vector<1x512xf32> to vector<4x512xf32>
    %678 = vector.broadcast %676 : vector<4x1xf32> to vector<4x512xf32>
    %679 = arith.mulf %677, %678 : vector<4x512xf32>
    %680 = arith.addf %674, %679 : vector<4x512xf32>
    %681 = vector.extract_strided_slice %669 {offsets = [2, 0], sizes = [1, 512], strides = [1, 1]} : vector<4x512xf32> to vector<1x512xf32>
    %682 = vector.extract_strided_slice %1 {offsets = [0, 94], sizes = [4, 1], strides = [1, 1]} : vector<4x108xf32> to vector<4x1xf32>
    %683 = vector.broadcast %681 : vector<1x512xf32> to vector<4x512xf32>
    %684 = vector.broadcast %682 : vector<4x1xf32> to vector<4x512xf32>
    %685 = arith.mulf %683, %684 : vector<4x512xf32>
    %686 = arith.addf %680, %685 : vector<4x512xf32>
    %687 = vector.extract_strided_slice %669 {offsets = [3, 0], sizes = [1, 512], strides = [1, 1]} : vector<4x512xf32> to vector<1x512xf32>
    %688 = vector.extract_strided_slice %1 {offsets = [0, 95], sizes = [4, 1], strides = [1, 1]} : vector<4x108xf32> to vector<4x1xf32>
    %689 = vector.broadcast %687 : vector<1x512xf32> to vector<4x512xf32>
    %690 = vector.broadcast %688 : vector<4x1xf32> to vector<4x512xf32>
    %691 = arith.mulf %689, %690 : vector<4x512xf32>
    %692 = arith.addf %686, %691 : vector<4x512xf32>
    %693 = arith.addf %667, %692 : vector<4x512xf32>
    %c497_i32_33 = arith.constant 497 : i32
    %694 = tpu.dynamic_rotate %540 by %c497_i32_33 dim 1 : vector<4x512xf32>, i32 -> vector<4x512xf32>
    %695 = arith.mulf %694, %22 : vector<4x512xf32>
    %696 = vector.extract_strided_slice %695 {offsets = [0, 0], sizes = [1, 512], strides = [1, 1]} : vector<4x512xf32> to vector<1x512xf32>
    %697 = vector.extract_strided_slice %1 {offsets = [0, 96], sizes = [4, 1], strides = [1, 1]} : vector<4x108xf32> to vector<4x1xf32>
    %698 = vector.broadcast %696 : vector<1x512xf32> to vector<4x512xf32>
    %699 = vector.broadcast %697 : vector<4x1xf32> to vector<4x512xf32>
    %700 = arith.mulf %698, %699 : vector<4x512xf32>
    %701 = vector.extract_strided_slice %695 {offsets = [1, 0], sizes = [1, 512], strides = [1, 1]} : vector<4x512xf32> to vector<1x512xf32>
    %702 = vector.extract_strided_slice %1 {offsets = [0, 97], sizes = [4, 1], strides = [1, 1]} : vector<4x108xf32> to vector<4x1xf32>
    %703 = vector.broadcast %701 : vector<1x512xf32> to vector<4x512xf32>
    %704 = vector.broadcast %702 : vector<4x1xf32> to vector<4x512xf32>
    %705 = arith.mulf %703, %704 : vector<4x512xf32>
    %706 = arith.addf %700, %705 : vector<4x512xf32>
    %707 = vector.extract_strided_slice %695 {offsets = [2, 0], sizes = [1, 512], strides = [1, 1]} : vector<4x512xf32> to vector<1x512xf32>
    %708 = vector.extract_strided_slice %1 {offsets = [0, 98], sizes = [4, 1], strides = [1, 1]} : vector<4x108xf32> to vector<4x1xf32>
    %709 = vector.broadcast %707 : vector<1x512xf32> to vector<4x512xf32>
    %710 = vector.broadcast %708 : vector<4x1xf32> to vector<4x512xf32>
    %711 = arith.mulf %709, %710 : vector<4x512xf32>
    %712 = arith.addf %706, %711 : vector<4x512xf32>
    %713 = vector.extract_strided_slice %695 {offsets = [3, 0], sizes = [1, 512], strides = [1, 1]} : vector<4x512xf32> to vector<1x512xf32>
    %714 = vector.extract_strided_slice %1 {offsets = [0, 99], sizes = [4, 1], strides = [1, 1]} : vector<4x108xf32> to vector<4x1xf32>
    %715 = vector.broadcast %713 : vector<1x512xf32> to vector<4x512xf32>
    %716 = vector.broadcast %714 : vector<4x1xf32> to vector<4x512xf32>
    %717 = arith.mulf %715, %716 : vector<4x512xf32>
    %718 = arith.addf %712, %717 : vector<4x512xf32>
    %719 = arith.addf %693, %718 : vector<4x512xf32>
    %c496_i32_34 = arith.constant 496 : i32
    %720 = tpu.dynamic_rotate %540 by %c496_i32_34 dim 1 : vector<4x512xf32>, i32 -> vector<4x512xf32>
    %721 = arith.mulf %720, %25 : vector<4x512xf32>
    %722 = vector.extract_strided_slice %721 {offsets = [0, 0], sizes = [1, 512], strides = [1, 1]} : vector<4x512xf32> to vector<1x512xf32>
    %723 = vector.extract_strided_slice %1 {offsets = [0, 100], sizes = [4, 1], strides = [1, 1]} : vector<4x108xf32> to vector<4x1xf32>
    %724 = vector.broadcast %722 : vector<1x512xf32> to vector<4x512xf32>
    %725 = vector.broadcast %723 : vector<4x1xf32> to vector<4x512xf32>
    %726 = arith.mulf %724, %725 : vector<4x512xf32>
    %727 = vector.extract_strided_slice %721 {offsets = [1, 0], sizes = [1, 512], strides = [1, 1]} : vector<4x512xf32> to vector<1x512xf32>
    %728 = vector.extract_strided_slice %1 {offsets = [0, 101], sizes = [4, 1], strides = [1, 1]} : vector<4x108xf32> to vector<4x1xf32>
    %729 = vector.broadcast %727 : vector<1x512xf32> to vector<4x512xf32>
    %730 = vector.broadcast %728 : vector<4x1xf32> to vector<4x512xf32>
    %731 = arith.mulf %729, %730 : vector<4x512xf32>
    %732 = arith.addf %726, %731 : vector<4x512xf32>
    %733 = vector.extract_strided_slice %721 {offsets = [2, 0], sizes = [1, 512], strides = [1, 1]} : vector<4x512xf32> to vector<1x512xf32>
    %734 = vector.extract_strided_slice %1 {offsets = [0, 102], sizes = [4, 1], strides = [1, 1]} : vector<4x108xf32> to vector<4x1xf32>
    %735 = vector.broadcast %733 : vector<1x512xf32> to vector<4x512xf32>
    %736 = vector.broadcast %734 : vector<4x1xf32> to vector<4x512xf32>
    %737 = arith.mulf %735, %736 : vector<4x512xf32>
    %738 = arith.addf %732, %737 : vector<4x512xf32>
    %739 = vector.extract_strided_slice %721 {offsets = [3, 0], sizes = [1, 512], strides = [1, 1]} : vector<4x512xf32> to vector<1x512xf32>
    %740 = vector.extract_strided_slice %1 {offsets = [0, 103], sizes = [4, 1], strides = [1, 1]} : vector<4x108xf32> to vector<4x1xf32>
    %741 = vector.broadcast %739 : vector<1x512xf32> to vector<4x512xf32>
    %742 = vector.broadcast %740 : vector<4x1xf32> to vector<4x512xf32>
    %743 = arith.mulf %741, %742 : vector<4x512xf32>
    %744 = arith.addf %738, %743 : vector<4x512xf32>
    %745 = arith.addf %719, %744 : vector<4x512xf32>
    %c495_i32_35 = arith.constant 495 : i32
    %746 = tpu.dynamic_rotate %540 by %c495_i32_35 dim 1 : vector<4x512xf32>, i32 -> vector<4x512xf32>
    %747 = arith.mulf %746, %28 : vector<4x512xf32>
    %748 = vector.extract_strided_slice %747 {offsets = [0, 0], sizes = [1, 512], strides = [1, 1]} : vector<4x512xf32> to vector<1x512xf32>
    %749 = vector.extract_strided_slice %1 {offsets = [0, 104], sizes = [4, 1], strides = [1, 1]} : vector<4x108xf32> to vector<4x1xf32>
    %750 = vector.broadcast %748 : vector<1x512xf32> to vector<4x512xf32>
    %751 = vector.broadcast %749 : vector<4x1xf32> to vector<4x512xf32>
    %752 = arith.mulf %750, %751 : vector<4x512xf32>
    %753 = vector.extract_strided_slice %747 {offsets = [1, 0], sizes = [1, 512], strides = [1, 1]} : vector<4x512xf32> to vector<1x512xf32>
    %754 = vector.extract_strided_slice %1 {offsets = [0, 105], sizes = [4, 1], strides = [1, 1]} : vector<4x108xf32> to vector<4x1xf32>
    %755 = vector.broadcast %753 : vector<1x512xf32> to vector<4x512xf32>
    %756 = vector.broadcast %754 : vector<4x1xf32> to vector<4x512xf32>
    %757 = arith.mulf %755, %756 : vector<4x512xf32>
    %758 = arith.addf %752, %757 : vector<4x512xf32>
    %759 = vector.extract_strided_slice %747 {offsets = [2, 0], sizes = [1, 512], strides = [1, 1]} : vector<4x512xf32> to vector<1x512xf32>
    %760 = vector.extract_strided_slice %1 {offsets = [0, 106], sizes = [4, 1], strides = [1, 1]} : vector<4x108xf32> to vector<4x1xf32>
    %761 = vector.broadcast %759 : vector<1x512xf32> to vector<4x512xf32>
    %762 = vector.broadcast %760 : vector<4x1xf32> to vector<4x512xf32>
    %763 = arith.mulf %761, %762 : vector<4x512xf32>
    %764 = arith.addf %758, %763 : vector<4x512xf32>
    %765 = vector.extract_strided_slice %747 {offsets = [3, 0], sizes = [1, 512], strides = [1, 1]} : vector<4x512xf32> to vector<1x512xf32>
    %766 = vector.extract_strided_slice %1 {offsets = [0, 107], sizes = [4, 1], strides = [1, 1]} : vector<4x108xf32> to vector<4x1xf32>
    %767 = vector.broadcast %765 : vector<1x512xf32> to vector<4x512xf32>
    %768 = vector.broadcast %766 : vector<4x1xf32> to vector<4x512xf32>
    %769 = arith.mulf %767, %768 : vector<4x512xf32>
    %770 = arith.addf %764, %769 : vector<4x512xf32>
    %771 = arith.addf %745, %770 : vector<4x512xf32>
    %cst_36 = arith.constant dense<0.000000e+00> : vector<4xf32>
    %772 = vector.multi_reduction <add>, %771, %cst_36 [1] : vector<4x512xf32> to vector<4xf32>
    %773 = vector.shape_cast %772 : vector<4xf32> to vector<4x1xf32>
    %cst_37 = arith.constant 5.120000e+02 : f32
    %774 = vector.broadcast %cst_37 : f32 to vector<4x1xf32>
    %775 = arith.divf %773, %774 : vector<4x1xf32>
    %776 = vector.broadcast %775 : vector<4x1xf32> to vector<4x512xf32>
    %777 = arith.subf %771, %776 : vector<4x512xf32>
    %778 = arith.mulf %777, %777 : vector<4x512xf32>
    %cst_38 = arith.constant dense<0.000000e+00> : vector<4xf32>
    %779 = vector.multi_reduction <add>, %778, %cst_38 [1] : vector<4x512xf32> to vector<4xf32>
    %780 = vector.shape_cast %779 : vector<4xf32> to vector<4x1xf32>
    %cst_39 = arith.constant 5.120000e+02 : f32
    %781 = vector.broadcast %cst_39 : f32 to vector<4x1xf32>
    %782 = arith.divf %780, %781 : vector<4x1xf32>
    %cst_40 = arith.constant 9.99999974E-6 : f32
    %783 = vector.broadcast %cst_40 : f32 to vector<4x1xf32>
    %784 = arith.addf %782, %783 : vector<4x1xf32>
    %785 = math.rsqrt %784 : vector<4x1xf32>
    %786 = vector.extract_strided_slice %2 {offsets = [0, 2], sizes = [4, 1], strides = [1, 1]} : vector<4x3xf32> to vector<4x1xf32>
    %787 = arith.mulf %786, %785 : vector<4x1xf32>
    %788 = vector.extract_strided_slice %3 {offsets = [0, 2], sizes = [4, 1], strides = [1, 1]} : vector<4x3xf32> to vector<4x1xf32>
    %789 = arith.mulf %775, %787 : vector<4x1xf32>
    %790 = arith.subf %788, %789 : vector<4x1xf32>
    %791 = vector.broadcast %787 : vector<4x1xf32> to vector<4x512xf32>
    %792 = arith.mulf %771, %791 : vector<4x512xf32>
    %793 = vector.broadcast %790 : vector<4x1xf32> to vector<4x512xf32>
    %794 = arith.addf %792, %793 : vector<4x512xf32>
    %cst_41 = arith.constant 0.000000e+00 : f32
    %795 = vector.broadcast %cst_41 : f32 to vector<4x512xf32>
    %796 = arith.maximumf %794, %795 : vector<4x512xf32>
    %c0_42 = arith.constant 0 : index
    %c0_43 = arith.constant 0 : index
    %797 = vector.load %arg5[%c0_42, %c0_43] : memref<4x512xf32, #tpu.memory_space<vmem>>, vector<4x512xf32>
    tpu.vector_store %arg5[%c0_42, %c0_43], %796 {strides = array<i32>} : memref<4x512xf32, #tpu.memory_space<vmem>>, vector<4x512xf32>,
    return
  }
}

</mosaic_0001>

<bundles_post_ra>
// kernel: tpu_custom_call.1
= control target key start
LH: loop header
LB: loop body
LE: loop exit
PB: predicated region body
PF: predicated region fallthrough
CT: control target
= control target key end

     0   :  { %10 = vsyncpa [#allocation3], 0  ;;  %s7096_s0 = inlined_call_operand.hbm [shape: f32[4,512], index: 0, kind: input, shape index: {}]   ;;  %s7097_s1 = inlined_call_operand.hbm [shape: f32[4,108], index: 1, kind: input, shape index: {}]   ;;  %s7098_s2 = inlined_call_operand.vmem [shape: f32[4,3], index: 2, kind: input, shape index: {}]   ;;  %s7099_s3 = inlined_call_operand.vmem [shape: f32[4,3], index: 3, kind: input, shape index: {}]   ;;  %s7100_s4 = inlined_call_operand.hbm [shape: f32[9,512], index: 4, kind: input, shape index: {}]   ;;  %s7101_s5 = inlined_call_operand.hbm [shape: f32[4,512], index: 5, kind: output, shape index: {}]  }
   0x1   :  { %11 = vsyncpa [#allocation6], 0 }
   0x2   :  { %12 = vsyncpa [#allocation4], 0  ;;  %s4241_s18 = smov [#allocation5]   ;;  %s4242_s20 = smov [#allocation2]  }
   0x3   :  { %s29_s19 = sshll.u32 %s4241_s18, 4  ;;  %s19_s21 = sshll.u32 %s4242_s20, 4  ;;  %s30_s19 = int_to_ptr.vmem [resolvable:$true] %s29_s19  ;;  %s20_s21 = int_to_ptr.vmem [resolvable:$true] %s19_s21 }
   0x4   :  { %s4147_s24 = scalar_lea.hbm %s7097_s1, 64 }
   0x5   :  { %p4148_p0 = scmp.ne.s32.totalorder %s7097_s1, %s4147_s24  ;;  %p4151_p1 = scmp.lt.u32.totalorder %s4147_s24, %s7097_s1 }
   0x7   :  { %p4153_p2 = pnand %p4151_p1, %p4148_p0 }
   0x9   :  { %4156 = shalt.err (!%p4153_p2)
}
   0xa   :  { %s4157_s29 = scalar_lea.vmem %s30_s19, 64  ;;  %p4162_p4 = scmp.lt.s32.totalorder %s30_s19, %s30_s19 }
   0xb   :  { %p4158_p3 = scmp.ne.s32.totalorder %s30_s19, %s4157_s29  ;;  %p4163_p5 = scmp.lt.s32.totalorder %s4157_s29, %s4157_s29 }
   0xd   :  { %p4164_p6 = por %p4163_p5, %p4162_p4 }
   0xf   :  { %p4165_p7 = pnand %p4164_p6, %p4158_p3 }
  0x11   :  { %4168 = shalt.err (!%p4165_p7)
}
  0x12   :  { %32 = dma.hbm_to_vmem [thread:$0]  %s7097_s1, 64, %s30_s19, [#allocation6]  }
  0x13   :  { %s4169_s9 = scalar_lea.hbm %s7096_s0, 256 }
  0x14   :  { %p4170_p8 = scmp.ne.s32.totalorder %s7096_s0, %s4169_s9  ;;  %p4173_p9 = scmp.lt.u32.totalorder %s4169_s9, %s7096_s0 }
  0x16   :  { %p4175_p10 = pnand %p4173_p9, %p4170_p8 }
  0x18   :  { %4178 = shalt.err (!%p4175_p10)
}
  0x19   :  { %s4179_s14 = scalar_lea.vmem %s20_s21, 256  ;;  %p4184_p12 = scmp.lt.s32.totalorder %s20_s21, %s20_s21 }
  0x1a   :  { %p4180_p11 = scmp.ne.s32.totalorder %s20_s21, %s4179_s14  ;;  %p4185_p13 = scmp.lt.s32.totalorder %s4179_s14, %s4179_s14 }
  0x1c   :  { %p4186_p0 = por %p4185_p13, %p4184_p12 }
  0x1e   :  { %p4187_p1 = pnand %p4186_p0, %p4180_p11 }
  0x20   :  { %4190 = shalt.err (!%p4187_p1)
}
  0x21   :  { %22 = dma.hbm_to_vmem [thread:$0]  %s7096_s0, 256, %s20_s21, [#allocation3]  }
  0x22   :  { %s4243_s16 = smov [#allocation7]   ;;  %s4191_s20 = scalar_lea.hbm %s7100_s4, 1024 }
  0x23   :  { %s42_s17 = sshll.u32 %s4243_s16, 4  ;;  %p4192_p2 = scmp.ne.s32.totalorder %s7100_s4, %s4191_s20  ;;  %s43_s17 = int_to_ptr.vmem [resolvable:$true] %s42_s17 }
  0x24   :  { %p4195_p3 = scmp.lt.u32.totalorder %s4191_s20, %s7100_s4 }
  0x26   :  { %p4197_p4 = pnand %p4195_p3, %p4192_p2 }
  0x28   :  { %4200 = shalt.err (!%p4197_p4)
}
  0x29   :  { %s4201_s26 = scalar_lea.vmem %s43_s17, 1024  ;;  %p4206_p6 = scmp.lt.s32.totalorder %s43_s17, %s43_s17 }
  0x2a   :  { %p4202_p5 = scmp.ne.s32.totalorder %s43_s17, %s4201_s26  ;;  %p4207_p7 = scmp.lt.s32.totalorder %s4201_s26, %s4201_s26 }
  0x2c   :  { %p4208_p8 = por %p4207_p7, %p4206_p6 }
  0x2e   :  { %p4209_p9 = pnand %p4208_p8, %p4202_p5 }
  0x30   :  { %4212 = shalt.err (!%p4209_p9)
}
  0x31   :  { %s4244_s0 = smov 512   ;;  %s4245_s21 = smov 32  }
  0x32   :  { %48 = dma.hbm_to_vmem [thread:$0]  %s7100_s4, 1024, %s43_s17, [#allocation6], %s4244_s0, %s4244_s0, %s4245_s21  }
  0x33   :  { %4235 = dma.done.wait [#allocation3], 256  }
  0x34   :  { %4236 = vsyncadd [#allocation3], 4294967040 }
  0x35   :  { %4237 = dma.done.wait [#allocation6], 1088  }
  0x36   :  { %4238 = vsyncadd [#allocation6], 4294966208  ;;  %v4246_v0 = vmov 4   ;;  %v7106_v1 = vmov 0   ;;  %v4430_v2 = vld [vmem:[#allocation5] sm:$0xf]  ;;  %v71_v53 = vlaneseq }
  0x37   :  { %4013 = vset.pattern.permute.xlu1 %v4246_v0  ;;  %4011 = vset.pattern.permute.xlu0 %v7106_v1  ;;  %v4434_v3 = vld [vmem:[#allocation2] sm:$0xff]  ;;  %v4248_v4 = vmov 5   ;;  %v7104_v5 = vmov 1   ;;  %v4443_v7 = vld [vmem:[#allocation2 + $0x8] sm:$0xff]  ;;  %s4250_s4 = smov 17   ;;  %v7102_v9 = vmov 2  }
  0x38   :  { %367 = vperm.xlu1 %4013, %v4430_v2   ;;  %242 = vperm.xlu0 %4011, %v4430_v2   ;;  %v4441_v6 = vcombine.high %v4434_v3, %v4434_v3  ;;  %v4451_v8 = vcombine.high %v4443_v7, %v4443_v7  ;;  %v4252_v10 = vmov 6   ;;  %s4253_s29 = smov 16   ;;  %v4254_v11 = vmov 8   ;;  %s4257_s30 = smov 15   ;;  %v4584_v62 = vld [vmem:[#allocation7 + $0x8] sm:$0xff]  ;;  %v4586_v63 = vld [vmem:[#allocation7] sm:$0xff] }
  0x39   :  { %v4255_v12 = vmov 3   ;;  %v4256_v13 = vmov 9   ;;  %v4258_v14 = vmov 12   ;;  %v4259_v15 = vmov 7   ;;  %s4262_s6 = smov 1   ;;  %s4268_s7 = smov 127  }
  0x3a   :  { %v4260_v16 = vmov 11   ;;  %v4261_v17 = vmov 10   ;;  %v4263_v18 = vmov 16   ;;  %v4264_v19 = vmov 13   ;;  %s4272_s8 = smov 113   ;;  %s4277_s9 = smov 112  }
  0x3b   :  { %v4265_v20 = vmov 15   ;;  %v4266_v21 = vmov 14   ;;  %v4267_v22 = vmov 21   ;;  %v4269_v23 = vmov 22   ;;  %s4281_s10 = smov 111   ;;  %v4588_v0 = vld [vmem:[#allocation7 + $0x10] sm:$0xff] }
  0x3c   :  { %4014 = vset.pattern.permute.xlu1 %v4248_v4  ;;  %4012 = vset.pattern.permute.xlu0 %v7104_v5  ;;  %v4270_v24 = vmov 28   ;;  %v4271_v25 = vmov 17   ;;  %v4273_v26 = vmov 18   ;;  %v4274_v27 = vmov 20  }
  0x3d   :  { %391 = vperm.xlu1 %4014, %v4430_v2   ;;  %266 = vperm.xlu0 %4012, %v4430_v2   ;;  %v4275_v28 = vmov 27   ;;  %v4276_v29 = vmov 19   ;;  %v4278_v30 = vmov 32   ;;  %v4279_v31 = vmov 24  }
  0x3e   :  { %v4280_v32 = vmov 31   ;;  %v4282_v33 = vmov 25   ;;  %v4283_v34 = vmov 23   ;;  %v4284_v35 = vmov 26  }
  0x3f   :  { %v4285_v38 = vmov 29   ;;  %v4286_v41 = vmov 30   ;;  %v4287_v50 = vmov 33   ;;  %v4288_v54 = vmov 34  }
  0x40   :  { %v72_v57 = vshrl.u32 %v71_v53, 7  ;;  %v4580_v61 = vand.u32 127, %v71_v53  ;;  %vm1428_vm8 = vcmask 1043456  }
  0x41   :  { %205 = vrot.lane.b32.xlu1 %v4434_v3, %s4250_s4  ;;  %207 = vrot.lane.b32.xlu0 %v4441_v6, %s4250_s4 }
  0x42   :  { %4015 = vset.pattern.permute.xlu0 %v7102_v9  ;;  %4016 = vset.pattern.permute.xlu1 %v4252_v10  ;;  %v4578_v60 = vsub.s32 0, %v72_v57  ;;  %vm215_vm0 = vcmp.lt.s32.totalorder %v4580_v61, 17  ;;  %vm341_vm1 = vcmp.lt.s32.totalorder %v4580_v61, 16  ;;  %vm470_vm2 = vcmp.lt.s32.totalorder %v4580_v61, 15 }
  0x43   :  { %vm599_vm3 = vcmp.lt.s32.totalorder %v4580_v61, 1  ;;  %vm920_vm4 = vcmp.lt.s32.totalorder %v4580_v61, 127  ;;  %vm1049_vm5 = vcmp.lt.s32.totalorder %v4580_v61, 113  ;;  %vm1307_vm6 = vcmp.lt.s32.totalorder %v4580_v61, 111 }
  0x44   :  { %v4596_v10 = vrot.slane %v4584_v62, %v4578_v60  ;;  %vm1178_vm7 = vcmp.lt.s32.totalorder %v4580_v61, 112 }
  0x45   :  { %211 = vrot.lane.b32.xlu1 %v4451_v8, %s4250_s4  ;;  %294 = vperm.xlu0 %4015, %v4430_v2  }
  0x46   :  { %7185 = vst [vmem:[#allocation13_spill] sm:$0xff] %v4596_v10 }
  0x49   :  { %333 = vrot.lane.b32.xlu1 %v4434_v3, %s4253_s29  ;;  %339 = vrot.lane.b32.xlu0 %v4451_v8, %s4253_s29 }
  0x4a   :  { %4017 = vset.pattern.permute.xlu0 %v4254_v11  ;;  %v4598_v11 = vsub.s32 1, %v72_v57 }
  0x4d   :  { %335 = vrot.lane.b32.xlu1 %v4441_v6, %s4253_s29  ;;  %496 = vperm.xlu0 %4017, %v4430_v2  }
  0x51   :  { %419 = vperm.xlu1 %4016, %v4430_v2   ;;  %4019 = vset.pattern.permute.xlu0 %v4255_v12  ;;  %v4601_v12 = vld [vmem:[#allocation7 + $0x18] sm:$0xff] }
  0x52   :  { %322 = vperm.xlu0 %4019, %v4430_v2  }
  0x55   :  { %4018 = vset.pattern.permute.xlu1 %v4256_v13  ;;  %v4606_v13 = vrot.slane %v4586_v63, %v4578_v60 }
  0x56   :  { %520 = vperm.xlu1 %4018, %v4430_v2   ;;  %462 = vrot.lane.b32.xlu0 %v4434_v3, %s4257_s30 }
  0x57   :  { %4022 = vset.pattern.permute.xlu0 %v4258_v14  ;;  %7186 = vst [vmem:[#allocation14_spill] sm:$0xff] %v4606_v13  ;;  %v4608_v14 = vsub.s32 2, %v72_v57 }
  0x5a   :  { %209 = vrot.lane.b32.xlu1 %v4443_v7, %s4250_s4  ;;  %468 = vrot.lane.b32.xlu0 %v4451_v8, %s4257_s30 }
  0x5b   :  { %4020 = vset.pattern.permute.xlu1 %v4259_v15  ;;  %v4610_v15 = vsub.s32 3, %v72_v57 }
  0x5d   :  { %v4716_v5 = vrot.slane %v4601_v12, %v4610_v15 }
  0x5e   :  { %337 = vrot.lane.b32.xlu1 %v4443_v7, %s4253_s29  ;;  %625 = vperm.xlu0 %4022, %v4430_v2  }
  0x5f   :  { %7206 = vst [vmem:[#allocation34_spill] sm:$0xff] %v4716_v5 }
  0x62   :  { %447 = vperm.xlu1 %4020, %v4430_v2   ;;  %4024 = vset.pattern.permute.xlu0 %v4260_v16  ;;  %v4614_v16 = vrot.slane %v4586_v63, %v4598_v11 }
  0x63   :  { %576 = vperm.xlu0 %4024, %v4430_v2  }
  0x64   :  { %7187 = vst [vmem:[#allocation15_spill] sm:$0xff] %v4614_v16 }
  0x66   :  { %464 = vrot.lane.b32.xlu1 %v4441_v6, %s4257_s30 }
  0x67   :  { %4021 = vset.pattern.permute.xlu1 %v4261_v17  ;;  %597 = vrot.lane.b32.xlu0 %v4451_v8, %s4262_s6  ;;  %v4619_v17 = vrot.slane %v4584_v62, %v4598_v11 }
  0x68   :  { %4026 = vset.pattern.permute.xlu0 %v4263_v18  ;;  %v4623_v18 = vrot.slane %v4588_v0, %v4578_v60 }
  0x69   :  { %7188 = vst [vmem:[#allocation16_spill] sm:$0xff] %v4619_v17 }
  0x6a   :  { %548 = vperm.xlu1 %4021, %v4430_v2   ;;  %7189 = vst [vmem:[#allocation17_spill] sm:$0xff] %v4623_v18 }
  0x6b   :  { %757 = vperm.xlu0 %4026, %v4430_v2  }
  0x6e   :  { %4023 = vset.pattern.permute.xlu1 %v4264_v19  ;;  %v4627_v19 = vrot.slane %v4601_v12, %v4578_v60 }
  0x6f   :  { %649 = vperm.xlu1 %4023, %v4430_v2   ;;  %4028 = vset.pattern.permute.xlu0 %v4265_v20  ;;  %v4631_v20 = vrot.slane %v4586_v63, %v4608_v14 }
  0x70   :  { %705 = vperm.xlu0 %4028, %v4430_v2   ;;  %7190 = vst [vmem:[#allocation18_spill] sm:$0xff] %v4627_v19 }
  0x71   :  { %7191 = vst [vmem:[#allocation19_spill] sm:$0xff] %v4631_v20 }
  0x73   :  { %466 = vrot.lane.b32.xlu1 %v4443_v7, %s4257_s30 }
  0x74   :  { %4025 = vset.pattern.permute.xlu1 %v4266_v21  ;;  %4031 = vset.pattern.permute.xlu0 %v4267_v22  ;;  %v723_v22 = vrot.slane %v4434_v3, %v4578_v60 }
  0x75   :  { %970 = vperm.xlu0 %4031, %v4430_v2  }
  0x77   :  { %591 = vrot.lane.b32.xlu1 %v4434_v3, %s4262_s6 }
  0x79   :  { %914 = vrot.lane.b32.xlu0 %v4441_v6, %s4268_s7 }
  0x7a   :  { %4033 = vset.pattern.permute.xlu0 %v4269_v23  ;;  %v731_v23 = vrot.slane %v4443_v7, %v4578_v60 }
  0x7b   :  { %593 = vrot.lane.b32.xlu1 %v4441_v6, %s4262_s6 }
  0x7d   :  { %998 = vperm.xlu0 %4033, %v4430_v2  }
  0x7f   :  { %677 = vperm.xlu1 %4025, %v4430_v2  }
  0x81   :  { %918 = vrot.lane.b32.xlu0 %v4451_v8, %s4268_s7 }
  0x82   :  { %4038 = vset.pattern.permute.xlu0 %v4270_v24  ;;  %v4641_v24 = vrot.slane %v4588_v0, %v4598_v11 }
  0x83   :  { %4027 = vset.pattern.permute.xlu1 %v4271_v25  ;;  %v4645_v25 = vrot.slane %v4601_v12, %v4598_v11 }
  0x84   :  { %801 = vperm.xlu1 %4027, %v4430_v2   ;;  %7192 = vst [vmem:[#allocation20_spill] sm:$0xff] %v4641_v24 }
  0x85   :  { %1041 = vrot.lane.b32.xlu0 %v4434_v3, %s4272_s8  ;;  %7193 = vst [vmem:[#allocation21_spill] sm:$0xff] %v4645_v25 }
  0x88   :  { %595 = vrot.lane.b32.xlu1 %v4443_v7, %s4262_s6 }
  0x89   :  { %4029 = vset.pattern.permute.xlu1 %v4273_v26  ;;  %1045 = vrot.lane.b32.xlu0 %v4443_v7, %s4272_s8  ;;  %v4289_v26 = vmov 35  }
  0x8c   :  { %849 = vperm.xlu1 %4029, %v4430_v2  }
  0x8d   :  { %1204 = vperm.xlu0 %4038, %v4430_v2  }
  0x90   :  { %4030 = vset.pattern.permute.xlu1 %v4274_v27 }
  0x91   :  { %946 = vperm.xlu1 %4030, %v4430_v2   ;;  %4040 = vset.pattern.permute.xlu0 %v4275_v28 }
  0x92   :  { %1155 = vperm.xlu0 %4040, %v4430_v2  }
  0x95   :  { %4032 = vset.pattern.permute.xlu1 %v4276_v29 }
  0x96   :  { %897 = vperm.xlu1 %4032, %v4430_v2   ;;  %1174 = vrot.lane.b32.xlu0 %v4443_v7, %s4277_s9 }
  0x97   :  { %4042 = vset.pattern.permute.xlu0 %v4278_v30  ;;  %v4658_v30 = vrot.slane %v4584_v62, %v4608_v14 }
  0x99   :  { %7197 = vst [vmem:[#allocation25_spill] sm:$0xff] %v4658_v30 }
  0x9a   :  { %912 = vrot.lane.b32.xlu1 %v4434_v3, %s4268_s7  ;;  %1333 = vperm.xlu0 %4042, %v4430_v2  }
  0x9b   :  { %4034 = vset.pattern.permute.xlu1 %v4279_v31  ;;  %v4662_v31 = vrot.slane %v4588_v0, %v4608_v14 }
  0x9d   :  { %7198 = vst [vmem:[#allocation26_spill] sm:$0xff] %v4662_v31 }
  0x9e   :  { %916 = vrot.lane.b32.xlu1 %v4443_v7, %s4268_s7  ;;  %4044 = vset.pattern.permute.xlu0 %v4280_v32  ;;  %v4666_v32 = vrot.slane %v4601_v12, %v4608_v14 }
  0x9f   :  { %1284 = vperm.xlu0 %4044, %v4430_v2  }
  0xa0   :  { %7199 = vst [vmem:[#allocation27_spill] sm:$0xff] %v4666_v32 }
  0xa2   :  { %1075 = vperm.xlu1 %4034, %v4430_v2  }
  0xa3   :  { %1303 = vrot.lane.b32.xlu0 %v4443_v7, %s4281_s10 }
  0xa6   :  { %4035 = vset.pattern.permute.xlu1 %v4282_v33  ;;  %v137_v33 = vsub.s32 5, %v72_v57 }
  0xa7   :  { %1099 = vperm.xlu1 %4035, %v4430_v2   ;;  %1305 = vrot.lane.b32.xlu0 %v4451_v8, %s4281_s10 }
  0xab   :  { %4036 = vset.pattern.permute.xlu1 %v4283_v34 }
  0xac   :  { %1026 = vperm.xlu1 %4036, %v4430_v2  }
  0xb0   :  { %1043 = vrot.lane.b32.xlu1 %v4441_v6, %s4272_s8 }
  0xb1   :  { %4037 = vset.pattern.permute.xlu1 %v4284_v35  ;;  %v4674_v35 = vrot.slane %v4586_v63, %v4610_v15 }
  0xb3   :  { %7200 = vst [vmem:[#allocation28_spill] sm:$0xff] %v4674_v35 }
  0xb4   :  { %1127 = vperm.xlu1 %4037, %v4430_v2  }
  0xb7   :  { %v4529_v36 = vpop.permute.xlu1 %367  ;;  %v4531_v37 = vpop.permute.xlu0 %242 }
  0xb8   :  { %4039 = vset.pattern.permute.xlu1 %v4285_v38  ;;  %v4678_v38 = vrot.slane %v4584_v62, %v4610_v15 }
  0xb9   :  { %1228 = vperm.xlu1 %4039, %v4430_v2  }
  0xba   :  { %7201 = vst [vmem:[#allocation29_spill] sm:$0xff] %v4678_v38  ;;  %v823_v38 = vrot.slane %v4443_v7, %v4608_v14 }
  0xbc   :  { %v4534_v39 = vpop.permute.xlu1 %391  ;;  %v4536_v40 = vpop.permute.xlu0 %266  ;;  %v4773_v32 = vrot.slane %v823_v38, %v4608_v14 }
  0xbd   :  { %1047 = vrot.lane.b32.xlu1 %v4451_v8, %s4272_s8 }
  0xbe   :  { %4041 = vset.pattern.permute.xlu1 %v4286_v41  ;;  %v767_v41 = vrot.slane %v4434_v3, %v4598_v11  ;;  %7212 = vst [vmem:[#allocation40_spill] sm:$0xff] %v4773_v32 }
  0xc0   :  { %v4540_v42 = vpop.permute.xlu1 %205  ;;  %v4542_v43 = vpop.permute.xlu0 %207 }
  0xc1   :  { %1170 = vrot.lane.b32.xlu1 %v4434_v3, %s4277_s9  ;;  %v218_v34 = vsel %vm215_vm0, %v4540_v42, %v4542_v43 }
  0xc4   :  { %v4546_v44 = vpop.permute.xlu1 %211  ;;  %v4548_v45 = vpop.permute.xlu0 %294 }
  0xc5   :  { %1172 = vrot.lane.b32.xlu1 %v4441_v6, %s4277_s9 }
  0xc8   :  { %v4552_v46 = vpop.permute.xlu1 %333  ;;  %v4554_v47 = vpop.permute.xlu0 %339 }
  0xc9   :  { %1256 = vperm.xlu1 %4041, %v4430_v2  }
  0xcc   :  { %v4557_v48 = vpop.permute.xlu1 %335  ;;  %v4559_v49 = vpop.permute.xlu0 %496 }
  0xcd   :  { %4043 = vset.pattern.permute.xlu1 %v4287_v50  ;;  %v219_v50 = vsel %vm215_vm0, %v4546_v44, %v4540_v42  ;;  %v775_v42 = vrot.slane %v4443_v7, %v4598_v11 }
  0xce   :  { %1357 = vperm.xlu1 %4043, %v4430_v2   ;;  %v4719_v1 = vmul.f32 %v219_v50, %v4606_v13  ;;  %v863_v13 = vrot.slane %v4434_v3, %v4610_v15 }
  0xd0   :  { %v4562_v51 = vpop.permute.xlu1 %419 }
  0xd1   :  { %v4564_v52 = vpop.permute.xlu0 %322 }
  0xd2   :  { %1176 = vrot.lane.b32.xlu1 %v4451_v8, %s4277_s9 }
  0xd3   :  { %4045 = vset.pattern.permute.xlu1 %v4288_v54  ;;  %v4689_v54 = vrot.slane %v723_v22, %v4578_v60  ;;  %v4707_v22 = vmul.f32 %v218_v34, %v4596_v10  ;;  %v815_v34 = vrot.slane %v4434_v3, %v4608_v14 }
  0xd5   :  { %v4568_v55 = vpop.permute.xlu1 %520  ;;  %v4570_v56 = vpop.permute.xlu0 %462  ;;  %7202 = vst [vmem:[#allocation30_spill] sm:$0xff] %v4689_v54  ;;  %v256_v54 = vrot.slane %v4707_v22, %v4598_v11  ;;  %v4767_v35 = vrot.slane %v815_v34, %v4608_v14 }
  0xd6   :  { %1299 = vrot.lane.b32.xlu1 %v4434_v3, %s4281_s10 }
  0xd9   :  { %v4574_v58 = vpop.permute.xlu1 %209  ;;  %v4576_v59 = vpop.permute.xlu0 %468 }
  0xda   :  { %1301 = vrot.lane.b32.xlu1 %v4441_v6, %s4281_s10  ;;  %v726_v6 = vsub.s32 4, %v72_v57 }
  0xdc   :  { %v4650_v28 = vrot.slane %v4434_v3, %v726_v6  ;;  %v4653_v29 = vrot.slane %v4443_v7, %v726_v6  ;;  %v4692_v6 = vrot.slane %v731_v23, %v4578_v60  ;;  %v771_v23 = vrot.slane %v4434_v3, %v137_v33 }
  0xdd   :  { %v4590_v4 = vpop.permute.xlu1 %337  ;;  %v4592_v8 = vpop.permute.xlu0 %625 }
  0xde   :  { %7184 = vst [vmem:[#allocation12_spill] sm:$0xff] %v4592_v8  ;;  %1385 = vperm.xlu1 %4045, %v4430_v2   ;;  %7195 = vst [vmem:[#allocation23_spill] sm:$0xff] %v4650_v28  ;;  %v4704_v8 = vsub.s32 7, %v72_v57  ;;  %v231_v28 = vrot.slane %v4707_v22, %v4578_v60 }
  0xdf   :  { %7196 = vst [vmem:[#allocation24_spill] sm:$0xff] %v4653_v29  ;;  %7203 = vst [vmem:[#allocation31_spill] sm:$0xff] %v4692_v6  ;;  %v779_v29 = vrot.slane %v4443_v7, %v137_v33 }
  0xe0   :  { %v875_v6 = vrot.slane %v4443_v7, %v4704_v8 }
  0xe1   :  { %v4633_v21 = vpop.permute.xlu1 %447 }
  0xe2   :  { %4046 = vset.pattern.permute.xlu1 %v4289_v26  ;;  %v4647_v27 = vpop.permute.xlu0 %576  ;;  %v4694_v26 = vsub.s32 6, %v72_v57  ;;  %v4723_v57 = vrot.slane %v767_v41, %v4598_v11  ;;  %v4740_v41 = vrot.slane %v775_v42, %v4598_v11  ;;  %v345_v42 = vsel %vm341_vm1, %v4554_v47, %v4552_v46 }
  0xe3   :  { %7194 = vst [vmem:[#allocation22_spill] sm:$0xff] %v4647_v27  ;;  %1413 = vperm.xlu1 %4046, %v4430_v2   ;;  %v4712_v27 = vrot.slane %v4588_v0, %v4610_v15  ;;  %v4782_v31 = vmul.f32 %v345_v42, %v4614_v16  ;;  %v4793_v38 = vrot.slane %v875_v6, %v4610_v15 }
  0xe4   :  { %7207 = vst [vmem:[#allocation35_spill] sm:$0xff] %v4723_v57  ;;  %v827_v50 = vrot.slane %v4443_v7, %v4694_v26  ;;  %7210 = vst [vmem:[#allocation38_spill] sm:$0xff] %v4740_v41  ;;  %v867_v57 = vrot.slane %v4434_v3, %v4704_v8  ;;  %v4757_v41 = vrot.slane %v771_v23, %v4598_v11 }
  0xe5   :  { %v4686_v53 = vpop.permute.xlu1 %464  ;;  %7205 = vst [vmem:[#allocation33_spill] sm:$0xff] %v4712_v27  ;;  %v819_v27 = vrot.slane %v4434_v3, %v4694_v26  ;;  %v227_v3 = vrot.slane %v4719_v1, %v4578_v60  ;;  %7217 = vst [vmem:[#allocation45_spill] sm:$0xff] %v4793_v38  ;;  %v4801_v42 = vrot.slane %v4601_v12, %v137_v33 }
  0xe6   :  { %v4696_v9 = vpop.permute.xlu0 %597  ;;  %7211 = vst [vmem:[#allocation39_spill] sm:$0xff] %v4757_v41  ;;  %v4776_v23 = vrot.slane %v827_v50, %v4608_v14  ;;  %v4779_v41 = vrot.slane %v863_v13, %v4610_v15  ;;  %v4787_v34 = vrot.slane %v867_v57, %v4610_v15  ;;  %v246_v50 = vmul.f32 %v4531_v37, %v231_v28 }
  0xe7   :  { %7204 = vst [vmem:[#allocation32_spill] sm:$0xff] %v4696_v9  ;;  %v4770_v9 = vrot.slane %v819_v27, %v4608_v14  ;;  %v4798_v13 = vrot.slane %v4586_v63, %v137_v33  ;;  %7219 = vst [vmem:[#allocation47_spill] sm:$0xff] %v4801_v42  ;;  %v245_v16 = vmul.f32 %v4531_v37, %v227_v3  ;;  %v4292_v42 = vmov 40  }
  0xe8   :  { %7213 = vst [vmem:[#allocation41_spill] sm:$0xff] %v4776_v23  ;;  %7214 = vst [vmem:[#allocation42_spill] sm:$0xff] %v4779_v41  ;;  %v270_v23 = vmul.f32 %v4536_v40, %v256_v54  ;;  %v4811_v6 = vrot.slane %v4588_v0, %v137_v33  ;;  %v284_v28 = vrot.slane %v4707_v22, %v4608_v14 }
  0xe9   :  { %v4727_v10 = vpop.permute.xlu1 %548  ;;  %7215 = vst [vmem:[#allocation43_spill] sm:$0xff] %v4787_v34  ;;  %7218 = vst [vmem:[#allocation46_spill] sm:$0xff] %v4798_v13  ;;  %v344_v54 = vsel %vm341_vm1, %v4552_v46, %v4557_v48  ;;  %v217_v3 = vsel %vm215_vm0, %v4542_v43, %v4574_v58  ;;  %v377_v38 = vrot.slane %v4782_v31, %v4598_v11 }
  0xea   :  { %7208 = vst [vmem:[#allocation36_spill] sm:$0xff] %v4727_v10  ;;  %v4737_v5 = vpop.permute.xlu0 %757  ;;  %v871_v10 = vrot.slane %v4443_v7, %v4610_v15  ;;  %v252_v7 = vrot.slane %v4719_v1, %v4598_v11  ;;  %7221 = vst [vmem:[#allocation49_spill] sm:$0xff] %v4811_v6  ;;  %v216_v46 = vsel %vm215_vm0, %v4574_v58, %v4546_v44  ;;  %v4290_v6 = vmov 36  }
  0xeb   :  { %7209 = vst [vmem:[#allocation37_spill] sm:$0xff] %v4737_v5  ;;  %v4764_v5 = vrot.slane %v779_v29, %v4598_v11  ;;  %4047 = vset.pattern.permute.xlu1 %v4290_v6  ;;  %v274_v43 = vadd.f32 %v270_v23, %v246_v50  ;;  %v4838_v41 = vrot.slane %v4586_v63, %v4694_v26 }
  0xec   :  { %v4790_v27 = vrot.slane %v871_v10, %v4610_v15  ;;  %v269_v57 = vmul.f32 %v4536_v40, %v252_v7  ;;  %v4808_v10 = vrot.slane %v4584_v62, %v137_v33  ;;  %v280_v7 = vrot.slane %v4719_v1, %v4608_v14  ;;  %1518 = vperm.xlu1 %4047, %v4430_v2  }
  0xed   :  { %v353_v33 = vrot.slane %v4782_v31, %v4578_v60  ;;  %7222 = vst [vmem:[#allocation50_spill] sm:$0xff] %v4838_v41  ;;  %v4846_v32 = vrot.slane %v4588_v0, %v4694_v26  ;;  %v4850_v58 = vmul.f32 %v344_v54, %v4619_v17  ;;  %v4853_v23 = vmul.f32 %v217_v3, %v4623_v18 }
  0xee   :  { %v4784_v29 = vpop.permute.xlu1 %649  ;;  %7216 = vst [vmem:[#allocation44_spill] sm:$0xff] %v4790_v27  ;;  %7220 = vst [vmem:[#allocation48_spill] sm:$0xff] %v4808_v10  ;;  %v4842_v10 = vrot.slane %v4584_v62, %v4694_v26  ;;  %v273_v44 = vadd.f32 %v269_v57, %v245_v16  ;;  %v298_v6 = vmul.f32 %v4548_v45, %v284_v28 }
  0xef   :  { %v4805_v34 = vpop.permute.xlu0 %705  ;;  %7224 = vst [vmem:[#allocation52_spill] sm:$0xff] %v4846_v32  ;;  %v4861_v41 = vmul.f32 %v216_v46, %v4627_v19  ;;  %v4865_v32 = vrot.slane %v4601_v12, %v4694_v26  ;;  %v297_v16 = vmul.f32 %v4548_v45, %v280_v7  ;;  %v370_v57 = vmul.f32 %v4529_v36, %v353_v33 }
  0xf0   :  { %7223 = vst [vmem:[#allocation51_spill] sm:$0xff] %v4842_v10  ;;  %v312_v10 = vrot.slane %v4707_v22, %v4610_v15  ;;  %v394_v54 = vmul.f32 %v4534_v39, %v377_v38  ;;  %v4874_v28 = vrot.slane %v4586_v63, %v4704_v8  ;;  %v4876_v22 = vadd.f32 %v298_v6, %v274_v43 }
  0xf1   :  { %7226 = vst [vmem:[#allocation54_spill] sm:$0xff] %v4865_v32  ;;  %v405_v46 = vrot.slane %v4782_v31, %v4608_v14  ;;  %v308_v26 = vrot.slane %v4719_v1, %v4610_v15  ;;  %v4884_v7 = vrot.slane %v4584_v62, %v4704_v8  ;;  %v4291_v33 = vmov 37  }
  0xf2   :  { %v4834_v27 = vpop.permute.xlu1 %466  ;;  %7227 = vst [vmem:[#allocation55_spill] sm:$0xff] %v4874_v28  ;;  %4048 = vset.pattern.permute.xlu1 %v4291_v33  ;;  %v301_v38 = vadd.f32 %v297_v16, %v273_v44  ;;  %v357_v19 = vrot.slane %v4850_v58, %v4578_v60  ;;  %v381_v63 = vrot.slane %v4850_v58, %v4598_v11 }
  0xf3   :  { %7228 = vst [vmem:[#allocation56_spill] sm:$0xff] %v4884_v7  ;;  %v235_v43 = vrot.slane %v4853_v23, %v4578_v60  ;;  %1542 = vperm.xlu1 %4048, %v4430_v2   ;;  %v239_v1 = vrot.slane %v4861_v41, %v4578_v60  ;;  %v260_v62 = vrot.slane %v4853_v23, %v4598_v11 }
  0xf4   :  { %v4855_v50 = vpop.permute.xlu0 %970  ;;  %v264_v44 = vrot.slane %v4861_v41, %v4598_v11  ;;  %v409_v16 = vrot.slane %v4850_v58, %v4608_v14  ;;  %v398_v33 = vadd.f32 %v394_v54, %v370_v57  ;;  %v437_v18 = vrot.slane %v4850_v58, %v4610_v15 }
  0xf5   :  { %7225 = vst [vmem:[#allocation53_spill] sm:$0xff] %v4855_v50  ;;  %v433_v17 = vrot.slane %v4782_v31, %v4610_v15  ;;  %v422_v28 = vmul.f32 %v4562_v51, %v405_v46  ;;  %v342_v32 = vsel %vm341_vm1, %v4590_v4, %v4554_v47  ;;  %v343_v57 = vsel %vm341_vm1, %v4557_v48, %v4590_v4 }
  0xf6   :  { %v4870_v3 = vpop.permute.xlu1 %591  ;;  %v4920_v58 = vrot.slane %v4588_v0, %v4704_v8  ;;  %v371_v31 = vmul.f32 %v4529_v36, %v357_v19  ;;  %v395_v54 = vmul.f32 %v4534_v39, %v381_v63  ;;  %v288_v46 = vrot.slane %v4853_v23, %v4608_v14 }
  0xf7   :  { %v474_v47 = vsel %vm470_vm2, %v4576_v59, %v4570_v56  ;;  %4049 = vset.pattern.permute.xlu1 %v4292_v42  ;;  %v247_v48 = vmul.f32 %v4531_v37, %v235_v43  ;;  %v248_v0 = vmul.f32 %v4531_v37, %v239_v1  ;;  %v271_v4 = vmul.f32 %v4536_v40, %v260_v62 }
  0xf8   :  { %v4892_v6 = vpop.permute.xlu0 %914  ;;  %7229 = vst [vmem:[#allocation57_spill] sm:$0xff] %v4920_v58  ;;  %v272_v19 = vmul.f32 %v4536_v40, %v264_v44  ;;  %1642 = vperm.xlu1 %4049, %v4430_v2   ;;  %v423_v63 = vmul.f32 %v4562_v51, %v409_v16  ;;  %v4939_v58 = vmul.f32 %v343_v57, %v4641_v24  ;;  %v4293_v57 = vmov 41  }
  0xf9   :  { %v4942_v13 = vmul.f32 %v342_v32, %v4645_v25  ;;  %v426_v42 = vadd.f32 %v422_v28, %v398_v33  ;;  %v325_v43 = vmul.f32 %v4564_v52, %v308_v26  ;;  %v326_v37 = vmul.f32 %v4564_v52, %v312_v10 }
  0xfa   :  { %v4907_v7 = vpop.permute.xlu1 %593  ;;  %v292_v40 = vrot.slane %v4861_v41, %v4608_v14  ;;  %v399_v1 = vadd.f32 %v395_v54, %v371_v31  ;;  %v316_v62 = vrot.slane %v4853_v23, %v4610_v15  ;;  %v4953_v44 = vmul.f32 %v474_v47, %v4631_v20 }
  0xfb   :  { %v4959_v32 = vrot.slane %v4601_v12, %v4704_v8  ;;  %v275_v28 = vadd.f32 %v271_v4, %v247_v48  ;;  %v276_v26 = vadd.f32 %v272_v19, %v248_v0  ;;  %v299_v10 = vmul.f32 %v4548_v45, %v288_v46 }
  0xfc   :  { %v4930_v50 = vpop.permute.xlu0 %998  ;;  %v320_v33 = vrot.slane %v4861_v41, %v4610_v15  ;;  %4050 = vset.pattern.permute.xlu1 %v4293_v57  ;;  %v361_v23 = vrot.slane %v4939_v58, %v4578_v60  ;;  %v365_v31 = vrot.slane %v4942_v13, %v4578_v60  ;;  %v385_v54 = vrot.slane %v4939_v58, %v4598_v11 }
  0xfd   :  { %7230 = vst [vmem:[#allocation58_spill] sm:$0xff] %v4930_v50  ;;  %7231 = vst [vmem:[#allocation59_spill] sm:$0xff] %v4959_v32  ;;  %v389_v8 = vrot.slane %v4942_v13, %v4598_v11  ;;  %1666 = vperm.xlu1 %4050, %v4430_v2   ;;  %v300_v12 = vmul.f32 %v4548_v45, %v292_v40  ;;  %v450_v41 = vmul.f32 %v4633_v21, %v433_v17 }
  0xfe   :  { %v4944_v50 = vpop.permute.xlu1 %677  ;;  %v451_v46 = vmul.f32 %v4633_v21, %v437_v18  ;;  %v427_v48 = vadd.f32 %v423_v63, %v399_v1  ;;  %v329_v0 = vadd.f32 %v325_v43, %v301_v38  ;;  %v327_v4 = vmul.f32 %v4564_v52, %v316_v62 }
  0xff   :  { %v482_v19 = vrot.slane %v4953_v44, %v4578_v60  ;;  %v328_v20 = vmul.f32 %v4564_v52, %v320_v33  ;;  %v506_v45 = vrot.slane %v4953_v44, %v4598_v11  ;;  %v303_v17 = vadd.f32 %v299_v10, %v275_v28 }
 0x100   :  { %v4955_v16 = vpop.permute.xlu0 %918  ;;  %v304_v18 = vadd.f32 %v300_v12, %v276_v26  ;;  %v372_v40 = vmul.f32 %v4529_v36, %v361_v23  ;;  %v373_v25 = vmul.f32 %v4529_v36, %v365_v31  ;;  %v396_v38 = vmul.f32 %v4534_v39, %v385_v54 }
 0x101   :  { %v397_v63 = vmul.f32 %v4534_v39, %v389_v8  ;;  %v4294_v43 = vmov 38   ;;  %v413_v1 = vrot.slane %v4939_v58, %v4608_v14  ;;  %v417_v52 = vrot.slane %v4942_v13, %v4608_v14 }
 0x102   :  { %4051 = vset.pattern.permute.xlu1 %v4294_v43  ;;  %v454_v62 = vadd.f32 %v450_v41, %v426_v42  ;;  %v455_v33 = vadd.f32 %v451_v46, %v427_v48  ;;  %v441_v36 = vrot.slane %v4939_v58, %v4610_v15  ;;  %v473_v39 = vsel %vm470_vm2, %v4570_v56, %v4686_v53 }
 0x103   :  { %v4977_v47 = vpop.permute.xlu1 %801  ;;  %1570 = vperm.xlu1 %4051, %v4430_v2   ;;  %v499_v26 = vmul.f32 %v4559_v49, %v482_v19  ;;  %v445_v10 = vrot.slane %v4942_v13, %v4610_v15  ;;  %v523_v42 = vmul.f32 %v4568_v55, %v506_v45  ;;  %v471_v23 = vsel %vm470_vm2, %v4834_v27, %v4576_v59 }
 0x104   :  { %v4982_v57 = vpop.permute.xlu0 %1041  ;;  %v472_v58 = vsel %vm470_vm2, %v4686_v53, %v4834_v27  ;;  %v330_v31 = vadd.f32 %v326_v37, %v4876_v22  ;;  %v400_v56 = vadd.f32 %v396_v38, %v372_v40  ;;  %v5017_v54 = vadd.f32 %v327_v4, %v303_v17  ;;  %v7235_v4 = vld [vmem:[#allocation27_spill] sm:$0xff] }
 0x105   :  { %7232 = vst [vmem:[#allocation60_spill] sm:$0xff] %v4982_v57  ;;  %v401_v8 = vadd.f32 %v397_v63, %v373_v25  ;;  %v424_v13 = vmul.f32 %v4562_v51, %v413_v1  ;;  %v5022_v41 = vadd.f32 %v328_v20, %v304_v18  ;;  %v425_v46 = vmul.f32 %v4562_v51, %v417_v52  ;;  %v7234_v25 = vld [vmem:[#allocation26_spill] sm:$0xff] }
 0x106   :  { %v5026_v59 = vmul.f32 %v473_v39, %v4658_v30  ;;  %v4295_v53 = vmov 42   ;;  %v452_v27 = vmul.f32 %v4633_v21, %v441_v36  ;;  %v5031_v22 = vadd.f32 %v454_v62, %v329_v0  ;;  %v7236_v0 = vld [vmem:[#allocation32_spill] sm:$0xff] }
 0x107   :  { %v4995_v28 = vpop.permute.xlu1 %595  ;;  %4052 = vset.pattern.permute.xlu1 %v4295_v53  ;;  %v5034_v37 = vmul.f32 %v472_v58, %v7234_v25  ;;  %v5037_v19 = vmul.f32 %v471_v23, %v7235_v4  ;;  %v453_v51 = vmul.f32 %v4633_v21, %v445_v10  ;;  %v5041_v20 = vadd.f32 %v455_v33, %v330_v31  ;;  %v7238_v10 = vld [vmem:[#allocation28_spill] sm:$0xff]  ;;  %v7240_v23 = vld [vmem:[#allocation37_spill] sm:$0xff]  ;;  %v7241_v31 = vld [vmem:[#allocation23_spill] sm:$0xff] }
 0x108   :  { %v5019_v12 = vpop.permute.xlu0 %1045  ;;  %1694 = vperm.xlu1 %4052, %v4430_v2   ;;  %v527_v45 = vadd.f32 %v523_v42, %v499_v26  ;;  %v428_v17 = vadd.f32 %v424_v13, %v400_v56  ;;  %v429_v18 = vadd.f32 %v425_v46, %v401_v8  ;;  %v534_v40 = vrot.slane %v4953_v44, %v4608_v14  ;;  %v7239_v42 = vld [vmem:[#allocation30_spill] sm:$0xff]  ;;  %v7243_v13 = vld [vmem:[#allocation31_spill] sm:$0xff] }
 0x109   :  { %7233 = vst [vmem:[#allocation61_spill] sm:$0xff] %v5019_v12  ;;  %v603_v38 = vsel %vm599_vm3, %v7236_v0, %v4870_v3  ;;  %v486_v63 = vrot.slane %v5026_v59, %v4578_v60  ;;  %v510_v43 = vrot.slane %v5026_v59, %v4598_v11  ;;  %v562_v21 = vrot.slane %v4953_v44, %v4610_v15 }
 0x10a   :  { %v602_v1 = vsel %vm599_vm3, %v4870_v3, %v4907_v7  ;;  %v490_v52 = vrot.slane %v5034_v37, %v4578_v60  ;;  %v494_v62 = vrot.slane %v5037_v19, %v4578_v60  ;;  %v514_v33 = vrot.slane %v5034_v37, %v4598_v11 }
 0x10b   :  { %v5028_v48 = vpop.permute.xlu1 %849  ;;  %v518_v36 = vrot.slane %v5037_v19, %v4598_v11  ;;  %v4296_v26 = vmov 45   ;;  %v5072_v3 = vmul.f32 %v603_v38, %v7238_v10  ;;  %v5076_v58 = vmul.f32 %v7240_v23, %v7239_v42  ;;  %v7244_v10 = vld [vmem:[#allocation29_spill] sm:$0xff] }
 0x10c   :  { %v5069_v44 = vpop.permute.xlu0 %1204  ;;  %4054 = vset.pattern.permute.xlu1 %v4296_v26  ;;  %v7242_v56 = vrot.slane %v7241_v31, %v4578_v60  ;;  %v5086_v46 = vmul.f32 %v7240_v23, %v7243_v13  ;;  %v456_v53 = vadd.f32 %v452_v27, %v428_v17  ;;  %v457_v26 = vadd.f32 %v453_v51, %v429_v18 }
 0x10d   :  { %7237 = vst [vmem:[#allocation32_spill] sm:$0xff] %v5069_v44  ;;  %1794 = vperm.xlu1 %4054, %v4430_v2   ;;  %v538_v38 = vrot.slane %v5026_v59, %v4608_v14  ;;  %v5092_v42 = vmul.f32 %v602_v1, %v7244_v10  ;;  %v500_v4 = vmul.f32 %v4559_v49, %v486_v63 }
 0x10e   :  { %v5082_v8 = vmul.f32 %v7240_v23, %v7242_v56  ;;  %v524_v31 = vmul.f32 %v4568_v55, %v510_v43  ;;  %v7245_v56 = vld [vmem:[#allocation36_spill] sm:$0xff]  ;;  %v542_v13 = vrot.slane %v5034_v37, %v4608_v14  ;;  %v501_v30 = vmul.f32 %v4559_v49, %v490_v52 }
 0x10f   :  { %v551_v25 = vmul.f32 %v7245_v56, %v534_v40  ;;  %v502_v2 = vmul.f32 %v4559_v49, %v494_v62  ;;  %v525_v27 = vmul.f32 %v4568_v55, %v514_v33  ;;  %v526_v51 = vmul.f32 %v4568_v55, %v518_v36  ;;  %v7247_v36 = vld [vmem:[#allocation22_spill] sm:$0xff] }
 0x110   :  { %v5067_v39 = vpop.permute.xlu1 %946  ;;  %v566_v17 = vrot.slane %v5026_v59, %v4610_v15  ;;  %v546_v18 = vrot.slane %v5037_v19, %v4608_v14  ;;  %v611_v40 = vrot.slane %v5072_v3, %v4578_v60  ;;  %v635_v63 = vrot.slane %v5072_v3, %v4598_v11 }
 0x111   :  { %v615_v49 = vrot.slane %v5092_v42, %v4578_v60  ;;  %v639_v55 = vrot.slane %v5092_v42, %v4598_v11  ;;  %v600_v59 = vsel %vm599_vm3, %v4995_v28, %v7236_v0  ;;  %v601_v1 = vsel %vm599_vm3, %v4907_v7, %v4995_v28  ;;  %v5125_v52 = vpop.permute.xlu0 %1155  ;;  %v7248_v28 = vld [vmem:[#allocation33_spill] sm:$0xff] }
 0x112   :  { %7246 = vst [vmem:[#allocation30_spill] sm:$0xff] %v5125_v52  ;;  %v528_v62 = vadd.f32 %v524_v31, %v500_v4  ;;  %v555_v33 = vadd.f32 %v551_v25, %v527_v45  ;;  %v579_v10 = vmul.f32 %v7247_v36, %v562_v21  ;;  %v570_v24 = vrot.slane %v5034_v37, %v4610_v15  ;;  %v7249_v25 = vld [vmem:[#allocation34_spill] sm:$0xff]  ;;  %v7250_v21 = vld [vmem:[#allocation12_spill] sm:$0xff] }
 0x113   :  { %v552_v32 = vmul.f32 %v7245_v56, %v538_v38  ;;  %v529_v44 = vadd.f32 %v525_v27, %v501_v30  ;;  %v530_v57 = vadd.f32 %v526_v51, %v502_v2  ;;  %v553_v0 = vmul.f32 %v7245_v56, %v542_v13 }
 0x114   :  { %v554_v12 = vmul.f32 %v7245_v56, %v546_v18  ;;  %v574_v7 = vrot.slane %v5037_v19, %v4610_v15  ;;  %v5136_v52 = vmul.f32 %v601_v1, %v7248_v28  ;;  %v5139_v4 = vmul.f32 %v600_v59, %v7249_v25 }
 0x115   :  { %v5111_v43 = vpop.permute.xlu1 %897  ;;  %v653_v37 = vmul.f32 %v4784_v29, %v639_v55  ;;  %v628_v30 = vmul.f32 %v7250_v21, %v611_v40  ;;  %v629_v38 = vmul.f32 %v7250_v21, %v615_v49  ;;  %v652_v31 = vmul.f32 %v4784_v29, %v635_v63  ;;  %v5154_v40 = vpop.permute.xlu0 %1174 }
 0x116   :  { %v556_v56 = vadd.f32 %v552_v32, %v528_v62  ;;  %v580_v13 = vmul.f32 %v7247_v36, %v566_v17  ;;  %v583_v19 = vadd.f32 %v579_v10, %v555_v33  ;;  %v581_v2 = vmul.f32 %v7247_v36, %v570_v24  ;;  %7251 = vst [vmem:[#allocation37_spill] sm:$0xff] %v5154_v40 }
 0x117   :  { %v557_v27 = vadd.f32 %v553_v0, %v529_v44  ;;  %v558_v51 = vadd.f32 %v554_v12, %v530_v57  ;;  %v667_v18 = vrot.slane %v5092_v42, %v4608_v14  ;;  %v663_v55 = vrot.slane %v5072_v3, %v4608_v14 }
 0x118   :  { %v619_v32 = vrot.slane %v5136_v52, %v4578_v60  ;;  %v623_v10 = vrot.slane %v5139_v4, %v4578_v60  ;;  %v643_v24 = vrot.slane %v5136_v52, %v4598_v11  ;;  %v647_v57 = vrot.slane %v5139_v4, %v4598_v11 }
 0x119   :  { %v5141_v45 = vpop.permute.xlu1 %912  ;;  %v582_v44 = vmul.f32 %v7247_v36, %v574_v7  ;;  %v656_v17 = vadd.f32 %v652_v31, %v628_v30  ;;  %v657_v63 = vadd.f32 %v653_v37, %v629_v38  ;;  %v680_v49 = vmul.f32 %v4944_v50, %v663_v55  ;;  %v5184_v31 = vpop.permute.xlu0 %1333 }
 0x11a   :  { %v460_v59 = vadd.f32 %v456_v53, %v5017_v54  ;;  %v461_v1 = vadd.f32 %v457_v26, %v5022_v41  ;;  %v584_v62 = vadd.f32 %v580_v13, %v556_v56  ;;  %v691_v33 = vrot.slane %v5072_v3, %v4610_v15  ;;  %v7252_v3 = vld [vmem:[#allocation24_spill] sm:$0xff] }
 0x11b   :  { %v585_v0 = vadd.f32 %v581_v2, %v557_v27  ;;  %v586_v28 = vadd.f32 %v582_v44, %v558_v51  ;;  %v695_v25 = vrot.slane %v5092_v42, %v4610_v15  ;;  %v681_v40 = vmul.f32 %v4944_v50, %v667_v18  ;;  %v7256_v51 = vld [vmem:[#allocation38_spill] sm:$0xff] }
 0x11c   :  { %v630_v36 = vmul.f32 %v7250_v21, %v619_v32  ;;  %v631_v7 = vmul.f32 %v7250_v21, %v623_v10  ;;  %v654_v37 = vmul.f32 %v4784_v29, %v643_v24  ;;  %v655_v54 = vmul.f32 %v4784_v29, %v647_v57 }
 0x11d   :  { %v917_v12 = vpop.permute.xlu1 %916  ;;  %v587_v53 = vadd.f32 %v583_v19, %v5031_v22  ;;  %v7253_v26 = vrot.slane %v7252_v3, %v4578_v60  ;;  %v684_v42 = vadd.f32 %v680_v49, %v656_v17  ;;  %v685_v38 = vadd.f32 %v681_v40, %v657_v63  ;;  %v7254_v19 = vld [vmem:[#allocation35_spill] sm:$0xff]  ;;  %v7260_v3 = vld [vmem:[#allocation41_spill] sm:$0xff] }
 0x11e   :  { %v588_v56 = vadd.f32 %v584_v62, %v5041_v20  ;;  %v708_v21 = vmul.f32 %v4805_v34, %v691_v33  ;;  %v671_v29 = vrot.slane %v5136_v52, %v4608_v14  ;;  %v675_v13 = vrot.slane %v5139_v4, %v4608_v14 }
 0x11f   :  { %v763_v30 = vmul.f32 %v7240_v23, %v7253_v26  ;;  %v709_v22 = vmul.f32 %v4805_v34, %v695_v25  ;;  %v804_v2 = vmul.f32 %v4977_v47, %v7254_v19  ;;  %v7255_v23 = vld [vmem:[#allocation39_spill] sm:$0xff]  ;;  %v806_v18 = vmul.f32 %v4977_v47, %v7256_v51  ;;  %v7265_v51 = vld [vmem:[#allocation44_spill] sm:$0xff] }
 0x120   :  { %v805_v27 = vmul.f32 %v4977_v47, %v7255_v23  ;;  %v658_v20 = vadd.f32 %v654_v37, %v630_v36  ;;  %v659_v55 = vadd.f32 %v655_v54, %v631_v7  ;;  %v589_v40 = vadd.f32 %v585_v0, %v460_v59  ;;  %v7257_v0 = vld [vmem:[#allocation46_spill] sm:$0xff]  ;;  %v7258_v37 = vld [vmem:[#allocation47_spill] sm:$0xff] }
 0x121   :  { %v5177_v41 = vpop.permute.xlu1 %1075  ;;  %v590_v32 = vadd.f32 %v586_v28, %v461_v1  ;;  %v712_v10 = vadd.f32 %v708_v21, %v684_v42  ;;  %v713_v24 = vadd.f32 %v709_v22, %v685_v38  ;;  %v807_v57 = vmul.f32 %v4977_v47, %v4764_v5  ;;  %v7261_v42 = vld [vmem:[#allocation48_spill] sm:$0xff]  ;;  %v7264_v23 = vld [vmem:[#allocation43_spill] sm:$0xff] }
 0x122   :  { %v699_v25 = vrot.slane %v5136_v52, %v4610_v15  ;;  %v682_v17 = vmul.f32 %v4944_v50, %v671_v29  ;;  %v683_v63 = vmul.f32 %v4944_v50, %v675_v13  ;;  %v703_v49 = vrot.slane %v5139_v4, %v4610_v15  ;;  %v5220_v50 = vpop.permute.xlu0 %1284  ;;  %v7262_v13 = vld [vmem:[#allocation42_spill] sm:$0xff] }
 0x123   :  { %v923_v28 = vsel %vm920_vm4, %v5141_v45, %v4892_v6  ;;  %v808_v59 = vadd.f32 %v804_v2, %v5076_v58  ;;  %v809_v5 = vadd.f32 %v805_v27, %v5082_v8  ;;  %v810_v47 = vadd.f32 %v806_v18, %v5086_v46 }
 0x124   :  { %v924_v52 = vsel %vm920_vm4, %v4955_v16, %v5141_v45  ;;  %v686_v1 = vadd.f32 %v682_v17, %v658_v20  ;;  %v687_v4 = vadd.f32 %v683_v63, %v659_v55  ;;  %v852_v62 = vmul.f32 %v5028_v48, %v4767_v35 }
 0x125   :  { %v922_v58 = vsel %vm920_vm4, %v4892_v6, %v917_v12  ;;  %v811_v33 = vadd.f32 %v807_v57, %v763_v30  ;;  %v853_v8 = vmul.f32 %v5028_v48, %v4770_v9  ;;  %v716_v46 = vadd.f32 %v712_v10, %v587_v53  ;;  %v7259_v9 = vld [vmem:[#allocation40_spill] sm:$0xff]  ;;  %v7266_v57 = vld [vmem:[#allocation45_spill] sm:$0xff] }
 0x126   :  { %v5203_v44 = vpop.permute.xlu1 %1099  ;;  %v5230_v36 = vmul.f32 %v923_v28, %v7257_v0  ;;  %v710_v45 = vmul.f32 %v4805_v34, %v699_v25  ;;  %v711_v7 = vmul.f32 %v4805_v34, %v703_v49  ;;  %v5236_v35 = vmul.f32 %v924_v52, %v7258_v37  ;;  %v5260_v2 = vpop.permute.xlu0 %1303 }
 0x127   :  { %v921_v6 = vsel %vm920_vm4, %v917_v12, %v4955_v16  ;;  %v854_v53 = vmul.f32 %v5028_v48, %v7259_v9  ;;  %v855_v26 = vmul.f32 %v5028_v48, %v7260_v3  ;;  %v717_v30 = vadd.f32 %v713_v24, %v588_v56  ;;  %v7263_v48 = vld [vmem:[#allocation49_spill] sm:$0xff] }
 0x128   :  { %v5248_v38 = vmul.f32 %v922_v58, %v7261_v42  ;;  %v856_v34 = vadd.f32 %v852_v62, %v808_v59  ;;  %v714_v21 = vadd.f32 %v710_v45, %v686_v1  ;;  %v715_v29 = vadd.f32 %v711_v7, %v687_v4  ;;  %v7267_v1 = vld [vmem:[#allocation53_spill] sm:$0xff] }
 0x129   :  { %v900_v16 = vmul.f32 %v5111_v43, %v7262_v13  ;;  %v857_v12 = vadd.f32 %v853_v8, %v809_v5  ;;  %v932_v22 = vrot.slane %v5230_v36, %v4578_v60  ;;  %v956_v19 = vrot.slane %v5230_v36, %v4598_v11 }
 0x12a   :  { %v5258_v56 = vmul.f32 %v921_v6, %v7263_v48  ;;  %v901_v27 = vmul.f32 %v5111_v43, %v7264_v23  ;;  %v902_v18 = vmul.f32 %v5111_v43, %v7265_v51  ;;  %v944_v20 = vrot.slane %v5236_v35, %v4578_v60  ;;  %v5290_v9 = vpop.permute.xlu0 %1305  ;;  %v3887_v51 = vld [vmem:[#allocation7 + $0x30] ss:$0 sm:$0xff] }
 0x12b   :  { %v5241_v54 = vpop.permute.xlu1 %1026  ;;  %v968_v55 = vrot.slane %v5236_v35, %v4598_v11  ;;  %v858_v24 = vadd.f32 %v854_v53, %v810_v47  ;;  %v903_v25 = vmul.f32 %v5111_v43, %v7266_v57  ;;  %v936_v17 = vrot.slane %v5248_v38, %v4578_v60  ;;  %v7272_v57 = vld [vmem:[#allocation51_spill] sm:$0xff] }
 0x12c   :  { %v960_v63 = vrot.slane %v5248_v38, %v4598_v11  ;;  %v859_v49 = vadd.f32 %v855_v26, %v811_v33  ;;  %v718_v28 = vadd.f32 %v714_v21, %v589_v40  ;;  %v719_v59 = vadd.f32 %v715_v29, %v590_v32  ;;  %v7268_v26 = vld [vmem:[#allocation61_spill] sm:$0xff]  ;;  %v7269_v21 = vld [vmem:[#allocation60_spill] sm:$0xff] }
 0x12d   :  { %v904_v5 = vadd.f32 %v900_v16, %v856_v34  ;;  %v949_v52 = vmul.f32 %v5067_v39, %v932_v22  ;;  %v973_v4 = vmul.f32 %v7267_v1, %v956_v19  ;;  %v940_v47 = vrot.slane %v5258_v56, %v4578_v60 }
 0x12e   :  { %v964_v43 = vrot.slane %v5258_v56, %v4598_v11  ;;  %v905_v62 = vadd.f32 %v901_v27, %v857_v12  ;;  %v906_v58 = vadd.f32 %v902_v18, %v858_v24  ;;  %v952_v8 = vmul.f32 %v5067_v39, %v944_v20 }
 0x12f   :  { %v1044_v10 = vpop.permute.xlu1 %1043  ;;  %v976_v45 = vmul.f32 %v7267_v1, %v968_v55  ;;  %v907_v40 = vadd.f32 %v903_v25, %v859_v49  ;;  %v984_v32 = vrot.slane %v5230_v36, %v4608_v14  ;;  %v950_v7 = vmul.f32 %v5067_v39, %v936_v17  ;;  %v7270_v55 = vld [vmem:[#allocation58_spill] sm:$0xff] }
 0x130   :  { %v974_v6 = vmul.f32 %v7267_v1, %v960_v63  ;;  %v996_v53 = vrot.slane %v5236_v35, %v4608_v14  ;;  %v988_v3 = vrot.slane %v5248_v38, %v4608_v14  ;;  %v1051_v34 = vsel %vm1049_vm5, %v1044_v10, %v7268_v26 }
 0x131   :  { %v1052_v29 = vsel %vm1049_vm5, %v7269_v21, %v1044_v10  ;;  %v951_v13 = vmul.f32 %v5067_v39, %v940_v47  ;;  %v975_v16 = vmul.f32 %v7267_v1, %v964_v43  ;;  %v992_v12 = vrot.slane %v5258_v56, %v4608_v14  ;;  %v7271_v10 = vld [vmem:[#allocation50_spill] sm:$0xff] }
 0x132   :  { %v977_v22 = vadd.f32 %v973_v4, %v949_v52  ;;  %v5306_v19 = vadd.f32 %v904_v5, %v716_v46  ;;  %v5308_v23 = vadd.f32 %v905_v62, %v717_v30  ;;  %v980_v27 = vadd.f32 %v976_v45, %v952_v8 }
 0x133   :  { %v5284_v33 = vpop.permute.xlu1 %1127  ;;  %v1308_v18 = vsel %vm1307_vm6, %v5260_v2, %v5290_v9  ;;  %v978_v20 = vadd.f32 %v974_v6, %v950_v7  ;;  %v1001_v39 = vmul.f32 %v7270_v55, %v984_v32  ;;  %v5316_v24 = vmul.f32 %v1052_v29, %v7271_v10  ;;  %v7273_v7 = vld [vmem:[#allocation52_spill] sm:$0xff]  ;;  %v7274_v29 = vld [vmem:[#allocation54_spill] sm:$0xff] }
 0x134   :  { %v5319_v25 = vmul.f32 %v1051_v34, %v7272_v57  ;;  %v5323_v30 = vadd.f32 %v906_v58, %v718_v28  ;;  %v5325_v17 = vadd.f32 %v907_v40, %v719_v59  ;;  %v1002_v63 = vmul.f32 %v7270_v55, %v988_v3 }
 0x135   :  { %v1004_v49 = vmul.f32 %v7270_v55, %v996_v53  ;;  %v979_v5 = vadd.f32 %v975_v16, %v951_v13  ;;  %v1003_v52 = vmul.f32 %v7270_v55, %v992_v12  ;;  %v1005_v1 = vadd.f32 %v1001_v39, %v977_v22 }
 0x136   :  { %v5331_v4 = vmul.f32 %v3887_v51, %v1308_v18  ;;  %v1012_v28 = vrot.slane %v5230_v36, %v4610_v15  ;;  %v1016_v59 = vrot.slane %v5248_v38, %v4610_v15  ;;  %v1020_v43 = vrot.slane %v5258_v56, %v4610_v15 }
 0x137   :  { %v5333_v47 = vadd.f32 %v1004_v49, %v980_v27  ;;  %v1006_v62 = vadd.f32 %v1002_v63, %v978_v20  ;;  %v1024_v58 = vrot.slane %v5236_v35, %v4610_v15  ;;  %v1061_v8 = vrot.slane %v5316_v24, %v4578_v60 }
 0x138   :  { %v5321_v46 = vpop.permute.xlu1 %1228  ;;  %v1065_v45 = vrot.slane %v5319_v25, %v4578_v60  ;;  %v1085_v36 = vrot.slane %v5316_v24, %v4598_v11  ;;  %v1089_v38 = vrot.slane %v5319_v25, %v4598_v11  ;;  %v1007_v32 = vadd.f32 %v1003_v52, %v979_v5 }
 0x139   :  { %v1327_v53 = vrot.slane %v5331_v4, %v4578_v60  ;;  %v1029_v34 = vmul.f32 %v5241_v54, %v1012_v28  ;;  %v1030_v16 = vmul.f32 %v5241_v54, %v1016_v59  ;;  %v1031_v12 = vmul.f32 %v5241_v54, %v1020_v43 }
 0x13a   :  { %v1078_v18 = vmul.f32 %v5177_v41, %v1061_v8  ;;  %v1079_v20 = vmul.f32 %v5177_v41, %v1065_v45  ;;  %v1102_v55 = vmul.f32 %v5203_v44, %v1085_v36  ;;  %v1103_v39 = vmul.f32 %v5203_v44, %v1089_v38 }
 0x13b   :  { %v1032_v63 = vmul.f32 %v5241_v54, %v1024_v58  ;;  %v1113_v49 = vrot.slane %v5316_v24, %v4608_v14  ;;  %v1117_v5 = vrot.slane %v5319_v25, %v4608_v14  ;;  %v5390_v52 = vmul.f32 %v5184_v31, %v1327_v53 }
 0x13c   :  { %v1048_v40 = vpop.permute.xlu1 %1047  ;;  %v1033_v54 = vadd.f32 %v1029_v34, %v1005_v1  ;;  %v1034_v58 = vadd.f32 %v1030_v16, %v1006_v62  ;;  %v1141_v45 = vrot.slane %v5316_v24, %v4610_v15  ;;  %v1106_v38 = vadd.f32 %v1102_v55, %v1078_v18  ;;  %v7276_v24 = vld [vmem:[#allocation55_spill] sm:$0xff]  ;;  %v7277_v16 = vld [vmem:[#allocation56_spill] sm:$0xff] }
 0x13d   :  { %v1050_v56 = vsel %vm1049_vm5, %v7268_v26, %v1048_v40  ;;  %v1053_v35 = vsel %vm1049_vm5, %v1048_v40, %v7269_v21  ;;  %v1145_v40 = vrot.slane %v5319_v25, %v4610_v15  ;;  %v1130_v1 = vmul.f32 %v5284_v33, %v1113_v49 }
 0x13e   :  { %v5358_v6 = vmul.f32 %v1050_v56, %v7273_v7  ;;  %v5366_v13 = vmul.f32 %v1053_v35, %v7274_v29  ;;  %v1107_v56 = vadd.f32 %v1103_v39, %v1079_v20  ;;  %v7275_v35 = vld [vmem:[#allocation37_spill] sm:$0xff] }
 0x13f   :  { %v1134_v3 = vadd.f32 %v1130_v1, %v1106_v38 }
 0x140   :  { %v1069_v22 = vrot.slane %v5358_v6, %v4578_v60  ;;  %v1093_v27 = vrot.slane %v5358_v6, %v4598_v11  ;;  %v5378_v51 = vpop.permute.xlu1 %1170  ;;  %v1073_v28 = vrot.slane %v5366_v13, %v4578_v60  ;;  %v1097_v43 = vrot.slane %v5366_v13, %v4598_v11 }
 0x141   :  { %v1121_v62 = vrot.slane %v5358_v6, %v4608_v14 }
 0x142   :  { %v1080_v59 = vmul.f32 %v5177_v41, %v1069_v22  ;;  %v1104_v8 = vmul.f32 %v5203_v44, %v1093_v27  ;;  %v1131_v27 = vmul.f32 %v5284_v33, %v1117_v5  ;;  %v1081_v18 = vmul.f32 %v5177_v41, %v1073_v28 }
 0x143   :  { %v1105_v20 = vmul.f32 %v5203_v44, %v1097_v43  ;;  %v1125_v5 = vrot.slane %v5366_v13, %v4608_v14  ;;  %v1132_v41 = vmul.f32 %v5284_v33, %v1121_v62  ;;  %v1149_v44 = vrot.slane %v5358_v6, %v4610_v15 }
 0x144   :  { %v1173_v36 = vpop.permute.xlu1 %1172  ;;  %v1108_v55 = vadd.f32 %v1104_v8, %v1080_v59  ;;  %v7278_v59 = vld [vmem:[#allocation32_spill] sm:$0xff]  ;;  %v1036_v8 = vadd.f32 %v1032_v63, %v5333_v47  ;;  %v1037_v6 = vadd.f32 %v1033_v54, %v5306_v19 }
 0x145   :  { %v1180_v53 = vsel %vm1178_vm7, %v1173_v36, %v7275_v35  ;;  %v1181_v22 = vsel %vm1178_vm7, %v5378_v51, %v1173_v36  ;;  %v1133_v63 = vmul.f32 %v5284_v33, %v1125_v5 }
 0x146   :  { %v1183_v34 = vmul.f32 %v1181_v22, %v7276_v24  ;;  %v1184_v25 = vmul.f32 %v1180_v53, %v7277_v16  ;;  %v1035_v22 = vadd.f32 %v1031_v12, %v1007_v32  ;;  %v1135_v53 = vadd.f32 %v1131_v27, %v1107_v56  ;;  %v7279_v24 = vld [vmem:[#allocation30_spill] sm:$0xff] }
 0x147   :  { %v1158_v16 = vmul.f32 %v7279_v24, %v1141_v45  ;;  %v1159_v32 = vmul.f32 %v7279_v24, %v1145_v40  ;;  %v1109_v12 = vadd.f32 %v1105_v20, %v1081_v18  ;;  %v1136_v38 = vadd.f32 %v1132_v41, %v1108_v55  ;;  %v7280_v41 = vld [vmem:[#allocation57_spill] sm:$0xff] }
 0x148   :  { %v1190_v39 = vrot.slane %v1183_v34, %v4578_v60  ;;  %v1194_v36 = vrot.slane %v1184_v25, %v4578_v60  ;;  %v1214_v49 = vrot.slane %v1183_v34, %v4598_v11  ;;  %v1218_v21 = vrot.slane %v1184_v25, %v4598_v11  ;;  %v5420_v26 = vpop.permute.xlu1 %1256 }
 0x149   :  { %v1242_v56 = vrot.slane %v1183_v34, %v4608_v14  ;;  %v1162_v27 = vadd.f32 %v1158_v16, %v1134_v3  ;;  %v1160_v45 = vmul.f32 %v7279_v24, %v1149_v44  ;;  %v1246_v18 = vrot.slane %v1184_v25, %v4608_v14 }
 0x14a   :  { %v1231_v28 = vmul.f32 %v5321_v46, %v1214_v49  ;;  %v1207_v43 = vmul.f32 %v7278_v59, %v1190_v39  ;;  %v1208_v1 = vmul.f32 %v7278_v59, %v1194_v36  ;;  %v1232_v62 = vmul.f32 %v5321_v46, %v1218_v21 }
 0x14b   :  { %v1163_v49 = vadd.f32 %v1159_v32, %v1135_v53  ;;  %v1153_v39 = vrot.slane %v5366_v13, %v4610_v15  ;;  %v1038_v20 = vadd.f32 %v1034_v58, %v5308_v23  ;;  %v1039_v21 = vadd.f32 %v1035_v22, %v5323_v30 }
 0x14c   :  { %v1235_v40 = vadd.f32 %v1231_v28, %v1207_v43  ;;  %v1270_v19 = vrot.slane %v1183_v34, %v4610_v15  ;;  %v1274_v3 = vrot.slane %v1184_v25, %v4610_v15  ;;  %v1236_v54 = vadd.f32 %v1232_v62, %v1208_v1  ;;  %v7281_v28 = vld [vmem:[#allocation59_spill] sm:$0xff] }
 0x14d   :  { %v5438_v47 = vpop.permute.xlu1 %1357  ;;  %v1259_v13 = vmul.f32 %v5420_v26, %v1242_v56  ;;  %v1137_v16 = vadd.f32 %v1133_v63, %v1109_v12  ;;  %v1164_v55 = vadd.f32 %v1160_v45, %v1136_v38  ;;  %v5449_v33 = vadd.f32 %v1036_v8, %v5325_v17  ;;  %v3888_v63 = vld [vmem:[#allocation7 + $0x38] ss:$0 sm:$0xff] }
 0x14e   :  { %v5451_v36 = vadd.f32 %v1162_v27, %v1037_v6  ;;  %v5453_v53 = vadd.f32 %v1163_v49, %v1038_v20  ;;  %v1161_v23 = vmul.f32 %v7279_v24, %v1153_v39  ;;  %v1260_v30 = vmul.f32 %v5420_v26, %v1246_v18 }
 0x14f   :  { %v1263_v34 = vadd.f32 %v1259_v13, %v1235_v40  ;;  %v1287_v17 = vmul.f32 %v5220_v50, %v1270_v19  ;;  %v1288_v5 = vmul.f32 %v5220_v50, %v1274_v3  ;;  %v7282_v8 = vrot.slane %v5331_v4, %v4598_v11  ;;  %v3885_v13 = vld [vmem:[#allocation7 + $0x20] ss:$0 sm:$0xff] }
 0x150   :  { %v1264_v43 = vadd.f32 %v1260_v30, %v1236_v54  ;;  %v5471_v12 = vadd.f32 %v1161_v23, %v1137_v16  ;;  %v3886_v16 = vld [vmem:[#allocation7 + $0x28] ss:$0 sm:$0xff] }
 0x151   :  { %v1177_v58 = vpop.permute.xlu1 %1176  ;;  %v1362_v32 = vmul.f32 %v5438_v47, %v7282_v8  ;;  %v5479_v6 = vadd.f32 %v1287_v17, %v1263_v34 }
 0x152   :  { %v1179_v25 = vsel %vm1178_vm7, %v7275_v35, %v1177_v58  ;;  %v1182_v22 = vsel %vm1178_vm7, %v1177_v58, %v5378_v51  ;;  %v5473_v35 = vadd.f32 %v1164_v55, %v1039_v21  ;;  %v1292_v21 = vadd.f32 %v1288_v5, %v1264_v43 }
 0x153   :  { %v1185_v44 = vmul.f32 %v1179_v25, %v7280_v41  ;;  %v1186_v24 = vmul.f32 %v1182_v22, %v7281_v28  ;;  %v1366_v19 = vadd.f32 %v1362_v32, %v5390_v52 }
 0x155   :  { %v1198_v51 = vrot.slane %v1185_v44, %v4578_v60  ;;  %v1202_v38 = vrot.slane %v1186_v24, %v4578_v60  ;;  %v1222_v56 = vrot.slane %v1185_v44, %v4598_v11  ;;  %v1226_v1 = vrot.slane %v1186_v24, %v4598_v11  ;;  %v1300_v62 = vpop.permute.xlu1 %1299 }
 0x156   :  { %v1250_v27 = vrot.slane %v1185_v44, %v4608_v14  ;;  %v1254_v49 = vrot.slane %v1186_v24, %v4608_v14  ;;  %v1278_v39 = vrot.slane %v1185_v44, %v4610_v15  ;;  %v1282_v3 = vrot.slane %v1186_v24, %v4610_v15 }
 0x157   :  { %v1209_v45 = vmul.f32 %v7278_v59, %v1198_v51  ;;  %v1210_v40 = vmul.f32 %v7278_v59, %v1202_v38  ;;  %v1233_v18 = vmul.f32 %v5321_v46, %v1222_v56  ;;  %v1234_v20 = vmul.f32 %v5321_v46, %v1226_v1 }
 0x158   :  { %v1311_v54 = vsel %vm1307_vm6, %v5290_v9, %v1300_v62  ;;  %v1261_v23 = vmul.f32 %v5420_v26, %v1250_v27  ;;  %v1262_v34 = vmul.f32 %v5420_v26, %v1254_v49  ;;  %v1289_v46 = vmul.f32 %v5220_v50, %v1278_v39 }
 0x159   :  { %v1237_v55 = vadd.f32 %v1233_v18, %v1209_v45  ;;  %v1315_v58 = vmul.f32 %v3888_v63, %v1311_v54  ;;  %v1302_v59 = vpop.permute.xlu1 %1301  ;;  %v1238_v30 = vadd.f32 %v1234_v20, %v1210_v40  ;;  %v1290_v26 = vmul.f32 %v5220_v50, %v1282_v3 }
 0x15a   :  { %v1309_v52 = vsel %vm1307_vm6, %v1302_v59, %v5260_v2  ;;  %v1310_v25 = vsel %vm1307_vm6, %v1300_v62, %v1302_v59  ;;  %v7283_v20 = vrot.slane %v5331_v4, %v4608_v14 }
 0x15b   :  { %v1331_v9 = vrot.slane %v1315_v58, %v4578_v60  ;;  %v1355_v22 = vrot.slane %v1315_v58, %v4598_v11  ;;  %v1312_v17 = vmul.f32 %v3885_v13, %v1310_v25  ;;  %v1313_v5 = vmul.f32 %v3886_v16, %v1309_v52 }
 0x15c   :  { %v1383_v44 = vrot.slane %v1315_v58, %v4608_v14  ;;  %v1265_v24 = vadd.f32 %v1261_v23, %v1237_v55  ;;  %v1266_v43 = vadd.f32 %v1262_v34, %v1238_v30 }
 0x15d   :  { %v1319_v8 = vrot.slane %v1312_v17, %v4578_v60  ;;  %v1323_v32 = vrot.slane %v1313_v5, %v4578_v60  ;;  %v1343_v2 = vrot.slane %v1312_v17, %v4598_v11  ;;  %v1347_v51 = vrot.slane %v1313_v5, %v4598_v11  ;;  %v1386_v38 = vpop.permute.xlu1 %1385 }
 0x15e   :  { %v1371_v56 = vrot.slane %v1312_v17, %v4608_v14  ;;  %v1339_v1 = vmul.f32 %v5184_v31, %v1331_v9  ;;  %v1363_v62 = vmul.f32 %v5438_v47, %v1355_v22  ;;  %v1375_v27 = vrot.slane %v1313_v5, %v4608_v14 }
 0x15f   :  { %v1360_v50 = vmul.f32 %v5438_v47, %v1343_v2  ;;  %v1336_v49 = vmul.f32 %v5184_v31, %v1319_v8  ;;  %v1337_v39 = vmul.f32 %v5184_v31, %v1323_v32  ;;  %v1361_v63 = vmul.f32 %v5438_v47, %v1347_v51 }
 0x160   :  { %v1367_v45 = vadd.f32 %v1363_v62, %v1339_v1  ;;  %v1388_v40 = vmul.f32 %v1386_v38, %v1371_v56  ;;  %v1389_v18 = vmul.f32 %v1386_v38, %v1375_v27  ;;  %v1390_v3 = vmul.f32 %v1386_v38, %v7283_v20 }
 0x161   :  { %v1364_v54 = vadd.f32 %v1360_v50, %v1336_v49  ;;  %v1365_v13 = vadd.f32 %v1361_v63, %v1337_v39  ;;  %v1391_v16 = vmul.f32 %v1386_v38, %v1383_v44  ;;  %v1399_v55 = vrot.slane %v1312_v17, %v4610_v15  ;;  %v5548_v50 = vld [vmem:[#allocation5] sm:$0xf] }
 0x162   :  { %v1394_v23 = vadd.f32 %v1390_v3, %v1366_v19  ;;  %v1414_v59 = vpop.permute.xlu1 %1413  ;;  %v1403_v30 = vrot.slane %v1313_v5, %v4610_v15  ;;  %v1411_v31 = vrot.slane %v1315_v58, %v4610_v15  ;;  %v1293_v34 = vadd.f32 %v1289_v46, %v1265_v24 }
 0x163   :  { %v1392_v47 = vadd.f32 %v1388_v40, %v1364_v54  ;;  %v1393_v52 = vadd.f32 %v1389_v18, %v1365_v13  ;;  %v1416_v25 = vmul.f32 %v1414_v59, %v1399_v55  ;;  %v1294_v9 = vadd.f32 %v1290_v26, %v1266_v43 }
 0x164   :  { %v1395_v22 = vadd.f32 %v1391_v16, %v1367_v45  ;;  %v1417_v8 = vmul.f32 %v1414_v59, %v1403_v30  ;;  %v7284_v32 = vrot.slane %v5331_v4, %v4610_v15  ;;  %v1419_v44 = vmul.f32 %v1414_v59, %v1411_v31 }
 0x165   :  { %v1420_v51 = vadd.f32 %v1416_v25, %v1392_v47  ;;  %v1169_v19 = vadd.f32 %v5471_v12, %v5449_v33  ;;  %v1295_v17 = vadd.f32 %v5479_v6, %v5451_v36  ;;  %v1296_v58 = vadd.f32 %v1292_v21, %v5453_v53 }
 0x166   :  { %v1418_v2 = vmul.f32 %v1414_v59, %v7284_v32  ;;  %v1421_v46 = vadd.f32 %v1417_v8, %v1393_v52  ;;  %v1297_v24 = vadd.f32 %v1293_v34, %v5473_v35  ;;  %v1423_v43 = vadd.f32 %v1419_v44, %v1395_v22 }
 0x167   :  { %v5532_v26 = vadd.f32 %v1420_v51, %v1295_v17  ;;  %v1298_v38 = vadd.f32 %v1294_v9, %v1169_v19  ;;  %v4297_v62 = vmov 43   ;;  %v4298_v27 = vmov 44  }
 0x168   :  { %v1422_v5 = vadd.f32 %v1418_v2, %v1394_v23  ;;  %v5534_v4 = vadd.f32 %v1421_v46, %v1296_v58  ;;  %4056 = vset.pattern.permute.xlu1 %v4297_v62  ;;  %4053 = vset.pattern.permute.xlu0 %v4298_v27  ;;  %v4299_v49 = vmov 39   ;;  %v4300_v39 = vmov 48  }
 0x169   :  { %v1429_v33 = vsel %vm1428_vm8, %v5532_v26, 0.0  ;;  %v5540_v12 = vadd.f32 %v1423_v43, %v1298_v38  ;;  %v4301_v63 = vmov 47   ;;  %v4302_v45 = vmov 52  }
 0x16a   :  { %v5536_v56 = vadd.f32 %v1422_v5, %v1297_v24  ;;  %v1430_v36 = vsel %vm1428_vm8, %v5534_v4, 0.0  ;;  %v4303_v22 = vmov 51   ;;  %v4304_v8 = vmov 46  }
 0x16b   :  { %v1431_v53 = vadd.f32 %v1430_v36, %v1429_v33  ;;  %v1434_v21 = vsel %vm1428_vm8, %v5540_v12, 0.0  ;;  %v4305_v32 = vmov 57   ;;  %v4306_v2 = vmov 49  }
 0x16c   :  { %v1432_v35 = vsel %vm1428_vm8, %v5536_v56, 0.0  ;;  %v4307_v44 = vmov 58   ;;  %v4308_v51 = vmov 50   ;;  %v7285_v19 = vmov 0  }
 0x16d   :  { %v1433_v6 = vadd.f32 %v1432_v35, %v1431_v53  ;;  %v4309_v17 = vmov 53   ;;  %v4310_v58 = vmov 54   ;;  %v4311_v46 = vmov 56   ;;  %v5588_v35 = vpop.permute.xlu1 %1518 }
 0x16e   :  { %v4312_v5 = vmov 55   ;;  %v4313_v24 = vmov 60   ;;  %v4314_v43 = vmov 61   ;;  %v4315_v38 = vmov 59  }
 0x16f   :  { %v1435_v1 = vadd.f32 %v1434_v21, %v1433_v6  ;;  %v4316_v33 = vmov 62   ;;  %v4317_v36 = vmov 65   ;;  %v4318_v53 = vmov 66  }
 0x171   :  { %1436 = vadd.xlane.f32.xlu0 %v1435_v1 }
 0x172   :  { %v5590_v6 = vpop.permute.xlu1 %1542 }
 0x177   :  { %v5592_v21 = vpop.permute.xlu1 %1642 }
 0x17c   :  { %v5594_v1 = vpop.permute.xlu1 %1666 }
 0x182   :  { %v5596_v62 = vpop.permute.xlu1 %1570 }
 0x187   :  { %1770 = vperm.xlu0 %4053, %v5548_v50   ;;  %v5598_v27 = vpop.permute.xlu1 %1694 }
 0x18b   :  { %4055 = vset.pattern.permute.xlu0 %v4299_v49 }
 0x18c   :  { %1598 = vperm.xlu0 %4055, %v5548_v50   ;;  %v5600_v49 = vpop.permute.xlu1 %1794 }
 0x190   :  { %4058 = vset.pattern.permute.xlu0 %v4300_v39 }
 0x191   :  { %1898 = vperm.xlu0 %4058, %v5548_v50  }
 0x195   :  { %4060 = vset.pattern.permute.xlu0 %v4301_v63 }
 0x196   :  { %1850 = vperm.xlu0 %4060, %v5548_v50  }
 0x19a   :  { %4062 = vset.pattern.permute.xlu0 %v4302_v45 }
 0x19b   :  { %2010 = vperm.xlu0 %4062, %v5548_v50  }
 0x19f   :  { %4064 = vset.pattern.permute.xlu0 %v4303_v22 }
 0x1a0   :  { %1978 = vperm.xlu0 %4064, %v5548_v50  }
 0x1a4   :  { %4067 = vset.pattern.permute.xlu0 %v4305_v32  ;;  %v4325_v32 = vmov 71  }
 0x1a5   :  { %2162 = vperm.xlu0 %4067, %v5548_v50  }
 0x1a9   :  { %4069 = vset.pattern.permute.xlu0 %v4307_v44 }
 0x1aa   :  { %2190 = vperm.xlu0 %4069, %v5548_v50  }
 0x1ae   :  { %4074 = vset.pattern.permute.xlu0 %v7285_v19 }
 0x1fe   :  { %v1437_v40 = vpop.xlane.xlu0 %1436 }
 0x1ff   :  { %v5555_v18 = vmul.f32 0.001953125, %v1437_v40  ;;  %v61_v40 = vld [vmem:[%s7098_s2] sm:$0xf] }
 0x201   :  { %v1440_v20 = vsub.f32 %v5532_v26, %v5555_v18  ;;  %v1441_v3 = vsub.f32 %v5534_v4, %v5555_v18  ;;  %v1442_v54 = vsub.f32 %v5536_v56, %v5555_v18  ;;  %v1443_v13 = vsub.f32 %v5540_v12, %v5555_v18 }
 0x203   :  { %v1444_v16 = vmul.f32 %v1440_v20, %v1440_v20  ;;  %v1445_v55 = vmul.f32 %v1441_v3, %v1441_v3  ;;  %v1446_v23 = vmul.f32 %v1442_v54, %v1442_v54  ;;  %v1447_v59 = vmul.f32 %v1443_v13, %v1443_v13  ;;  %v62_v54 = vld [vmem:[%s7099_s3] sm:$0xf] }
 0x205   :  { %v1448_v30 = vsel %vm1428_vm8, %v1444_v16, 0.0  ;;  %v1449_v31 = vsel %vm1428_vm8, %v1445_v55, 0.0  ;;  %v1451_v47 = vsel %vm1428_vm8, %v1446_v23, 0.0  ;;  %v1453_v25 = vsel %vm1428_vm8, %v1447_v59, 0.0 }
 0x206   :  { %v1450_v34 = vadd.f32 %v1449_v31, %v1448_v30  ;;  %v4319_v55 = vmov 64   ;;  %v4320_v23 = vmov 69   ;;  %v4321_v59 = vmov 63  }
 0x207   :  { %v4322_v30 = vmov 70   ;;  %v4323_v31 = vmov 68  }
 0x208   :  { %v1452_v52 = vadd.f32 %v1451_v47, %v1450_v34 }
 0x20a   :  { %v1454_v9 = vadd.f32 %v1453_v25, %v1452_v52 }
 0x20c   :  { %1455 = vadd.xlane.f32.xlu1 %v1454_v9 }
 0x21d   :  { %1722 = vperm.xlu1 %4056, %v5548_v50  }
 0x221   :  { %4057 = vset.pattern.permute.xlu1 %v4304_v8  ;;  %v5627_v8 = vpop.permute.xlu0 %1770 }
 0x222   :  { %1822 = vperm.xlu1 %4057, %v5548_v50  }
 0x225   :  { %v5631_v44 = vpop.permute.xlu0 %1598 }
 0x226   :  { %4059 = vset.pattern.permute.xlu1 %v4306_v2 }
 0x227   :  { %1922 = vperm.xlu1 %4059, %v5548_v50  }
 0x22b   :  { %4061 = vset.pattern.permute.xlu1 %v4308_v51 }
 0x22c   :  { %1950 = vperm.xlu1 %4061, %v5548_v50  }
 0x230   :  { %4063 = vset.pattern.permute.xlu1 %v4309_v17 }
 0x231   :  { %2034 = vperm.xlu1 %4063, %v5548_v50  }
 0x235   :  { %4065 = vset.pattern.permute.xlu1 %v4310_v58 }
 0x236   :  { %2062 = vperm.xlu1 %4065, %v5548_v50  }
 0x23a   :  { %4066 = vset.pattern.permute.xlu1 %v4311_v46 }
 0x23b   :  { %2138 = vperm.xlu1 %4066, %v5548_v50  }
 0x23f   :  { %4068 = vset.pattern.permute.xlu1 %v4312_v5 }
 0x240   :  { %2090 = vperm.xlu1 %4068, %v5548_v50  }
 0x244   :  { %4070 = vset.pattern.permute.xlu1 %v4313_v24 }
 0x245   :  { %2266 = vperm.xlu1 %4070, %v5548_v50  }
 0x249   :  { %4071 = vset.pattern.permute.xlu1 %v4314_v43 }
 0x24a   :  { %2290 = vperm.xlu1 %4071, %v5548_v50  }
 0x24e   :  { %4072 = vset.pattern.permute.xlu1 %v4315_v38 }
 0x24f   :  { %2218 = vperm.xlu1 %4072, %v5548_v50  }
 0x253   :  { %4073 = vset.pattern.permute.xlu1 %v4316_v33 }
 0x254   :  { %2318 = vperm.xlu1 %4073, %v5548_v50  }
 0x258   :  { %4076 = vset.pattern.permute.xlu1 %v4317_v36 }
 0x259   :  { %2418 = vperm.xlu1 %4076, %v5548_v50  }
 0x25d   :  { %4078 = vset.pattern.permute.xlu1 %v4318_v53 }
 0x25e   :  { %2446 = vperm.xlu1 %4078, %v5548_v50  }
 0x262   :  { %4080 = vset.pattern.permute.xlu1 %v7285_v19  ;;  %v5635_v19 = vpop.permute.xlu0 %1898 }
 0x266   :  { %v5639_v58 = vpop.permute.xlu0 %1850 }
 0x26a   :  { %v5643_v5 = vpop.permute.xlu0 %2010 }
 0x26e   :  { %v5647_v43 = vpop.permute.xlu0 %1978 }
 0x272   :  { %v5651_v33 = vpop.permute.xlu0 %2162 }
 0x276   :  { %v5655_v53 = vpop.permute.xlu0 %2190 }
 0x299   :  { %v1456_v39 = vpop.xlane.xlu1 %1455 }
 0x29a   :  { %v1457_v63 = vmul.f32 0.001953125, %v1456_v39 }
 0x29c   :  { %v1458_v45 = vadd.f32 1e-05, %v1457_v63 }
 0x29d   :  { %v5615_v34 = vpop.permute.xlu1 %1722 }
 0x29e   :  { %4127 = vrsqrt.f32 %v1458_v45 }
 0x2a1   :  { %v5617_v47 = vpop.permute.xlu1 %1822 }
 0x2a6   :  { %v5619_v52 = vpop.permute.xlu1 %1922 }
 0x2a8   :  { %v4128_v20 = vpop.eup %4127 }
 0x2a9   :  { %v1460_v3 = vmul.f32 %v4128_v20, %v61_v40 }
 0x2ab   :  { %1465 = vperm.xlu0 %4074, %v1460_v3   ;;  %v1461_v13 = vmul.f32 %v1460_v3, %v5555_v18  ;;  %v4324_v18 = vmov 67   ;;  %v5621_v25 = vpop.permute.xlu1 %1950 }
 0x2ad   :  { %v1462_v16 = vsub.f32 %v62_v54, %v1461_v13 }
 0x2af   :  { %1474 = vperm.xlu1 %4080, %v1462_v16   ;;  %4075 = vset.pattern.permute.xlu0 %v4319_v55 }
 0x2b0   :  { %2394 = vperm.xlu0 %4075, %v5548_v50   ;;  %v5623_v9 = vpop.permute.xlu1 %2034 }
 0x2b3   :  { %4081 = vset.pattern.permute.xlu1 %v4320_v23 }
 0x2b4   :  { %4077 = vset.pattern.permute.xlu0 %v4321_v59  ;;  %2546 = vperm.xlu1 %4081, %v5548_v50  }
 0x2b5   :  { %2346 = vperm.xlu0 %4077, %v5548_v50   ;;  %v5625_v22 = vpop.permute.xlu1 %2062 }
 0x2b8   :  { %4083 = vset.pattern.permute.xlu1 %v4322_v30 }
 0x2b9   :  { %4079 = vset.pattern.permute.xlu0 %v4323_v31  ;;  %2574 = vperm.xlu1 %4083, %v5548_v50  }
 0x2ba   :  { %2522 = vperm.xlu0 %4079, %v5548_v50   ;;  %v5629_v2 = vpop.permute.xlu1 %2138 }
 0x2bd   :  { %4084 = vset.pattern.permute.xlu1 %v4325_v32 }
 0x2be   :  { %4082 = vset.pattern.permute.xlu0 %v4324_v18 }
 0x2bf   :  { %2474 = vperm.xlu0 %4082, %v5548_v50   ;;  %v5633_v51 = vpop.permute.xlu1 %2090 }
 0x2c4   :  { %v5637_v17 = vpop.permute.xlu1 %2266 }
 0x2c9   :  { %v5641_v46 = vpop.permute.xlu1 %2290 }
 0x2ca   :  { %7286 = vst [vmem:[#allocation23_spill] sm:$0xff] %v5641_v46 }
 0x2ce   :  { %v5645_v24 = vpop.permute.xlu1 %2218 }
 0x2d3   :  { %v5649_v38 = vpop.permute.xlu1 %2318 }
 0x2d4   :  { %7287 = vst [vmem:[#allocation31_spill] sm:$0xff] %v5649_v38 }
 0x2d8   :  { %v5653_v36 = vpop.permute.xlu1 %2418 }
 0x2d9   :  { %7288 = vst [vmem:[#allocation36_spill] sm:$0xff] %v5653_v36 }
 0x2dd   :  { %v5657_v39 = vpop.permute.xlu1 %2446 }
 0x2de   :  { %7289 = vst [vmem:[#allocation22_spill] sm:$0xff] %v5657_v39 }
 0x32a   :  { %v1466_v63 = vpop.permute.xlu0 %1465 }
 0x32b   :  { %v1468_v45 = vmul.f32 %v1466_v63, %v5532_v26  ;;  %v1471_v40 = vmul.f32 %v1466_v63, %v5540_v12  ;;  %v1469_v3 = vmul.f32 %v1466_v63, %v5534_v4  ;;  %v1470_v26 = vmul.f32 %v1466_v63, %v5536_v56 }
 0x32e   :  { %v1475_v20 = vpop.permute.xlu1 %1474 }
 0x32f   :  { %v1477_v54 = vadd.f32 %v1475_v20, %v1468_v45  ;;  %v1480_v13 = vadd.f32 %v1475_v20, %v1471_v40  ;;  %v1478_v16 = vadd.f32 %v1475_v20, %v1469_v3  ;;  %v1479_v4 = vadd.f32 %v1475_v20, %v1470_v26  ;;  %v5736_v56 = vpop.permute.xlu0 %2394 }
 0x330   :  { %7290 = vst [vmem:[#allocation12_spill] sm:$0xff] %v5736_v56 }
 0x331   :  { %v5662_v55 = vmax.f32 %v1477_v54, 0.0  ;;  %v5664_v23 = vmax.f32 %v1480_v13, 0.0  ;;  %v5670_v59 = vmax.f32 %v1478_v16, 0.0  ;;  %v5681_v12 = vmax.f32 %v1479_v4, 0.0 }
 0x333   :  { %1491 = vrot.lane.b32.xlu0 %v5664_v23, %s4250_s4  ;;  %1485 = vrot.lane.b32.xlu1 %v5662_v55, %s4250_s4  ;;  %v5740_v31 = vpop.permute.xlu1 %2546  ;;  %v2000_v32 = vrot.slane %v5670_v59, %v4578_v60  ;;  %v2024_v63 = vrot.slane %v5670_v59, %v4598_v11  ;;  %v2004_v45 = vrot.slane %v5681_v12, %v4578_v60 }
 0x334   :  { %v5738_v30 = vpop.permute.xlu0 %2346  ;;  %7292 = vst [vmem:[#allocation35_spill] sm:$0xff] %v5740_v31  ;;  %v2028_v40 = vrot.slane %v5681_v12, %v4598_v11  ;;  %v1996_v20 = vrot.slane %v5662_v55, %v4578_v60  ;;  %v2020_v3 = vrot.slane %v5662_v55, %v4598_v11  ;;  %v2008_v54 = vrot.slane %v5664_v23, %v4578_v60 }
 0x335   :  { %7291 = vst [vmem:[#allocation24_spill] sm:$0xff] %v5738_v30  ;;  %v2032_v13 = vrot.slane %v5664_v23, %v4598_v11  ;;  %v2014_v16 = vmul.f32 %v5643_v5, %v2000_v32  ;;  %v2038_v26 = vmul.f32 %v5623_v9, %v2024_v63  ;;  %v2015_v41 = vmul.f32 %v5643_v5, %v2004_v45 }
 0x336   :  { %v2039_v39 = vmul.f32 %v5623_v9, %v2028_v40  ;;  %v2052_v36 = vrot.slane %v5670_v59, %v4608_v14  ;;  %v2056_v56 = vrot.slane %v5681_v12, %v4608_v14  ;;  %v2013_v31 = vmul.f32 %v5643_v5, %v1996_v20 }
 0x337   :  { %1609 = vrot.lane.b32.xlu0 %v5662_v55, %s4253_s29  ;;  %1487 = vrot.lane.b32.xlu1 %v5670_v59, %s4250_s4  ;;  %v2037_v32 = vmul.f32 %v5623_v9, %v2020_v3  ;;  %v2016_v63 = vmul.f32 %v5643_v5, %v2008_v54  ;;  %v2048_v45 = vrot.slane %v5662_v55, %v4608_v14 }
 0x338   :  { %v5762_v4 = vpop.permute.xlu1 %2574  ;;  %v2060_v40 = vrot.slane %v5664_v23, %v4608_v14  ;;  %v2066_v29 = vmul.f32 %v5625_v22, %v2052_v36  ;;  %v2080_v30 = vrot.slane %v5670_v59, %v4610_v15  ;;  %v2067_v3 = vmul.f32 %v5625_v22, %v2056_v56 }
 0x339   :  { %v5742_v18 = vpop.permute.xlu0 %2522  ;;  %7294 = vst [vmem:[#allocation38_spill] sm:$0xff] %v5762_v4  ;;  %v2040_v4 = vmul.f32 %v5623_v9, %v2032_v13  ;;  %v2084_v9 = vrot.slane %v5681_v12, %v4610_v15  ;;  %v2041_v5 = vadd.f32 %v2037_v32, %v2013_v31  ;;  %v4326_v13 = vmov 72  }
 0x33a   :  { %7293 = vst [vmem:[#allocation39_spill] sm:$0xff] %v5742_v18  ;;  %v2042_v18 = vadd.f32 %v2038_v26, %v2014_v16  ;;  %v2065_v36 = vmul.f32 %v5625_v22, %v2048_v45  ;;  %v2068_v26 = vmul.f32 %v5625_v22, %v2060_v40 }
 0x33b   :  { %1615 = vrot.lane.b32.xlu0 %v5664_v23, %s4253_s29  ;;  %1611 = vrot.lane.b32.xlu1 %v5670_v59, %s4253_s29  ;;  %v2044_v54 = vadd.f32 %v2040_v4, %v2016_v63  ;;  %v2094_v4 = vmul.f32 %v5633_v51, %v2080_v30 }
 0x33c   :  { %v2069_v45 = vadd.f32 %v2065_v36, %v2041_v5 }
 0x33e   :  { %v5764_v28 = vpop.permute.xlu0 %2474 }
 0x33f   :  { %1737 = vrot.lane.b32.xlu0 %v5662_v55, %s4257_s30  ;;  %1489 = vrot.lane.b32.xlu1 %v5681_v12, %s4250_s4  ;;  %7295 = vst [vmem:[#allocation40_spill] sm:$0xff] %v5764_v28  ;;  %v2043_v28 = vadd.f32 %v2039_v39, %v2015_v41  ;;  %v2070_v41 = vadd.f32 %v2066_v29, %v2042_v18 }
 0x340   :  { %v2076_v39 = vrot.slane %v5662_v55, %v4610_v15 }
 0x341   :  { %v2071_v31 = vadd.f32 %v2067_v3, %v2043_v28  ;;  %v5802_v22 = vadd.f32 %v2094_v4, %v2070_v41  ;;  %v4327_v28 = vmov 73  }
 0x343   :  { %1743 = vrot.lane.b32.xlu0 %v5664_v23, %s4257_s30  ;;  %1613 = vrot.lane.b32.xlu1 %v5681_v12, %s4253_s29  ;;  %7297 = vst [vmem:[#allocation41_spill] sm:$0xff] %v5802_v22 }
 0x347   :  { %1871 = vrot.lane.b32.xlu0 %v5664_v23, %s4262_s6  ;;  %1739 = vrot.lane.b32.xlu1 %v5670_v59, %s4257_s30 }
 0x34b   :  { %2107 = vrot.lane.b32.xlu0 %v5670_v59, %s4268_s7  ;;  %1741 = vrot.lane.b32.xlu1 %v5681_v12, %s4257_s30 }
 0x34f   :  { %2111 = vrot.lane.b32.xlu0 %v5664_v23, %s4268_s7  ;;  %1865 = vrot.lane.b32.xlu1 %v5662_v55, %s4262_s6 }
 0x353   :  { %2233 = vrot.lane.b32.xlu0 %v5662_v55, %s4272_s8  ;;  %1867 = vrot.lane.b32.xlu1 %v5670_v59, %s4262_s6 }
 0x357   :  { %2237 = vrot.lane.b32.xlu0 %v5681_v12, %s4272_s8  ;;  %1869 = vrot.lane.b32.xlu1 %v5681_v12, %s4262_s6 }
 0x35b   :  { %2365 = vrot.lane.b32.xlu0 %v5681_v12, %s4277_s9  ;;  %2105 = vrot.lane.b32.xlu1 %v5662_v55, %s4268_s7 }
 0x35f   :  { %2493 = vrot.lane.b32.xlu0 %v5681_v12, %s4281_s10  ;;  %2109 = vrot.lane.b32.xlu1 %v5681_v12, %s4268_s7  ;;  %v2088_v12 = vrot.slane %v5664_v23, %v4610_v15 }
 0x361   :  { %v2096_v5 = vmul.f32 %v5633_v51, %v2088_v12 }
 0x363   :  { %2495 = vrot.lane.b32.xlu0 %v5664_v23, %s4281_s10  ;;  %2235 = vrot.lane.b32.xlu1 %v5670_v59, %s4272_s8 }
 0x367   :  { %2239 = vrot.lane.b32.xlu1 %v5664_v23, %s4272_s8 }
 0x36b   :  { %2361 = vrot.lane.b32.xlu1 %v5662_v55, %s4277_s9 }
 0x36f   :  { %2363 = vrot.lane.b32.xlu1 %v5670_v59, %s4277_s9 }
 0x373   :  { %2367 = vrot.lane.b32.xlu1 %v5664_v23, %s4277_s9  ;;  %v2093_v23 = vmul.f32 %v5633_v51, %v2076_v39 }
 0x375   :  { %v5816_v4 = vadd.f32 %v2093_v23, %v2069_v45 }
 0x377   :  { %2489 = vrot.lane.b32.xlu1 %v5662_v55, %s4281_s10  ;;  %v2072_v55 = vadd.f32 %v2068_v26, %v2044_v54  ;;  %v7298_v54 = vld [vmem:[#allocation13_spill] sm:$0xff]  ;;  %7300 = vst [vmem:[#allocation43_spill] sm:$0xff] %v5816_v4 }
 0x37b   :  { %2491 = vrot.lane.b32.xlu1 %v5670_v59, %s4281_s10  ;;  %v7296_v59 = vld [vmem:[#allocation14_spill] sm:$0xff] }
 0x37f   :  { %2602 = vperm.xlu1 %4084, %v5548_v50  }
 0x383   :  { %4085 = vset.pattern.permute.xlu1 %v4326_v13 }
 0x384   :  { %2705 = vperm.xlu1 %4085, %v5548_v50  }
 0x388   :  { %4086 = vset.pattern.permute.xlu1 %v4327_v28 }
 0x389   :  { %2729 = vperm.xlu1 %4086, %v5548_v50  }
 0x3a5   :  { %v1486_v20 = vpop.permute.xlu1 %1485  ;;  %v1492_v7 = vpop.permute.xlu0 %1491 }
 0x3a6   :  { %v1496_v16 = vsel %vm215_vm0, %v1492_v7, %v1486_v20 }
 0x3a7   :  { %v1497_v56 = vmul.f32 %v1496_v16, %v7296_v59  ;;  %v2095_v16 = vmul.f32 %v5633_v51, %v2084_v9 }
 0x3a9   :  { %v1504_v32 = vrot.slane %v1497_v56, %v4578_v60  ;;  %v1528_v29 = vrot.slane %v1497_v56, %v4598_v11  ;;  %v1488_v18 = vpop.permute.xlu1 %1487  ;;  %v1610_v63 = vpop.permute.xlu0 %1609  ;;  %v1556_v3 = vrot.slane %v1497_v56, %v4608_v14  ;;  %v5812_v41 = vadd.f32 %v2095_v16, %v2071_v31 }
 0x3aa   :  { %v1495_v13 = vsel %vm215_vm0, %v1486_v20, %v1488_v18  ;;  %v1584_v20 = vrot.slane %v1497_v56, %v4610_v15  ;;  %v4328_v16 = vmov 76  }
 0x3ab   :  { %v1521_v30 = vmul.f32 %v5588_v35, %v1504_v32  ;;  %v1545_v40 = vmul.f32 %v5590_v6, %v1528_v29  ;;  %v1498_v9 = vmul.f32 %v1495_v13, %v7298_v54  ;;  %7299 = vst [vmem:[#allocation42_spill] sm:$0xff] %v5812_v41  ;;  %v5818_v32 = vadd.f32 %v2096_v5, %v2072_v55  ;;  %v7303_v5 = vld [vmem:[#allocation15_spill] sm:$0xff] }
 0x3ac   :  { %v1573_v56 = vmul.f32 %v5596_v62, %v1556_v3  ;;  %4087 = vset.pattern.permute.xlu1 %v4328_v16  ;;  %v1601_v45 = vmul.f32 %v5631_v44, %v1584_v20 }
 0x3ad   :  { %v1549_v36 = vadd.f32 %v1545_v40, %v1521_v30  ;;  %v1612_v39 = vpop.permute.xlu1 %1611  ;;  %v5814_v26 = vpop.permute.xlu0 %1615  ;;  %7301 = vst [vmem:[#allocation44_spill] sm:$0xff] %v5818_v32  ;;  %v1508_v29 = vrot.slane %v1498_v9, %v4578_v60  ;;  %v1532_v51 = vrot.slane %v1498_v9, %v4598_v11  ;;  %v1560_v12 = vrot.slane %v1498_v9, %v4608_v14  ;;  %v7302_v40 = vld [vmem:[#allocation16_spill] sm:$0xff] }
 0x3ae   :  { %v1619_v31 = vsel %vm341_vm1, %v1610_v63, %v1612_v39  ;;  %v1620_v13 = vsel %vm341_vm1, %v5814_v26, %v1610_v63  ;;  %2829 = vperm.xlu1 %4087, %v5548_v50   ;;  %v1588_v30 = vrot.slane %v1498_v9, %v4610_v15 }
 0x3af   :  { %v1522_v55 = vmul.f32 %v5588_v35, %v1508_v29  ;;  %v1546_v23 = vmul.f32 %v5590_v6, %v1532_v51  ;;  %v1577_v28 = vadd.f32 %v1573_v56, %v1549_v36  ;;  %v1622_v3 = vmul.f32 %v1619_v31, %v7302_v40 }
 0x3b0   :  { %v1621_v59 = vmul.f32 %v1620_v13, %v7303_v5  ;;  %v1574_v63 = vmul.f32 %v5596_v62, %v1560_v12 }
 0x3b1   :  { %v1490_v54 = vpop.permute.xlu1 %1489  ;;  %v1550_v32 = vadd.f32 %v1546_v23, %v1522_v55  ;;  %v1632_v51 = vrot.slane %v1622_v3, %v4578_v60  ;;  %v1656_v36 = vrot.slane %v1622_v3, %v4598_v11  ;;  %v1684_v9 = vrot.slane %v1622_v3, %v4608_v14  ;;  %v5848_v55 = vpop.permute.xlu0 %1737 }
 0x3b2   :  { %v1493_v20 = vsel %vm215_vm0, %v1490_v54, %v1492_v7  ;;  %v1494_v29 = vsel %vm215_vm0, %v1488_v18, %v1490_v54  ;;  %v1712_v56 = vrot.slane %v1622_v3, %v4610_v15  ;;  %v1628_v13 = vrot.slane %v1621_v59, %v4578_v60 }
 0x3b3   :  { %v1578_v31 = vadd.f32 %v1574_v63, %v1550_v32  ;;  %v1652_v16 = vrot.slane %v1621_v59, %v4598_v11  ;;  %v1680_v12 = vrot.slane %v1621_v59, %v4608_v14  ;;  %v4329_v7 = vmov 77  }
 0x3b4   :  { %4088 = vset.pattern.permute.xlu1 %v4329_v7  ;;  %v1605_v18 = vadd.f32 %v1601_v45, %v1577_v28  ;;  %v1602_v54 = vmul.f32 %v5631_v44, %v1588_v30  ;;  %v1646_v23 = vmul.f32 %v5592_v21, %v1632_v51  ;;  %v1670_v40 = vmul.f32 %v5594_v1, %v1656_v36  ;;  %v7304_v28 = vld [vmem:[#allocation17_spill] sm:$0xff]  ;;  %v7305_v7 = vld [vmem:[#allocation18_spill] sm:$0xff] }
 0x3b5   :  { %v1614_v5 = vpop.permute.xlu1 %1613  ;;  %2853 = vperm.xlu1 %4088, %v5548_v50   ;;  %v1698_v32 = vmul.f32 %v5598_v27, %v1684_v9  ;;  %v1726_v3 = vmul.f32 %v5615_v34, %v1712_v56  ;;  %v1645_v63 = vmul.f32 %v5592_v21, %v1628_v13  ;;  %v1669_v22 = vmul.f32 %v5594_v1, %v1652_v16 }
 0x3b6   :  { %v1674_v4 = vadd.f32 %v1670_v40, %v1646_v23  ;;  %v1708_v45 = vrot.slane %v1621_v59, %v4610_v15  ;;  %v1499_v30 = vmul.f32 %v1494_v29, %v7304_v28  ;;  %v1500_v51 = vmul.f32 %v1493_v20, %v7305_v7 }
 0x3b7   :  { %v1606_v41 = vadd.f32 %v1602_v54, %v1578_v31  ;;  %v1673_v36 = vadd.f32 %v1669_v22, %v1645_v63  ;;  %v1697_v38 = vmul.f32 %v5598_v27, %v1680_v12  ;;  %v1618_v9 = vsel %vm341_vm1, %v1612_v39, %v1614_v5  ;;  %v5872_v12 = vpop.permute.xlu0 %1743 }
 0x3b8   :  { %v1702_v46 = vadd.f32 %v1698_v32, %v1674_v4  ;;  %v1725_v56 = vmul.f32 %v5615_v34, %v1708_v45  ;;  %v1512_v13 = vrot.slane %v1499_v30, %v4578_v60  ;;  %v1516_v40 = vrot.slane %v1500_v51, %v4578_v60 }
 0x3b9   :  { %v5867_v16 = vpop.permute.xlu1 %1739  ;;  %v4330_v59 = vmov 78   ;;  %v1701_v29 = vadd.f32 %v1697_v38, %v1673_v36  ;;  %v1536_v20 = vrot.slane %v1499_v30, %v4598_v11  ;;  %v1540_v22 = vrot.slane %v1500_v51, %v4598_v11 }
 0x3ba   :  { %4090 = vset.pattern.permute.xlu1 %v4330_v59  ;;  %v1564_v31 = vrot.slane %v1499_v30, %v4608_v14  ;;  %v1730_v39 = vadd.f32 %v1726_v3, %v1702_v46  ;;  %v1523_v4 = vmul.f32 %v5588_v35, %v1512_v13  ;;  %v1524_v54 = vmul.f32 %v5588_v35, %v1516_v40  ;;  %v7306_v40 = vld [vmem:[#allocation20_spill] sm:$0xff] }
 0x3bb   :  { %2881 = vperm.xlu1 %4090, %v5548_v50   ;;  %v1568_v23 = vrot.slane %v1500_v51, %v4608_v14  ;;  %v1729_v32 = vadd.f32 %v1725_v56, %v1701_v29  ;;  %v1547_v38 = vmul.f32 %v5590_v6, %v1536_v20  ;;  %v1548_v63 = vmul.f32 %v5590_v6, %v1540_v22 }
 0x3bc   :  { %v1617_v45 = vsel %vm341_vm1, %v1614_v5, %v5814_v26  ;;  %v5883_v36 = vadd.f32 %v1730_v39, %v1606_v41  ;;  %v1575_v59 = vmul.f32 %v5596_v62, %v1564_v31  ;;  %v1592_v46 = vrot.slane %v1499_v30, %v4610_v15  ;;  %v7307_v30 = vld [vmem:[#allocation21_spill] sm:$0xff] }
 0x3bd   :  { %v1748_v35 = vsel %vm470_vm2, %v5872_v12, %v5848_v55  ;;  %v1742_v3 = vpop.permute.xlu1 %1741  ;;  %v1551_v56 = vadd.f32 %v1547_v38, %v1523_v4  ;;  %v1552_v13 = vadd.f32 %v1548_v63, %v1524_v54  ;;  %v1596_v6 = vrot.slane %v1500_v51, %v4610_v15  ;;  %v7308_v51 = vld [vmem:[#allocation19_spill] sm:$0xff] }
 0x3be   :  { %v1623_v29 = vmul.f32 %v1618_v9, %v7306_v40  ;;  %v4331_v20 = vmov 81   ;;  %v5893_v41 = vadd.f32 %v1729_v32, %v1605_v18  ;;  %v1576_v26 = vmul.f32 %v5596_v62, %v1568_v23 }
 0x3bf   :  { %4092 = vset.pattern.permute.xlu1 %v4331_v20  ;;  %v1603_v5 = vmul.f32 %v5631_v44, %v1592_v46  ;;  %v1624_v22 = vmul.f32 %v1617_v45, %v7307_v30  ;;  %v1579_v31 = vadd.f32 %v1575_v59, %v1551_v56  ;;  %v1749_v54 = vmul.f32 %v1748_v35, %v7308_v51  ;;  %v5909_v59 = vpop.permute.xlu0 %1871 }
 0x3c0   :  { %2981 = vperm.xlu1 %4092, %v5548_v50   ;;  %v1636_v39 = vrot.slane %v1623_v29, %v4578_v60  ;;  %v1660_v4 = vrot.slane %v1623_v29, %v4598_v11  ;;  %v1688_v32 = vrot.slane %v1623_v29, %v4608_v14  ;;  %v1580_v23 = vadd.f32 %v1576_v26, %v1552_v13 }
 0x3c1   :  { %v1640_v9 = vrot.slane %v1624_v22, %v4578_v60  ;;  %v1664_v18 = vrot.slane %v1624_v22, %v4598_v11  ;;  %v1692_v62 = vrot.slane %v1624_v22, %v4608_v14  ;;  %v1604_v38 = vmul.f32 %v5631_v44, %v1596_v6  ;;  %v1866_v40 = vpop.permute.xlu1 %1865 }
 0x3c2   :  { %v1647_v63 = vmul.f32 %v5592_v21, %v1636_v39  ;;  %v1671_v45 = vmul.f32 %v5594_v1, %v1660_v4  ;;  %v1607_v46 = vadd.f32 %v1603_v5, %v1579_v31  ;;  %v1699_v20 = vmul.f32 %v5598_v27, %v1688_v32 }
 0x3c3   :  { %v1648_v35 = vmul.f32 %v5592_v21, %v1640_v9  ;;  %v1672_v56 = vmul.f32 %v5594_v1, %v1664_v18  ;;  %v4332_v30 = vmov 79   ;;  %v1716_v13 = vrot.slane %v1623_v29, %v4610_v15  ;;  %v5937_v32 = vpop.permute.xlu0 %2107 }
 0x3c4   :  { %4094 = vset.pattern.permute.xlu1 %v4332_v30  ;;  %v1675_v28 = vadd.f32 %v1671_v45, %v1647_v63  ;;  %v1720_v44 = vrot.slane %v1624_v22, %v4610_v15  ;;  %v1756_v6 = vrot.slane %v1749_v54, %v4578_v60  ;;  %v1700_v5 = vmul.f32 %v5598_v27, %v1692_v62  ;;  %v7309_v63 = vld [vmem:[#allocation25_spill] sm:$0xff] }
 0x3c5   :  { %2909 = vperm.xlu1 %4094, %v5548_v50   ;;  %v1676_v26 = vadd.f32 %v1672_v56, %v1648_v35  ;;  %v1780_v21 = vrot.slane %v1749_v54, %v4598_v11  ;;  %v1808_v1 = vrot.slane %v1749_v54, %v4608_v14  ;;  %v1727_v39 = vmul.f32 %v5615_v34, %v1716_v13  ;;  %v7310_v35 = vld [vmem:[#allocation26_spill] sm:$0xff] }
 0x3c6   :  { %v1703_v31 = vadd.f32 %v1699_v20, %v1675_v28  ;;  %v1773_v30 = vmul.f32 %v5627_v8, %v1756_v6  ;;  %v1836_v29 = vrot.slane %v1749_v54, %v4610_v15  ;;  %v1728_v22 = vmul.f32 %v5615_v34, %v1720_v44  ;;  %v5941_v20 = vpop.permute.xlu1 %1867 }
 0x3c7   :  { %v1704_v4 = vadd.f32 %v1700_v5, %v1676_v26  ;;  %v1797_v9 = vmul.f32 %v5600_v49, %v1780_v21  ;;  %v1825_v50 = vmul.f32 %v5617_v47, %v1808_v1  ;;  %v1747_v27 = vsel %vm470_vm2, %v5848_v55, %v5867_v16 }
 0x3c8   :  { %v1731_v18 = vadd.f32 %v1727_v39, %v1703_v31  ;;  %v1745_v28 = vsel %vm470_vm2, %v1742_v3, %v5872_v12  ;;  %v1746_v54 = vsel %vm470_vm2, %v5867_v16, %v1742_v3  ;;  %v1750_v45 = vmul.f32 %v1747_v27, %v7309_v63  ;;  %v7311_v12 = vld [vmem:[#allocation27_spill] sm:$0xff] }
 0x3c9   :  { %v1732_v34 = vadd.f32 %v1728_v22, %v1704_v4  ;;  %v1801_v62 = vadd.f32 %v1797_v9, %v1773_v30  ;;  %v1751_v56 = vmul.f32 %v1746_v54, %v7310_v35  ;;  %v1608_v13 = vadd.f32 %v1604_v38, %v1580_v23 }
 0x3ca   :  { %v5943_v55 = vadd.f32 %v1731_v18, %v1607_v46  ;;  %v1853_v44 = vmul.f32 %v5639_v58, %v1836_v29  ;;  %v1752_v6 = vmul.f32 %v1745_v28, %v7311_v12  ;;  %v1760_v16 = vrot.slane %v1750_v45, %v4578_v60  ;;  %v1870_v54 = vpop.permute.xlu1 %1869 }
 0x3cb   :  { %v1829_v26 = vadd.f32 %v1825_v50, %v1801_v62  ;;  %v1784_v3 = vrot.slane %v1750_v45, %v4598_v11  ;;  %v1876_v5 = vsel %vm599_vm3, %v5909_v59, %v1866_v40  ;;  %v1812_v21 = vrot.slane %v1750_v45, %v4608_v14  ;;  %v5964_v50 = vpop.permute.xlu0 %2111 }
 0x3cc   :  { %v1764_v1 = vrot.slane %v1751_v56, %v4578_v60  ;;  %v1768_v23 = vrot.slane %v1752_v6, %v4578_v60  ;;  %v1875_v38 = vsel %vm599_vm3, %v1866_v40, %v5941_v20  ;;  %v1736_v46 = vadd.f32 %v1732_v34, %v1608_v13 }
 0x3cd   :  { %v1774_v31 = vmul.f32 %v5627_v8, %v1760_v16  ;;  %v1798_v39 = vmul.f32 %v5600_v49, %v1784_v3  ;;  %v1788_v30 = vrot.slane %v1751_v56, %v4598_v11  ;;  %v1857_v29 = vadd.f32 %v1853_v44, %v1829_v26  ;;  %v7312_v3 = vld [vmem:[#allocation28_spill] sm:$0xff] }
 0x3ce   :  { %v1826_v4 = vmul.f32 %v5617_v47, %v1812_v21  ;;  %v1840_v22 = vrot.slane %v1750_v45, %v4610_v15  ;;  %v1775_v9 = vmul.f32 %v5627_v8, %v1764_v1  ;;  %v1776_v27 = vmul.f32 %v5627_v8, %v1768_v23 }
 0x3cf   :  { %v1802_v18 = vadd.f32 %v1798_v39, %v1774_v31  ;;  %v1792_v40 = vrot.slane %v1752_v6, %v4598_v11  ;;  %v1799_v28 = vmul.f32 %v5600_v49, %v1788_v30  ;;  %v1816_v34 = vrot.slane %v1751_v56, %v4608_v14 }
 0x3d0   :  { %v1820_v62 = vrot.slane %v1752_v6, %v4608_v14  ;;  %v1844_v13 = vrot.slane %v1751_v56, %v4610_v15  ;;  %v1848_v45 = vrot.slane %v1752_v6, %v4610_v15  ;;  %v1877_v21 = vmul.f32 %v1876_v5, %v7312_v3  ;;  %v7313_v5 = vld [vmem:[#allocation29_spill] sm:$0xff] }
 0x3d1   :  { %v1830_v44 = vadd.f32 %v1826_v4, %v1802_v18  ;;  %v1800_v26 = vmul.f32 %v5600_v49, %v1792_v40  ;;  %v1803_v16 = vadd.f32 %v1799_v28, %v1775_v9  ;;  %v1854_v8 = vmul.f32 %v5639_v58, %v1840_v22  ;;  %v5984_v22 = vpop.permute.xlu0 %2233 }
 0x3d2   :  { %v1827_v1 = vmul.f32 %v5617_v47, %v1816_v34  ;;  %v1828_v23 = vmul.f32 %v5617_v47, %v1820_v62  ;;  %v1855_v31 = vmul.f32 %v5639_v58, %v1844_v13  ;;  %v1856_v30 = vmul.f32 %v5639_v58, %v1848_v45  ;;  %v2106_v58 = vpop.permute.xlu1 %2105 }
 0x3d3   :  { %v1804_v39 = vadd.f32 %v1800_v26, %v1776_v27  ;;  %v1884_v56 = vrot.slane %v1877_v21, %v4578_v60  ;;  %v1908_v6 = vrot.slane %v1877_v21, %v4598_v11  ;;  %v1858_v4 = vadd.f32 %v1854_v8, %v1830_v44 }
 0x3d4   :  { %v1831_v49 = vadd.f32 %v1827_v1, %v1803_v16  ;;  %v1936_v9 = vrot.slane %v1877_v21, %v4608_v14  ;;  %v1878_v18 = vmul.f32 %v1875_v38, %v7313_v5  ;;  %v1964_v27 = vrot.slane %v1877_v21, %v4610_v15 }
 0x3d5   :  { %v1832_v40 = vadd.f32 %v1828_v23, %v1804_v39  ;;  %v1901_v47 = vmul.f32 %v5635_v19, %v1884_v56  ;;  %v1925_v28 = vmul.f32 %v5619_v52, %v1908_v6  ;;  %v1861_v34 = vadd.f32 %v1857_v29, %v5893_v41  ;;  %v7314_v6 = vld [vmem:[#allocation34_spill] sm:$0xff] }
 0x3d6   :  { %v1859_v62 = vadd.f32 %v1855_v31, %v1831_v49  ;;  %v1953_v13 = vmul.f32 %v5621_v25, %v1936_v9  ;;  %v1888_v45 = vrot.slane %v1878_v18, %v4578_v60  ;;  %v1912_v38 = vrot.slane %v1878_v18, %v4598_v11  ;;  %v6012_v49 = vpop.permute.xlu0 %2237  ;;  %v7315_v9 = vld [vmem:[#allocation33_spill] sm:$0xff] }
 0x3d7   :  { %v1860_v44 = vadd.f32 %v1856_v30, %v1832_v40  ;;  %v1929_v26 = vadd.f32 %v1925_v28, %v1901_v47  ;;  %v1940_v16 = vrot.slane %v1878_v18, %v4608_v14  ;;  %v1862_v8 = vadd.f32 %v1858_v4, %v5883_v36  ;;  %v2110_v40 = vpop.permute.xlu1 %2109 }
 0x3d8   :  { %v1902_v1 = vmul.f32 %v5635_v19, %v1888_v45  ;;  %v1968_v21 = vrot.slane %v1878_v18, %v4610_v15  ;;  %v1873_v41 = vsel %vm599_vm3, %v1870_v54, %v5909_v59  ;;  %v6001_v29 = vadd.f32 %v1859_v62, %v5943_v55 }
 0x3d9   :  { %v1957_v23 = vadd.f32 %v1953_v13, %v1929_v26  ;;  %v1981_v31 = vmul.f32 %v5647_v43, %v1964_v27  ;;  %v1926_v39 = vmul.f32 %v5619_v52, %v1912_v38  ;;  %v6005_v30 = vadd.f32 %v1860_v44, %v1736_v46 }
 0x3da   :  { %v1954_v36 = vmul.f32 %v5621_v25, %v1940_v16  ;;  %v1874_v56 = vsel %vm599_vm3, %v5941_v20, %v1870_v54  ;;  %v1880_v4 = vmul.f32 %v1873_v41, %v7314_v6  ;;  %v1982_v55 = vmul.f32 %v5647_v43, %v1968_v21 }
 0x3db   :  { %v1930_v59 = vadd.f32 %v1926_v39, %v1902_v1  ;;  %v1879_v18 = vmul.f32 %v1874_v56, %v7315_v9  ;;  %v2115_v46 = vsel %vm920_vm4, %v2106_v58, %v5937_v32  ;;  %v1985_v47 = vadd.f32 %v1981_v31, %v1957_v23 }
 0x3dc   :  { %v1896_v28 = vrot.slane %v1880_v4, %v4578_v60  ;;  %v1920_v27 = vrot.slane %v1880_v4, %v4598_v11  ;;  %v1948_v20 = vrot.slane %v1880_v4, %v4608_v14  ;;  %v1976_v45 = vrot.slane %v1880_v4, %v4610_v15  ;;  %v6037_v4 = vpop.permute.xlu0 %2365 }
 0x3dd   :  { %v1958_v54 = vadd.f32 %v1954_v36, %v1930_v59  ;;  %v1892_v62 = vrot.slane %v1879_v18, %v4578_v60  ;;  %v1916_v13 = vrot.slane %v1879_v18, %v4598_v11  ;;  %v1944_v38 = vrot.slane %v1879_v18, %v4608_v14 }
 0x3de   :  { %v1904_v44 = vmul.f32 %v5635_v19, %v1896_v28  ;;  %v1928_v26 = vmul.f32 %v5619_v52, %v1920_v27  ;;  %v2116_v16 = vsel %vm920_vm4, %v5964_v50, %v2106_v58  ;;  %v1956_v41 = vmul.f32 %v5621_v25, %v1948_v20 }
 0x3df   :  { %v1903_v1 = vmul.f32 %v5635_v19, %v1892_v62  ;;  %v1927_v21 = vmul.f32 %v5619_v52, %v1916_v13  ;;  %v1972_v23 = vrot.slane %v1879_v18, %v4610_v15  ;;  %v1986_v31 = vadd.f32 %v1982_v55, %v1958_v54  ;;  %v2236_v52 = vpop.permute.xlu1 %2235 }
 0x3e0   :  { %v1932_v39 = vadd.f32 %v1928_v26, %v1904_v44  ;;  %v1955_v36 = vmul.f32 %v5621_v25, %v1944_v38  ;;  %v2117_v56 = vmul.f32 %v2115_v46, %v7257_v0  ;;  %v1984_v58 = vmul.f32 %v5647_v43, %v1976_v45 }
 0x3e1   :  { %v1931_v59 = vadd.f32 %v1927_v21, %v1903_v1  ;;  %v1983_v28 = vmul.f32 %v5647_v43, %v1972_v23  ;;  %v2120_v19 = vmul.f32 %v2116_v16, %v7258_v37  ;;  %v6048_v13 = vadd.f32 %v1985_v47, %v1861_v34  ;;  %v6059_v47 = vpop.permute.xlu0 %2493 }
 0x3e2   :  { %v1960_v27 = vadd.f32 %v1956_v41, %v1932_v39  ;;  %v2124_v20 = vrot.slane %v2117_v56, %v4578_v60  ;;  %v2148_v55 = vrot.slane %v2117_v56, %v4598_v11  ;;  %v2176_v18 = vrot.slane %v2117_v56, %v4608_v14 }
 0x3e3   :  { %v1959_v25 = vadd.f32 %v1955_v36, %v1931_v59  ;;  %v2136_v46 = vrot.slane %v2120_v19, %v4578_v60  ;;  %v2160_v54 = vrot.slane %v2120_v19, %v4598_v11  ;;  %v2188_v62 = vrot.slane %v2120_v19, %v4608_v14  ;;  %v2240_v59 = vpop.permute.xlu1 %2239 }
 0x3e4   :  { %v1988_v43 = vadd.f32 %v1984_v58, %v1960_v27  ;;  %v2141_v45 = vmul.f32 %v5629_v2, %v2124_v20  ;;  %v2165_v44 = vmul.f32 %v5651_v33, %v2148_v55  ;;  %v6052_v26 = vadd.f32 %v1986_v31, %v1862_v8 }
 0x3e5   :  { %v1987_v38 = vadd.f32 %v1983_v28, %v1959_v25  ;;  %v2144_v16 = vmul.f32 %v5629_v2, %v2136_v46  ;;  %v2168_v1 = vmul.f32 %v5651_v33, %v2160_v54  ;;  %v2193_v41 = vmul.f32 %v5655_v53, %v2176_v18 }
 0x3e6   :  { %v2169_v21 = vadd.f32 %v2165_v44, %v2141_v45  ;;  %v2204_v23 = vrot.slane %v2117_v56, %v4610_v15  ;;  %v2216_v34 = vrot.slane %v2120_v19, %v4610_v15  ;;  %v2196_v36 = vmul.f32 %v5655_v53, %v2188_v62 }
 0x3e7   :  { %v2172_v39 = vadd.f32 %v2168_v1, %v2144_v16  ;;  %v2113_v8 = vsel %vm920_vm4, %v2110_v40, %v5964_v50  ;;  %v2114_v31 = vsel %vm920_vm4, %v5937_v32, %v2110_v40  ;;  %v6069_v28 = vadd.f32 %v1987_v38, %v6001_v29  ;;  %v6095_v38 = vpop.permute.xlu0 %2495 }
 0x3e8   :  { %v6072_v56 = vadd.f32 %v1988_v43, %v6005_v30  ;;  %v2197_v58 = vadd.f32 %v2193_v41, %v2169_v21  ;;  %v2118_v19 = vmul.f32 %v2114_v31, %v7261_v42  ;;  %v2221_v20 = vmul.f32 %v5645_v24, %v2204_v23  ;;  %v6102_v23 = vpop.permute.xlu1 %2361  ;;  %v7327_v42 = vld [vmem:[#allocation22_spill] sm:$0xff] }
 0x3e9   :  { %v2200_v27 = vadd.f32 %v2196_v36, %v2172_v39  ;;  %v2224_v55 = vmul.f32 %v5645_v24, %v2216_v34  ;;  %v2119_v50 = vmul.f32 %v2113_v8, %v7263_v48  ;;  %v2242_v30 = vsel %vm1049_vm5, %v2236_v52, %v6012_v49 }
 0x3ea   :  { %v2128_v18 = vrot.slane %v2118_v19, %v4578_v60  ;;  %v2152_v32 = vrot.slane %v2118_v19, %v4598_v11  ;;  %v2180_v29 = vrot.slane %v2118_v19, %v4608_v14  ;;  %v2243_v54 = vsel %vm1049_vm5, %v5984_v22, %v2236_v52 }
 0x3eb   :  { %v2132_v40 = vrot.slane %v2119_v50, %v4578_v60  ;;  %v2156_v25 = vrot.slane %v2119_v50, %v4598_v11  ;;  %v2184_v46 = vrot.slane %v2119_v50, %v4608_v14  ;;  %v6090_v62 = vadd.f32 %v2221_v20, %v2197_v58 }
 0x3ec   :  { %v2142_v43 = vmul.f32 %v5629_v2, %v2128_v18  ;;  %v2166_v45 = vmul.f32 %v5651_v33, %v2152_v32  ;;  %v2208_v44 = vrot.slane %v2118_v19, %v4610_v15  ;;  %v6097_v16 = vadd.f32 %v2224_v55, %v2200_v27 }
 0x3ed   :  { %v2143_v1 = vmul.f32 %v5629_v2, %v2132_v40  ;;  %v2167_v21 = vmul.f32 %v5651_v33, %v2156_v25  ;;  %v2194_v41 = vmul.f32 %v5655_v53, %v2180_v29  ;;  %v2195_v34 = vmul.f32 %v5655_v53, %v2184_v46 }
 0x3ee   :  { %v2170_v52 = vadd.f32 %v2166_v45, %v2142_v43  ;;  %v2245_v39 = vmul.f32 %v2243_v54, %v7271_v10  ;;  %v2246_v36 = vmul.f32 %v2242_v30, %v7272_v57  ;;  %v2212_v31 = vrot.slane %v2119_v50, %v4610_v15  ;;  %v7316_v30 = vld [vmem:[#allocation23_spill] sm:$0xff] }
 0x3ef   :  { %v2171_v8 = vadd.f32 %v2167_v21, %v2143_v1  ;;  %v2222_v58 = vmul.f32 %v5645_v24, %v2208_v44  ;;  %v2497_v2 = vsel %vm1307_vm6, %v6059_v47, %v6095_v38  ;;  %v2241_v50 = vsel %vm1049_vm5, %v6012_v49, %v2240_v59  ;;  %v7317_v45 = vld [vmem:[#allocation31_spill] sm:$0xff]  ;;  %v2364_v1 = vpop.permute.xlu1 %2363 }
 0x3f0   :  { %v2198_v33 = vadd.f32 %v2194_v41, %v2170_v52  ;;  %v2252_v19 = vrot.slane %v2245_v39, %v4578_v60  ;;  %v2256_v27 = vrot.slane %v2246_v36, %v4578_v60  ;;  %v2276_v53 = vrot.slane %v2245_v39, %v4598_v11  ;;  %v4134_v52 = vld [vmem:[#allocation7 + $0x30] ss:$0 sm:$0xff] }
 0x3f1   :  { %v2199_v20 = vadd.f32 %v2195_v34, %v2171_v8  ;;  %v2280_v55 = vrot.slane %v2246_v36, %v4598_v11  ;;  %v2304_v18 = vrot.slane %v2245_v39, %v4608_v14  ;;  %v2308_v25 = vrot.slane %v2246_v36, %v4608_v14 }
 0x3f2   :  { %v2269_v32 = vmul.f32 %v5637_v17, %v2252_v19  ;;  %v2270_v29 = vmul.f32 %v5637_v17, %v2256_v27  ;;  %v2293_v40 = vmul.f32 %v7316_v30, %v2276_v53  ;;  %v2223_v46 = vmul.f32 %v5645_v24, %v2212_v31  ;;  %v7318_v31 = vld [vmem:[#allocation52_spill] sm:$0xff] }
 0x3f3   :  { %v6126_v54 = vadd.f32 %v2222_v58, %v2198_v33  ;;  %v2294_v43 = vmul.f32 %v7316_v30, %v2280_v55  ;;  %v2321_v44 = vmul.f32 %v7317_v45, %v2304_v18  ;;  %v2332_v49 = vrot.slane %v2245_v39, %v4610_v15 }
 0x3f4   :  { %v2297_v21 = vadd.f32 %v2293_v40, %v2269_v32  ;;  %v2336_v41 = vrot.slane %v2246_v36, %v4610_v15  ;;  %v6132_v34 = vmul.f32 %v4134_v52, %v2497_v2  ;;  %v6134_v8 = vadd.f32 %v2223_v46, %v2199_v20  ;;  %v7319_v2 = vld [vmem:[#allocation24_spill] sm:$0xff] }
 0x3f5   :  { %v2298_v19 = vadd.f32 %v2294_v43, %v2270_v29  ;;  %v2244_v24 = vsel %vm1049_vm5, %v2240_v59, %v5984_v22  ;;  %v2247_v58 = vmul.f32 %v2241_v50, %v7318_v31  ;;  %v2322_v33 = vmul.f32 %v7317_v45, %v2308_v25  ;;  %v7320_v59 = vld [vmem:[#allocation54_spill] sm:$0xff] }
 0x3f6   :  { %v6141_v27 = vadd.f32 %v2321_v44, %v2297_v21  ;;  %v2516_v39 = vrot.slane %v6132_v34, %v4578_v60  ;;  %v2370_v36 = vsel %vm1178_vm7, %v2364_v1, %v6037_v4  ;;  %v6149_v53 = vmul.f32 %v7319_v2, %v2332_v49  ;;  %v2368_v44 = vpop.permute.xlu1 %2367  ;;  %v7321_v21 = vld [vmem:[#allocation39_spill] sm:$0xff] }
 0x3f7   :  { %v6152_v20 = vmul.f32 %v7319_v2, %v2336_v41  ;;  %v2540_v22 = vrot.slane %v6132_v34, %v4598_v11  ;;  %v2248_v55 = vmul.f32 %v2244_v24, %v7320_v59  ;;  %v6157_v18 = vadd.f32 %v2322_v33, %v2298_v19  ;;  %v7322_v24 = vld [vmem:[#allocation35_spill] sm:$0xff] }
 0x3f8   :  { %v2260_v50 = vrot.slane %v2247_v58, %v4578_v60  ;;  %v2284_v32 = vrot.slane %v2247_v58, %v4598_v11  ;;  %v2312_v29 = vrot.slane %v2247_v58, %v4608_v14  ;;  %v6168_v49 = vmul.f32 %v7321_v21, %v2516_v39 }
 0x3f9   :  { %v2264_v25 = vrot.slane %v2248_v55, %v4578_v60  ;;  %v2288_v46 = vrot.slane %v2248_v55, %v4598_v11  ;;  %v2316_v43 = vrot.slane %v2248_v55, %v4608_v14  ;;  %v2340_v19 = vrot.slane %v2247_v58, %v4610_v15 }
 0x3fa   :  { %v2271_v41 = vmul.f32 %v5637_v17, %v2260_v50  ;;  %v2295_v52 = vmul.f32 %v7316_v30, %v2284_v32  ;;  %v6174_v33 = vmul.f32 %v7322_v24, %v2540_v22  ;;  %v2344_v31 = vrot.slane %v2248_v55, %v4610_v15  ;;  %v7323_v50 = vld [vmem:[#allocation56_spill] sm:$0xff] }
 0x3fb   :  { %v2272_v40 = vmul.f32 %v5637_v17, %v2264_v25  ;;  %v2296_v59 = vmul.f32 %v7316_v30, %v2288_v46  ;;  %v2323_v10 = vmul.f32 %v7317_v45, %v2312_v29  ;;  %v2371_v39 = vsel %vm1178_vm7, %v6102_v23, %v2364_v1  ;;  %v7324_v17 = vld [vmem:[#allocation55_spill] sm:$0xff] }
 0x3fc   :  { %v2299_v57 = vadd.f32 %v2295_v52, %v2271_v41  ;;  %v2374_v32 = vmul.f32 %v2370_v36, %v7323_v50  ;;  %v2324_v58 = vmul.f32 %v7317_v45, %v2316_v43  ;;  %v6186_v22 = vmul.f32 %v7319_v2, %v2340_v19  ;;  %v7326_v41 = vld [vmem:[#allocation36_spill] sm:$0xff] }
 0x3fd   :  { %v2300_v48 = vadd.f32 %v2296_v59, %v2272_v40  ;;  %v2373_v25 = vmul.f32 %v2371_v39, %v7324_v17  ;;  %v6190_v30 = vmul.f32 %v7319_v2, %v2344_v31  ;;  %v2369_v59 = vsel %vm1178_vm7, %v6037_v4, %v2368_v44  ;;  %v2490_v40 = vpop.permute.xlu1 %2489  ;;  %v7325_v31 = vld [vmem:[#allocation12_spill] sm:$0xff] }
 0x3fe   :  { %v2384_v55 = vrot.slane %v2374_v32, %v4578_v60  ;;  %v2408_v29 = vrot.slane %v2374_v32, %v4598_v11  ;;  %v2436_v46 = vrot.slane %v2374_v32, %v4608_v14  ;;  %v6201_v43 = vadd.f32 %v2323_v10, %v2299_v57  ;;  %v7328_v57 = vld [vmem:[#allocation57_spill] sm:$0xff] }
 0x3ff   :  { %v2380_v1 = vrot.slane %v2373_v25, %v4578_v60  ;;  %v2404_v36 = vrot.slane %v2373_v25, %v4598_v11  ;;  %v2432_v45 = vrot.slane %v2373_v25, %v4608_v14  ;;  %v2460_v19 = vrot.slane %v2373_v25, %v4610_v15  ;;  %v7329_v25 = vld [vmem:[#allocation40_spill] sm:$0xff] }
 0x400   :  { %v2398_v2 = vmul.f32 %v7325_v31, %v2384_v55  ;;  %v2422_v52 = vmul.f32 %v7326_v41, %v2408_v29  ;;  %v6206_v39 = vadd.f32 %v2324_v58, %v2300_v48  ;;  %v2450_v37 = vmul.f32 %v7327_v42, %v2436_v46  ;;  %v7330_v58 = vld [vmem:[#allocation59_spill] sm:$0xff] }
 0x401   :  { %v2397_v17 = vmul.f32 %v7325_v31, %v2380_v1  ;;  %v2421_v50 = vmul.f32 %v7326_v41, %v2404_v36  ;;  %v2449_v0 = vmul.f32 %v7327_v42, %v2432_v45  ;;  %v2464_v4 = vrot.slane %v2374_v32, %v4610_v15 }
 0x402   :  { %v2372_v10 = vsel %vm1178_vm7, %v2368_v44, %v6102_v23  ;;  %v2375_v55 = vmul.f32 %v2369_v59, %v7328_v57  ;;  %v2426_v29 = vadd.f32 %v2422_v52, %v2398_v2  ;;  %v2477_v48 = vmul.f32 %v7329_v25, %v2460_v19  ;;  %v2492_v52 = vpop.permute.xlu1 %2491 }
 0x403   :  { %v2376_v6 = vmul.f32 %v2372_v10, %v7330_v58  ;;  %v2500_v1 = vsel %vm1307_vm6, %v6095_v38, %v2490_v40  ;;  %v2425_v19 = vadd.f32 %v2421_v50, %v2397_v17  ;;  %v2478_v38 = vmul.f32 %v7329_v25, %v2464_v4  ;;  %v4136_v4 = vld [vmem:[#allocation7 + $0x20] ss:$0 sm:$0xff] }
 0x404   :  { %v2388_v46 = vrot.slane %v2375_v55, %v4578_v60  ;;  %v2412_v36 = vrot.slane %v2375_v55, %v4598_v11  ;;  %v2440_v32 = vrot.slane %v2375_v55, %v4608_v14  ;;  %v2468_v45 = vrot.slane %v2375_v55, %v4610_v15 }
 0x405   :  { %v2392_v23 = vrot.slane %v2376_v6, %v4578_v60  ;;  %v2416_v44 = vrot.slane %v2376_v6, %v4598_v11  ;;  %v2444_v59 = vrot.slane %v2376_v6, %v4608_v14  ;;  %v2472_v2 = vrot.slane %v2376_v6, %v4610_v15  ;;  %v4135_v6 = vld [vmem:[#allocation7 + $0x38] ss:$0 sm:$0xff] }
 0x406   :  { %v2399_v10 = vmul.f32 %v7325_v31, %v2388_v46  ;;  %v2423_v58 = vmul.f32 %v7326_v41, %v2412_v36  ;;  %v2451_v9 = vmul.f32 %v7327_v42, %v2440_v32  ;;  %v2479_v5 = vmul.f32 %v7329_v25, %v2468_v45  ;;  %v4137_v36 = vld [vmem:[#allocation7 + $0x28] ss:$0 sm:$0xff]  ;;  %v2603_v63 = vpop.permute.xlu1 %2602 }
 0x407   :  { %v2400_v57 = vmul.f32 %v7325_v31, %v2392_v23  ;;  %v2424_v55 = vmul.f32 %v7326_v41, %v2416_v44  ;;  %v6238_v3 = vmul.f32 %v7327_v42, %v2444_v59  ;;  %v6240_v12 = vmul.f32 %v4135_v6, %v2500_v1 }
 0x408   :  { %v2498_v50 = vsel %vm1307_vm6, %v2492_v52, %v6059_v47  ;;  %v2499_v17 = vsel %vm1307_vm6, %v2490_v40, %v2492_v52  ;;  %v2427_v31 = vadd.f32 %v2423_v58, %v2399_v10  ;;  %v6248_v41 = vmul.f32 %v7329_v25, %v2472_v2  ;;  %v7331_v47 = vld [vmem:[#allocation42_spill] sm:$0xff]  ;;  %v7332_v2 = vld [vmem:[#allocation43_spill] sm:$0xff]  ;;  %v7333_v10 = vld [vmem:[#allocation41_spill] sm:$0xff] }
 0x409   :  { %v2501_v46 = vmul.f32 %v4136_v4, %v2499_v17  ;;  %v2502_v32 = vmul.f32 %v4137_v36, %v2498_v50  ;;  %v2428_v42 = vadd.f32 %v2424_v55, %v2400_v57  ;;  %v2520_v1 = vrot.slane %v6240_v12, %v4578_v60 }
 0x40a   :  { %v2544_v45 = vrot.slane %v6240_v12, %v4598_v11  ;;  %v2103_v23 = vadd.f32 %v7331_v47, %v6069_v28  ;;  %v2572_v57 = vrot.slane %v6240_v12, %v4608_v14  ;;  %v2101_v52 = vadd.f32 %v7332_v2, %v6048_v13 }
 0x40b   :  { %v2508_v40 = vrot.slane %v2501_v46, %v4578_v60  ;;  %v2512_v58 = vrot.slane %v2502_v32, %v4578_v60  ;;  %v2532_v25 = vrot.slane %v2501_v46, %v4598_v11  ;;  %v2536_v44 = vrot.slane %v2502_v32, %v4598_v11 }
 0x40c   :  { %v2560_v59 = vrot.slane %v2501_v46, %v4608_v14  ;;  %v2102_v55 = vadd.f32 %v7333_v10, %v6052_v26  ;;  %v2564_v17 = vrot.slane %v2502_v32, %v4608_v14  ;;  %v2229_v36 = vadd.f32 %v6090_v62, %v2101_v52 }
 0x40d   :  { %v2525_v28 = vmul.f32 %v7321_v21, %v2508_v40  ;;  %v2526_v6 = vmul.f32 %v7321_v21, %v2512_v58  ;;  %v2549_v50 = vmul.f32 %v7322_v24, %v2532_v25  ;;  %v2550_v4 = vmul.f32 %v7322_v24, %v2536_v44 }
 0x40e   :  { %v2230_v47 = vadd.f32 %v6126_v54, %v2102_v55  ;;  %v2231_v35 = vadd.f32 %v6134_v8, %v2103_v23  ;;  %v2353_v13 = vadd.f32 %v6149_v53, %v6141_v27  ;;  %v2354_v26 = vadd.f32 %v6152_v20, %v6157_v18  ;;  %v7334_v20 = vld [vmem:[#allocation38_spill] sm:$0xff] }
 0x40f   :  { %v2355_v40 = vadd.f32 %v6186_v22, %v6201_v43  ;;  %v2453_v58 = vadd.f32 %v2449_v0, %v2425_v19  ;;  %v2454_v25 = vadd.f32 %v2450_v37, %v2426_v29  ;;  %v2455_v2 = vadd.f32 %v2451_v9, %v2427_v31 }
 0x410   :  { %v2528_v44 = vmul.f32 %v7321_v21, %v2520_v1  ;;  %v2552_v62 = vmul.f32 %v7322_v24, %v2544_v45  ;;  %v2588_v54 = vrot.slane %v2501_v46, %v4610_v15  ;;  %v2357_v52 = vadd.f32 %v2353_v13, %v2229_v36  ;;  %v7336_v45 = vld [vmem:[#allocation44_spill] sm:$0xff] }
 0x411   :  { %v2359_v8 = vadd.f32 %v2355_v40, %v2231_v35  ;;  %v2481_v23 = vadd.f32 %v2477_v48, %v2453_v58  ;;  %v2358_v10 = vadd.f32 %v2354_v26, %v2230_v47  ;;  %v2482_v27 = vadd.f32 %v2478_v38, %v2454_v25 }
 0x412   :  { %v2553_v53 = vadd.f32 %v2549_v50, %v2525_v28  ;;  %v2554_v55 = vadd.f32 %v2550_v4, %v2526_v6  ;;  %v2577_v18 = vmul.f32 %v7334_v20, %v2560_v59  ;;  %v2483_v22 = vadd.f32 %v2479_v5, %v2455_v2 }
 0x413   :  { %v2485_v0 = vadd.f32 %v2481_v23, %v2357_v52  ;;  %v2555_v37 = vadd.f32 %v6174_v33, %v6168_v49  ;;  %v2486_v9 = vadd.f32 %v2482_v27, %v2358_v10  ;;  %v2556_v21 = vadd.f32 %v2552_v62, %v2528_v44  ;;  %v6321_v62 = vld [vmem:[#allocation5] sm:$0xf] }
 0x414   :  { %v2578_v24 = vmul.f32 %v7334_v20, %v2564_v17  ;;  %v7335_v35 = vrot.slane %v6132_v34, %v4608_v14  ;;  %v2580_v29 = vmul.f32 %v7334_v20, %v2572_v57  ;;  %v2581_v48 = vadd.f32 %v2577_v18, %v2553_v53 }
 0x415   :  { %v2592_v19 = vrot.slane %v2502_v32, %v4610_v15  ;;  %v2596_v5 = vrot.slane %v6132_v34, %v4610_v15  ;;  %v2600_v49 = vrot.slane %v6240_v12, %v4610_v15  ;;  %v2605_v33 = vmul.f32 %v2603_v63, %v2588_v54 }
 0x416   :  { %v2579_v43 = vmul.f32 %v7334_v20, %v7335_v35  ;;  %v2582_v38 = vadd.f32 %v2578_v24, %v2554_v55  ;;  %v2104_v59 = vadd.f32 %v7336_v45, %v6072_v56  ;;  %v2356_v57 = vadd.f32 %v6190_v30, %v6206_v39 }
 0x417   :  { %v2606_v46 = vmul.f32 %v2603_v63, %v2592_v19  ;;  %v2607_v1 = vmul.f32 %v2603_v63, %v2596_v5  ;;  %v2487_v28 = vadd.f32 %v2483_v22, %v2359_v8  ;;  %v2608_v6 = vmul.f32 %v2603_v63, %v2600_v49 }
 0x418   :  { %v2583_v31 = vadd.f32 %v2579_v43, %v2555_v37  ;;  %v2609_v32 = vadd.f32 %v2605_v33, %v2581_v48  ;;  %v2456_v50 = vadd.f32 %v6238_v3, %v2428_v42  ;;  %v2584_v34 = vadd.f32 %v2580_v29, %v2556_v21 }
 0x419   :  { %v2610_v17 = vadd.f32 %v2606_v46, %v2582_v38  ;;  %v2232_v36 = vadd.f32 %v6097_v16, %v2104_v59  ;;  %v4333_v2 = vmov 82   ;;  %v4334_v44 = vmov 74  }
 0x41a   :  { %v2611_v4 = vadd.f32 %v2607_v1, %v2583_v31  ;;  %v6304_v12 = vadd.f32 %v2609_v32, %v2485_v0  ;;  %v2484_v47 = vadd.f32 %v6248_v41, %v2456_v50  ;;  %v2612_v13 = vadd.f32 %v2608_v6, %v2584_v34  ;;  %4095 = vset.pattern.permute.xlu1 %v4333_v2 }
 0x41b   :  { %v6307_v26 = vadd.f32 %v2610_v17, %v2486_v9  ;;  %v2360_v30 = vadd.f32 %v2356_v57, %v2232_v36  ;;  %4089 = vset.pattern.permute.xlu0 %v4334_v44  ;;  %v4335_v54 = vmov 80   ;;  %v4336_v52 = vmov 75   ;;  %v6361_v36 = vpop.permute.xlu1 %2705 }
 0x41c   :  { %v6309_v56 = vadd.f32 %v2611_v4, %v2487_v28  ;;  %v2617_v63 = vsel %vm1428_vm8, %v6304_v12, 0.0  ;;  %v4337_v8 = vmov 84   ;;  %v4338_v23 = vmov 83  }
 0x41d   :  { %v2488_v39 = vadd.f32 %v2484_v47, %v2360_v30  ;;  %v2618_v3 = vsel %vm1428_vm8, %v6307_v26, 0.0  ;;  %v4339_v5 = vmov 88   ;;  %v4340_v38 = vmov 85  }
 0x41e   :  { %v2619_v42 = vadd.f32 %v2618_v3, %v2617_v63  ;;  %v2620_v16 = vsel %vm1428_vm8, %v6309_v56, 0.0  ;;  %v4341_v31 = vmov 87   ;;  %v4342_v49 = vmov 86  }
 0x41f   :  { %v6315_v40 = vadd.f32 %v2612_v13, %v2488_v39  ;;  %v4343_v33 = vmov 93   ;;  %v4344_v46 = vmov 89   ;;  %v7337_v1 = vmov 1   ;;  %v6363_v47 = vpop.permute.xlu1 %2729 }
 0x420   :  { %v2621_v41 = vadd.f32 %v2620_v16, %v2619_v42  ;;  %v4345_v45 = vmov 90   ;;  %v4346_v59 = vmov 92   ;;  %v4347_v57 = vmov 91  }
 0x421   :  { %v2622_v58 = vsel %vm1428_vm8, %v6315_v40, 0.0  ;;  %v4348_v28 = vmov 96   ;;  %v4349_v6 = vmov 97   ;;  %v4350_v32 = vmov 95  }
 0x422   :  { %v2623_v25 = vadd.f32 %v2622_v58, %v2621_v41  ;;  %v4351_v50 = vmov 98   ;;  %v4352_v34 = vmov 101   ;;  %v4353_v17 = vmov 102  }
 0x423   :  { %v4354_v4 = vmov 105  }
 0x424   :  { %2624 = vadd.xlane.f32.xlu0 %v2623_v25  ;;  %v4139_v25 = vld [vmem:[%s7098_s2] sm:$0xf] }
 0x42d   :  { %v6365_v13 = vpop.permute.xlu1 %2829 }
 0x434   :  { %v6367_v30 = vpop.permute.xlu1 %2853 }
 0x43a   :  { %2757 = vperm.xlu0 %4089, %v6321_v62   ;;  %v6369_v63 = vpop.permute.xlu1 %2881 }
 0x43e   :  { %4091 = vset.pattern.permute.xlu0 %v4335_v54  ;;  %v4140_v54 = vld [vmem:[%s7099_s3] sm:$0xf] }
 0x43f   :  { %2957 = vperm.xlu0 %4091, %v6321_v62   ;;  %v6371_v39 = vpop.permute.xlu1 %2981 }
 0x443   :  { %4093 = vset.pattern.permute.xlu0 %v4336_v52 }
 0x444   :  { %2785 = vperm.xlu0 %4093, %v6321_v62   ;;  %v6373_v3 = vpop.permute.xlu1 %2909 }
 0x448   :  { %4096 = vset.pattern.permute.xlu0 %v4337_v8  ;;  %v4355_v8 = vmov 94  }
 0x449   :  { %3085 = vperm.xlu0 %4096, %v6321_v62  }
 0x44d   :  { %4098 = vset.pattern.permute.xlu0 %v4338_v23  ;;  %v4356_v23 = vmov 106  }
 0x44e   :  { %3037 = vperm.xlu0 %4098, %v6321_v62  }
 0x452   :  { %4100 = vset.pattern.permute.xlu0 %v4339_v5 }
 0x453   :  { %3197 = vperm.xlu0 %4100, %v6321_v62  }
 0x457   :  { %4102 = vset.pattern.permute.xlu0 %v4341_v31 }
 0x458   :  { %3165 = vperm.xlu0 %4102, %v6321_v62  }
 0x45c   :  { %4105 = vset.pattern.permute.xlu0 %v4343_v33 }
 0x45d   :  { %3349 = vperm.xlu0 %4105, %v6321_v62  }
 0x461   :  { %4107 = vset.pattern.permute.xlu0 %v7337_v1 }
 0x4b1   :  { %v2625_v10 = vpop.xlane.xlu0 %2624 }
 0x4b2   :  { %v6328_v27 = vmul.f32 0.001953125, %v2625_v10  ;;  %v4357_v10 = vmov 100  }
 0x4b4   :  { %v2627_v53 = vsub.f32 %v6304_v12, %v6328_v27  ;;  %v2628_v55 = vsub.f32 %v6307_v26, %v6328_v27  ;;  %v2629_v20 = vsub.f32 %v6309_v56, %v6328_v27  ;;  %v2630_v18 = vsub.f32 %v6315_v40, %v6328_v27 }
 0x4b6   :  { %v2631_v22 = vmul.f32 %v2627_v53, %v2627_v53  ;;  %v2632_v0 = vmul.f32 %v2628_v55, %v2628_v55  ;;  %v2633_v37 = vmul.f32 %v2629_v20, %v2629_v20  ;;  %v2634_v9 = vmul.f32 %v2630_v18, %v2630_v18 }
 0x4b7   :  { %v4358_v53 = vmov 99   ;;  %v4360_v55 = vmov 103   ;;  %v7338_v20 = vmov 2  }
 0x4b8   :  { %v2635_v21 = vsel %vm1428_vm8, %v2631_v22, 0.0  ;;  %v2636_v24 = vsel %vm1428_vm8, %v2632_v0, 0.0  ;;  %v2638_v43 = vsel %vm1428_vm8, %v2633_v37, 0.0  ;;  %v2640_v48 = vsel %vm1428_vm8, %v2634_v9, 0.0 }
 0x4b9   :  { %v2637_v35 = vadd.f32 %v2636_v24, %v2635_v21  ;;  %v6401_v24 = vpop.permute.xlu0 %2757 }
 0x4bb   :  { %v2639_v29 = vadd.f32 %v2638_v43, %v2637_v35 }
 0x4bd   :  { %v2641_v19 = vadd.f32 %v2640_v48, %v2639_v29  ;;  %v4361_v29 = vmov 107  }
 0x4be   :  { %v6405_v43 = vpop.permute.xlu0 %2957 }
 0x4bf   :  { %2642 = vadd.xlane.f32.xlu1 %v2641_v19 }
 0x4c3   :  { %v6409_v19 = vpop.permute.xlu0 %2785 }
 0x4d0   :  { %3009 = vperm.xlu1 %4095, %v6321_v62  }
 0x4d4   :  { %4097 = vset.pattern.permute.xlu1 %v4340_v38  ;;  %v6413_v38 = vpop.permute.xlu0 %3085 }
 0x4d5   :  { %3109 = vperm.xlu1 %4097, %v6321_v62  }
 0x4d9   :  { %4099 = vset.pattern.permute.xlu1 %v4342_v49  ;;  %v6417_v49 = vpop.permute.xlu0 %3037 }
 0x4da   :  { %3137 = vperm.xlu1 %4099, %v6321_v62  }
 0x4de   :  { %4101 = vset.pattern.permute.xlu1 %v4344_v46  ;;  %v6421_v46 = vpop.permute.xlu0 %3197 }
 0x4df   :  { %3221 = vperm.xlu1 %4101, %v6321_v62  }
 0x4e3   :  { %4103 = vset.pattern.permute.xlu1 %v4345_v45  ;;  %v6425_v45 = vpop.permute.xlu0 %3165 }
 0x4e4   :  { %3249 = vperm.xlu1 %4103, %v6321_v62  }
 0x4e8   :  { %4104 = vset.pattern.permute.xlu1 %v4346_v59 }
 0x4e9   :  { %3325 = vperm.xlu1 %4104, %v6321_v62  }
 0x4ed   :  { %4106 = vset.pattern.permute.xlu1 %v4347_v57  ;;  %v6429_v57 = vpop.permute.xlu0 %3349 }
 0x4ee   :  { %3277 = vperm.xlu1 %4106, %v6321_v62  }
 0x4f2   :  { %4109 = vset.pattern.permute.xlu1 %v4348_v28 }
 0x4f3   :  { %3453 = vperm.xlu1 %4109, %v6321_v62  }
 0x4f7   :  { %4110 = vset.pattern.permute.xlu1 %v4349_v6 }
 0x4f8   :  { %3477 = vperm.xlu1 %4110, %v6321_v62  }
 0x4fc   :  { %4111 = vset.pattern.permute.xlu1 %v4350_v32 }
 0x4fd   :  { %3405 = vperm.xlu1 %4111, %v6321_v62  }
 0x501   :  { %4112 = vset.pattern.permute.xlu1 %v4351_v50 }
 0x502   :  { %3505 = vperm.xlu1 %4112, %v6321_v62  }
 0x506   :  { %4114 = vset.pattern.permute.xlu1 %v4352_v34 }
 0x507   :  { %3605 = vperm.xlu1 %4114, %v6321_v62  }
 0x50b   :  { %4116 = vset.pattern.permute.xlu1 %v4353_v17 }
 0x50c   :  { %3633 = vperm.xlu1 %4116, %v6321_v62  }
 0x510   :  { %4118 = vset.pattern.permute.xlu1 %v4354_v4 }
 0x511   :  { %3733 = vperm.xlu1 %4118, %v6321_v62  }
 0x515   :  { %4120 = vset.pattern.permute.xlu1 %v7337_v1 }
 0x54c   :  { %v2643_v42 = vpop.xlane.xlu1 %2642 }
 0x54d   :  { %v2644_v16 = vmul.f32 0.001953125, %v2643_v42 }
 0x54f   :  { %v2645_v41 = vadd.f32 1e-05, %v2644_v16 }
 0x550   :  { %v6389_v18 = vpop.permute.xlu1 %3009 }
 0x551   :  { %4129 = vrsqrt.f32 %v2645_v41 }
 0x554   :  { %v6391_v22 = vpop.permute.xlu1 %3109 }
 0x559   :  { %v6393_v0 = vpop.permute.xlu1 %3137 }
 0x55b   :  { %v4130_v58 = vpop.eup %4129 }
 0x55c   :  { %v2647_v2 = vmul.f32 %v4139_v25, %v4130_v58 }
 0x55e   :  { %2652 = vperm.xlu0 %4107, %v2647_v2   ;;  %v2648_v44 = vmul.f32 %v2647_v2, %v6328_v27  ;;  %v4359_v27 = vmov 104   ;;  %v6395_v37 = vpop.permute.xlu1 %3221 }
 0x560   :  { %v2649_v52 = vsub.f32 %v4140_v54, %v2648_v44 }
 0x562   :  { %2661 = vperm.xlu1 %4120, %v2649_v52   ;;  %4108 = vset.pattern.permute.xlu0 %v4355_v8 }
 0x563   :  { %3377 = vperm.xlu0 %4108, %v6321_v62   ;;  %v6397_v9 = vpop.permute.xlu1 %3249 }
 0x566   :  { %4121 = vset.pattern.permute.xlu1 %v4356_v23 }
 0x567   :  { %4113 = vset.pattern.permute.xlu0 %v4357_v10  ;;  %3761 = vperm.xlu1 %4121, %v6321_v62  }
 0x568   :  { %3581 = vperm.xlu0 %4113, %v6321_v62   ;;  %v6399_v21 = vpop.permute.xlu1 %3325 }
 0x56b   :  { %4122 = vset.pattern.permute.xlu1 %v4361_v29 }
 0x56c   :  { %4115 = vset.pattern.permute.xlu0 %v4358_v53 }
 0x56d   :  { %3533 = vperm.xlu0 %4115, %v6321_v62   ;;  %v6403_v35 = vpop.permute.xlu1 %3277 }
 0x571   :  { %4117 = vset.pattern.permute.xlu0 %v4359_v27 }
 0x572   :  { %3709 = vperm.xlu0 %4117, %v6321_v62   ;;  %v6407_v48 = vpop.permute.xlu1 %3453 }
 0x576   :  { %4119 = vset.pattern.permute.xlu0 %v4360_v55 }
 0x577   :  { %3661 = vperm.xlu0 %4119, %v6321_v62   ;;  %v6411_v5 = vpop.permute.xlu1 %3477 }
 0x578   :  { %7339 = vst [vmem:[#allocation45_spill] sm:$0xff] %v6411_v5 }
 0x57b   :  { %4123 = vset.pattern.permute.xlu0 %v7338_v20 }
 0x57c   :  { %v6415_v31 = vpop.permute.xlu1 %3405 }
 0x581   :  { %v6419_v33 = vpop.permute.xlu1 %3505 }
 0x582   :  { %7340 = vst [vmem:[#allocation53_spill] sm:$0xff] %v6419_v33 }
 0x586   :  { %v6423_v1 = vpop.permute.xlu1 %3605 }
 0x587   :  { %7341 = vst [vmem:[#allocation61_spill] sm:$0xff] %v6423_v1 }
 0x58b   :  { %v6427_v59 = vpop.permute.xlu1 %3633 }
 0x58c   :  { %7342 = vst [vmem:[#allocation60_spill] sm:$0xff] %v6427_v59 }
 0x590   :  { %v6431_v28 = vpop.permute.xlu1 %3733 }
 0x5dd   :  { %v2653_v6 = vpop.permute.xlu0 %2652 }
 0x5de   :  { %v2655_v32 = vmul.f32 %v2653_v6, %v6304_v12  ;;  %v2656_v50 = vmul.f32 %v2653_v6, %v6307_v26  ;;  %v2658_v17 = vmul.f32 %v2653_v6, %v6315_v40  ;;  %v2657_v12 = vmul.f32 %v2653_v6, %v6309_v56 }
 0x5e1   :  { %v2662_v34 = vpop.permute.xlu1 %2661 }
 0x5e2   :  { %v2664_v4 = vadd.f32 %v2662_v34, %v2655_v32  ;;  %v2665_v42 = vadd.f32 %v2662_v34, %v2656_v50  ;;  %v2667_v16 = vadd.f32 %v2662_v34, %v2658_v17  ;;  %v2666_v26 = vadd.f32 %v2662_v34, %v2657_v12  ;;  %v6510_v56 = vpop.permute.xlu0 %3377 }
 0x5e4   :  { %v6436_v41 = vmax.f32 %v2664_v4, 0.0  ;;  %v6438_v58 = vmax.f32 %v2665_v42, 0.0  ;;  %v6444_v25 = vmax.f32 %v2667_v16, 0.0  ;;  %v6459_v40 = vmax.f32 %v2666_v26, 0.0 }
 0x5e6   :  { %2674 = vrot.lane.b32.xlu0 %v6438_v58, %s4250_s4  ;;  %2672 = vrot.lane.b32.xlu1 %v6436_v41, %s4250_s4  ;;  %v3187_v52 = vrot.slane %v6438_v58, %v4578_v60  ;;  %v3211_v8 = vrot.slane %v6438_v58, %v4598_v11  ;;  %v3191_v23 = vrot.slane %v6459_v40, %v4578_v60  ;;  %v6527_v10 = vpop.permute.xlu1 %3761 }
 0x5e7   :  { %v6513_v2 = vpop.permute.xlu0 %3581  ;;  %7345 = vst [vmem:[#allocation32_spill] sm:$0xff] %v6527_v10  ;;  %v3207_v29 = vrot.slane %v6436_v41, %v4598_v11  ;;  %v3239_v50 = vrot.slane %v6438_v58, %v4608_v14  ;;  %v3243_v34 = vrot.slane %v6459_v40, %v4608_v14  ;;  %v3267_v4 = vrot.slane %v6438_v58, %v4610_v15 }
 0x5e8   :  { %7343 = vst [vmem:[#allocation58_spill] sm:$0xff] %v6513_v2  ;;  %v3201_v27 = vmul.f32 %v6421_v46, %v3187_v52  ;;  %v3225_v55 = vmul.f32 %v6395_v37, %v3211_v8  ;;  %v3202_v6 = vmul.f32 %v6421_v46, %v3191_v23  ;;  %v3195_v52 = vrot.slane %v6444_v25, %v4578_v60 }
 0x5e9   :  { %v3224_v16 = vmul.f32 %v6395_v37, %v3207_v29  ;;  %v3219_v8 = vrot.slane %v6444_v25, %v4598_v11  ;;  %v3254_v29 = vmul.f32 %v6397_v9, %v3243_v34  ;;  %v3271_v10 = vrot.slane %v6459_v40, %v4610_v15 }
 0x5ea   :  { %2802 = vrot.lane.b32.xlu0 %v6444_v25, %s4253_s29  ;;  %2678 = vrot.lane.b32.xlu1 %v6444_v25, %s4250_s4  ;;  %v3229_v17 = vadd.f32 %v3225_v55, %v3201_v27  ;;  %v3235_v27 = vrot.slane %v6436_v41, %v4608_v14  ;;  %v7347_v55 = vld [vmem:[#allocation13_spill] sm:$0xff]  ;;  %v3281_v59 = vmul.f32 %v6403_v35, %v3267_v4 }
 0x5eb   :  { %v3263_v2 = vrot.slane %v6436_v41, %v4610_v15  ;;  %v3203_v34 = vmul.f32 %v6421_v46, %v3195_v52 }
 0x5ec   :  { %v6515_v44 = vpop.permute.xlu0 %3533  ;;  %v3252_v4 = vmul.f32 %v6397_v9, %v3235_v27 }
 0x5ed   :  { %7344 = vst [vmem:[#allocation37_spill] sm:$0xff] %v6515_v44 }
 0x5ee   :  { %2924 = vrot.lane.b32.xlu0 %v6436_v41, %s4257_s30  ;;  %2796 = vrot.lane.b32.xlu1 %v6436_v41, %s4253_s29 }
 0x5f1   :  { %v6517_v54 = vpop.permute.xlu0 %3709 }
 0x5f2   :  { %2930 = vrot.lane.b32.xlu0 %v6444_v25, %s4257_s30  ;;  %2798 = vrot.lane.b32.xlu1 %v6438_v58, %s4253_s29 }
 0x5f6   :  { %3058 = vrot.lane.b32.xlu0 %v6444_v25, %s4262_s6  ;;  %2676 = vrot.lane.b32.xlu1 %v6459_v40, %s4250_s4  ;;  %v6529_v53 = vpop.permute.xlu0 %3661 }
 0x5f7   :  { %7346 = vst [vmem:[#allocation30_spill] sm:$0xff] %v6529_v53 }
 0x5fa   :  { %3294 = vrot.lane.b32.xlu0 %v6438_v58, %s4268_s7  ;;  %2800 = vrot.lane.b32.xlu1 %v6459_v40, %s4253_s29 }
 0x5fe   :  { %3298 = vrot.lane.b32.xlu0 %v6444_v25, %s4268_s7  ;;  %2926 = vrot.lane.b32.xlu1 %v6438_v58, %s4257_s30 }
 0x602   :  { %3420 = vrot.lane.b32.xlu0 %v6436_v41, %s4272_s8  ;;  %2928 = vrot.lane.b32.xlu1 %v6459_v40, %s4257_s30 }
 0x606   :  { %3424 = vrot.lane.b32.xlu0 %v6459_v40, %s4272_s8  ;;  %3052 = vrot.lane.b32.xlu1 %v6436_v41, %s4262_s6 }
 0x60a   :  { %3552 = vrot.lane.b32.xlu0 %v6459_v40, %s4277_s9  ;;  %3054 = vrot.lane.b32.xlu1 %v6438_v58, %s4262_s6 }
 0x60e   :  { %3680 = vrot.lane.b32.xlu0 %v6459_v40, %s4281_s10  ;;  %3056 = vrot.lane.b32.xlu1 %v6459_v40, %s4262_s6 }
 0x612   :  { %3682 = vrot.lane.b32.xlu0 %v6444_v25, %s4281_s10  ;;  %3292 = vrot.lane.b32.xlu1 %v6436_v41, %s4268_s7 }
 0x616   :  { %3296 = vrot.lane.b32.xlu1 %v6459_v40, %s4268_s7 }
 0x61a   :  { %3422 = vrot.lane.b32.xlu1 %v6438_v58, %s4272_s8 }
 0x61e   :  { %3426 = vrot.lane.b32.xlu1 %v6444_v25, %s4272_s8 }
 0x622   :  { %3548 = vrot.lane.b32.xlu1 %v6436_v41, %s4277_s9 }
 0x626   :  { %3550 = vrot.lane.b32.xlu1 %v6438_v58, %s4277_s9 }
 0x62a   :  { %3554 = vrot.lane.b32.xlu1 %v6444_v25, %s4277_s9 }
 0x62e   :  { %3676 = vrot.lane.b32.xlu1 %v6436_v41, %s4281_s10 }
 0x632   :  { %3678 = vrot.lane.b32.xlu1 %v6438_v58, %s4281_s10  ;;  %v3253_v58 = vmul.f32 %v6397_v9, %v3239_v50 }
 0x634   :  { %v3257_v53 = vadd.f32 %v3253_v58, %v3229_v17 }
 0x636   :  { %3789 = vperm.xlu1 %4122, %v6321_v62   ;;  %v3215_v62 = vrot.slane %v6459_v40, %v4598_v11 }
 0x638   :  { %v3226_v32 = vmul.f32 %v6395_v37, %v3215_v62 }
 0x63a   :  { %4124 = vset.pattern.permute.xlu1 %v7338_v20  ;;  %v3183_v20 = vrot.slane %v6436_v41, %v4578_v60  ;;  %v3230_v62 = vadd.f32 %v3226_v32, %v3202_v6  ;;  %v3247_v41 = vrot.slane %v6444_v25, %v4608_v14 }
 0x63c   :  { %v3200_v42 = vmul.f32 %v6421_v46, %v3183_v20  ;;  %v3258_v17 = vadd.f32 %v3254_v29, %v3230_v62  ;;  %v3275_v46 = vrot.slane %v6444_v25, %v4610_v15  ;;  %v3280_v62 = vmul.f32 %v6403_v35, %v3263_v2 }
 0x63e   :  { %v3228_v1 = vadd.f32 %v3224_v16, %v3200_v42 }
 0x658   :  { %v2673_v12 = vpop.permute.xlu1 %2672  ;;  %v6547_v26 = vpop.permute.xlu0 %2674 }
 0x659   :  { %v2682_v23 = vsel %vm215_vm0, %v2673_v12, %v6547_v26 }
 0x65a   :  { %v2685_v20 = vmul.f32 %v2682_v23, %v7347_v55  ;;  %v3227_v23 = vmul.f32 %v6395_v37, %v3219_v8  ;;  %v7348_v37 = vld [vmem:[#allocation14_spill] sm:$0xff]  ;;  %v3282_v8 = vmul.f32 %v6403_v35, %v3271_v10  ;;  %v3255_v10 = vmul.f32 %v6397_v9, %v3247_v41 }
 0x65c   :  { %v2695_v6 = vrot.slane %v2685_v20, %v4578_v60  ;;  %v2719_v32 = vrot.slane %v2685_v20, %v4598_v11  ;;  %v6568_v50 = vpop.permute.xlu1 %2678  ;;  %v6570_v44 = vpop.permute.xlu0 %2802  ;;  %v2747_v58 = vrot.slane %v2685_v20, %v4608_v14  ;;  %v2775_v55 = vrot.slane %v2685_v20, %v4610_v15 }
 0x65d   :  { %v2683_v40 = vsel %vm215_vm0, %v6568_v50, %v2673_v12  ;;  %v3256_v12 = vadd.f32 %v3252_v4, %v3228_v1 }
 0x65e   :  { %v2709_v42 = vmul.f32 %v6361_v36, %v2695_v6  ;;  %v2733_v16 = vmul.f32 %v6363_v47, %v2719_v32  ;;  %v2684_v52 = vmul.f32 %v2683_v40, %v7348_v37  ;;  %v6591_v6 = vadd.f32 %v3281_v59, %v3257_v53 }
 0x65f   :  { %v3231_v32 = vadd.f32 %v3227_v23, %v3203_v34  ;;  %v6596_v37 = vadd.f32 %v3282_v8, %v3258_v17  ;;  %v2761_v1 = vmul.f32 %v6401_v24, %v2747_v58  ;;  %v6604_v59 = vmul.f32 %v6403_v35, %v3275_v46 }
 0x660   :  { %v2737_v27 = vadd.f32 %v2733_v16, %v2709_v42  ;;  %v2797_v29 = vpop.permute.xlu1 %2796  ;;  %v6589_v33 = vpop.permute.xlu0 %2924  ;;  %7349 = vst [vmem:[#allocation18_spill] sm:$0xff] %v6591_v6  ;;  %v2691_v5 = vrot.slane %v2684_v52, %v4578_v60  ;;  %v2715_v25 = vrot.slane %v2684_v52, %v4598_v11  ;;  %v2743_v40 = vrot.slane %v2684_v52, %v4608_v14  ;;  %v7352_v42 = vld [vmem:[#allocation15_spill] sm:$0xff] }
 0x661   :  { %7350 = vst [vmem:[#allocation19_spill] sm:$0xff] %v6596_v37  ;;  %v2807_v2 = vsel %vm341_vm1, %v6570_v44, %v2797_v29  ;;  %v2771_v34 = vrot.slane %v2684_v52, %v4610_v15  ;;  %v6609_v23 = vadd.f32 %v3280_v62, %v3256_v12  ;;  %v2789_v4 = vmul.f32 %v6409_v19, %v2775_v55 }
 0x662   :  { %v2708_v53 = vmul.f32 %v6361_v36, %v2691_v5  ;;  %v2732_v20 = vmul.f32 %v6363_v47, %v2715_v25  ;;  %v2765_v17 = vadd.f32 %v2761_v1, %v2737_v27  ;;  %v2808_v16 = vmul.f32 %v2807_v2, %v7352_v42  ;;  %v7353_v25 = vld [vmem:[#allocation16_spill] sm:$0xff] }
 0x663   :  { %7351 = vst [vmem:[#allocation23_spill] sm:$0xff] %v6609_v23  ;;  %v6617_v9 = vadd.f32 %v3255_v10, %v3231_v32  ;;  %v2760_v5 = vmul.f32 %v6401_v24, %v2743_v40  ;;  %v2788_v32 = vmul.f32 %v6409_v19, %v2771_v34 }
 0x664   :  { %v6613_v58 = vpop.permute.xlu1 %2798  ;;  %v6615_v8 = vpop.permute.xlu0 %2930  ;;  %v2736_v35 = vadd.f32 %v2732_v20, %v2708_v53  ;;  %v2815_v52 = vrot.slane %v2808_v16, %v4578_v60  ;;  %v2839_v12 = vrot.slane %v2808_v16, %v4598_v11  ;;  %v2867_v62 = vrot.slane %v2808_v16, %v4608_v14 }
 0x665   :  { %v2806_v41 = vsel %vm341_vm1, %v2797_v29, %v6613_v58  ;;  %v2935_v46 = vsel %vm470_vm2, %v6615_v8, %v6589_v33  ;;  %v2895_v27 = vrot.slane %v2808_v16, %v4610_v15  ;;  %v2793_v1 = vadd.f32 %v2789_v4, %v2765_v17 }
 0x666   :  { %v2764_v55 = vadd.f32 %v2760_v5, %v2736_v35  ;;  %v2809_v40 = vmul.f32 %v2806_v41, %v7353_v25  ;;  %v2936_v29 = vmul.f32 %v2935_v46, %v7308_v51  ;;  %v2832_v2 = vmul.f32 %v6365_v13, %v2815_v52 }
 0x667   :  { %v2856_v10 = vmul.f32 %v6367_v30, %v2839_v12  ;;  %v2884_v53 = vmul.f32 %v6369_v63, %v2867_v62  ;;  %v2912_v37 = vmul.f32 %v6373_v3, %v2895_v27 }
 0x668   :  { %v2677_v20 = vpop.permute.xlu1 %2676  ;;  %v6637_v42 = vpop.permute.xlu0 %3058  ;;  %v2819_v16 = vrot.slane %v2809_v40, %v4578_v60  ;;  %v2843_v34 = vrot.slane %v2809_v40, %v4598_v11  ;;  %v2871_v35 = vrot.slane %v2809_v40, %v4608_v14  ;;  %v2899_v51 = vrot.slane %v2809_v40, %v4610_v15 }
 0x669   :  { %v2860_v5 = vadd.f32 %v2856_v10, %v2832_v2  ;;  %v2943_v17 = vrot.slane %v2936_v29, %v4578_v60  ;;  %v2967_v4 = vrot.slane %v2936_v29, %v4598_v11  ;;  %v2792_v41 = vadd.f32 %v2788_v32, %v2764_v55 }
 0x66a   :  { %v2833_v46 = vmul.f32 %v6365_v13, %v2819_v16  ;;  %v2857_v52 = vmul.f32 %v6367_v30, %v2843_v34  ;;  %v2995_v12 = vrot.slane %v2936_v29, %v4608_v14  ;;  %v2885_v27 = vmul.f32 %v6369_v63, %v2871_v35 }
 0x66b   :  { %v2888_v62 = vadd.f32 %v2884_v53, %v2860_v5  ;;  %v2960_v25 = vmul.f32 %v6405_v43, %v2943_v17  ;;  %v2984_v2 = vmul.f32 %v6371_v39, %v2967_v4  ;;  %v2913_v6 = vmul.f32 %v6373_v3, %v2899_v51 }
 0x66c   :  { %v2801_v10 = vpop.permute.xlu1 %2800  ;;  %v2861_v40 = vadd.f32 %v2857_v52, %v2833_v46  ;;  %v3023_v23 = vrot.slane %v2936_v29, %v4610_v15  ;;  %v2680_v55 = vsel %vm215_vm0, %v2677_v20, %v6568_v50  ;;  %v6657_v32 = vpop.permute.xlu0 %3294  ;;  %v3012_v53 = vmul.f32 %v6389_v18, %v2995_v12  ;;  %v7354_v29 = vld [vmem:[#allocation17_spill] sm:$0xff] }
 0x66d   :  { %v2988_v16 = vadd.f32 %v2984_v2, %v2960_v25  ;;  %v2681_v34 = vsel %vm215_vm0, %v6547_v26, %v2677_v20  ;;  %v2687_v35 = vmul.f32 %v2680_v55, %v7305_v7  ;;  %v2916_v5 = vadd.f32 %v2912_v37, %v2888_v62 }
 0x66e   :  { %v2889_v17 = vadd.f32 %v2885_v27, %v2861_v40  ;;  %v3040_v51 = vmul.f32 %v6417_v49, %v3023_v23  ;;  %v2686_v4 = vmul.f32 %v2681_v34, %v7354_v29  ;;  %v2804_v12 = vsel %vm341_vm1, %v2801_v10, %v6570_v44 }
 0x66f   :  { %v3016_v46 = vadd.f32 %v3012_v53, %v2988_v16  ;;  %v2703_v50 = vrot.slane %v2687_v35, %v4578_v60  ;;  %v2727_v52 = vrot.slane %v2687_v35, %v4598_v11  ;;  %v2755_v27 = vrot.slane %v2687_v35, %v4608_v14 }
 0x670   :  { %v2927_v25 = vpop.permute.xlu1 %2926  ;;  %v2917_v2 = vadd.f32 %v2913_v6, %v2889_v17  ;;  %v2699_v26 = vrot.slane %v2686_v4, %v4578_v60  ;;  %v2723_v7 = vrot.slane %v2686_v4, %v4598_v11  ;;  %v2751_v37 = vrot.slane %v2686_v4, %v4608_v14  ;;  %v6679_v16 = vpop.permute.xlu0 %3298 }
 0x671   :  { %v3044_v23 = vadd.f32 %v3040_v51, %v3016_v46  ;;  %v2711_v20 = vmul.f32 %v6361_v36, %v2703_v50  ;;  %v2735_v62 = vmul.f32 %v6363_v47, %v2727_v52  ;;  %v2920_v40 = vadd.f32 %v2916_v5, %v2792_v41 }
 0x672   :  { %v2710_v55 = vmul.f32 %v6361_v36, %v2699_v26  ;;  %v2734_v44 = vmul.f32 %v6363_v47, %v2723_v7  ;;  %v6683_v6 = vadd.f32 %v6604_v59, %v6617_v9  ;;  %v6685_v53 = vadd.f32 %v2917_v2, %v2793_v1  ;;  %v7355_v47 = vld [vmem:[#allocation21_spill] sm:$0xff]  ;;  %v7356_v1 = vld [vmem:[#allocation20_spill] sm:$0xff] }
 0x673   :  { %v2739_v34 = vadd.f32 %v2735_v62, %v2711_v20  ;;  %v2762_v17 = vmul.f32 %v6401_v24, %v2751_v37  ;;  %v2779_v51 = vrot.slane %v2686_v4, %v4610_v15  ;;  %v2783_v41 = vrot.slane %v2687_v35, %v4610_v15 }
 0x674   :  { %v2929_v29 = vpop.permute.xlu1 %2928  ;;  %v2738_v46 = vadd.f32 %v2734_v44, %v2710_v55  ;;  %v2805_v36 = vsel %vm341_vm1, %v6613_v58, %v2801_v10  ;;  %v2811_v5 = vmul.f32 %v2804_v12, %v7355_v47  ;;  %v6694_v50 = vadd.f32 %v3044_v23, %v2920_v40 }
 0x675   :  { %v2763_v59 = vmul.f32 %v6401_v24, %v2755_v27  ;;  %v2790_v9 = vmul.f32 %v6409_v19, %v2779_v51  ;;  %v2810_v52 = vmul.f32 %v2805_v36, %v7356_v1  ;;  %v2934_v35 = vsel %vm470_vm2, %v6589_v33, %v2927_v25  ;;  %v6711_v27 = vpop.permute.xlu0 %3420 }
 0x676   :  { %v2766_v2 = vadd.f32 %v2762_v17, %v2738_v46  ;;  %v2827_v4 = vrot.slane %v2811_v5, %v4578_v60  ;;  %v2851_v26 = vrot.slane %v2811_v5, %v4598_v11  ;;  %v2879_v24 = vrot.slane %v2811_v5, %v4608_v14 }
 0x677   :  { %v2823_v58 = vrot.slane %v2810_v52, %v4578_v60  ;;  %v2847_v10 = vrot.slane %v2810_v52, %v4598_v11  ;;  %v2875_v12 = vrot.slane %v2810_v52, %v4608_v14  ;;  %v2767_v37 = vadd.f32 %v2763_v59, %v2739_v34 }
 0x678   :  { %v3053_v7 = vpop.permute.xlu1 %3052  ;;  %v2791_v23 = vmul.f32 %v6409_v19, %v2783_v41  ;;  %v2835_v20 = vmul.f32 %v6365_v13, %v2827_v4  ;;  %v2859_v62 = vmul.f32 %v6367_v30, %v2851_v26  ;;  %v6713_v40 = vadd.f32 %v2790_v9, %v2766_v2  ;;  %v7357_v19 = vld [vmem:[#allocation25_spill] sm:$0xff] }
 0x679   :  { %v2834_v33 = vmul.f32 %v6365_v13, %v2823_v58  ;;  %v2858_v55 = vmul.f32 %v6367_v30, %v2847_v10  ;;  %v2887_v44 = vmul.f32 %v6369_v63, %v2879_v24  ;;  %v2903_v51 = vrot.slane %v2810_v52, %v4610_v15  ;;  %v6738_v10 = vpop.permute.xlu0 %3424 }
 0x67a   :  { %v2863_v17 = vadd.f32 %v2859_v62, %v2835_v20  ;;  %v2907_v34 = vrot.slane %v2811_v5, %v4610_v15  ;;  %v2937_v46 = vmul.f32 %v2934_v35, %v7357_v19  ;;  %v2886_v36 = vmul.f32 %v6369_v63, %v2875_v12  ;;  %v7359_v35 = vld [vmem:[#allocation27_spill] sm:$0xff] }
 0x67b   :  { %v2862_v41 = vadd.f32 %v2858_v55, %v2834_v33  ;;  %v2932_v47 = vsel %vm470_vm2, %v2929_v29, %v6615_v8  ;;  %v2933_v13 = vsel %vm470_vm2, %v2927_v25, %v2929_v29  ;;  %v2914_v9 = vmul.f32 %v6373_v3, %v2903_v51  ;;  %v7358_v25 = vld [vmem:[#allocation26_spill] sm:$0xff] }
 0x67c   :  { %v6727_v30 = vpop.permute.xlu1 %3054  ;;  %v2891_v59 = vadd.f32 %v2887_v44, %v2863_v17  ;;  %v2915_v1 = vmul.f32 %v6373_v3, %v2907_v34  ;;  %v2947_v5 = vrot.slane %v2937_v46, %v4578_v60  ;;  %v2971_v2 = vrot.slane %v2937_v46, %v4598_v11 }
 0x67d   :  { %v2890_v52 = vadd.f32 %v2886_v36, %v2862_v41  ;;  %v2999_v63 = vrot.slane %v2937_v46, %v4608_v14  ;;  %v3027_v4 = vrot.slane %v2937_v46, %v4610_v15  ;;  %v2795_v8 = vadd.f32 %v2791_v23, %v2767_v37 }
 0x67e   :  { %v2961_v26 = vmul.f32 %v6405_v43, %v2947_v5  ;;  %v2938_v29 = vmul.f32 %v2933_v13, %v7358_v25  ;;  %v2939_v58 = vmul.f32 %v2932_v47, %v7359_v35  ;;  %v2919_v3 = vadd.f32 %v2915_v1, %v2891_v59 }
 0x67f   :  { %v2918_v12 = vadd.f32 %v2914_v9, %v2890_v52  ;;  %v2985_v24 = vmul.f32 %v6371_v39, %v2971_v2  ;;  %v3063_v20 = vsel %vm599_vm3, %v6637_v42, %v3053_v7  ;;  %v3013_v62 = vmul.f32 %v6389_v18, %v2999_v63  ;;  %v7360_v2 = vld [vmem:[#allocation28_spill] sm:$0xff] }
 0x680   :  { %v2951_v37 = vrot.slane %v2938_v29, %v4578_v60  ;;  %v2955_v23 = vrot.slane %v2939_v58, %v4578_v60  ;;  %v2975_v33 = vrot.slane %v2938_v29, %v4598_v11  ;;  %v3041_v44 = vmul.f32 %v6417_v49, %v3027_v4  ;;  %v3057_v34 = vpop.permute.xlu1 %3056  ;;  %v6760_v4 = vpop.permute.xlu0 %3552 }
 0x681   :  { %v2989_v55 = vadd.f32 %v2985_v24, %v2961_v26  ;;  %v2979_v17 = vrot.slane %v2939_v58, %v4598_v11  ;;  %v3003_v51 = vrot.slane %v2938_v29, %v4608_v14  ;;  %v3007_v36 = vrot.slane %v2939_v58, %v4608_v14 }
 0x682   :  { %v2962_v19 = vmul.f32 %v6405_v43, %v2951_v37  ;;  %v2963_v46 = vmul.f32 %v6405_v43, %v2955_v23  ;;  %v2986_v41 = vmul.f32 %v6371_v39, %v2975_v33  ;;  %v2923_v47 = vadd.f32 %v2919_v3, %v2795_v8  ;;  %v7361_v33 = vld [vmem:[#allocation29_spill] sm:$0xff] }
 0x683   :  { %v3017_v13 = vadd.f32 %v3013_v62, %v2989_v55  ;;  %v2987_v59 = vmul.f32 %v6371_v39, %v2979_v17  ;;  %v3031_v9 = vrot.slane %v2938_v29, %v4610_v15  ;;  %v3014_v5 = vmul.f32 %v6389_v18, %v3003_v51 }
 0x684   :  { %v2990_v1 = vadd.f32 %v2986_v41, %v2962_v19  ;;  %v3035_v52 = vrot.slane %v2939_v58, %v4610_v15  ;;  %v3064_v63 = vmul.f32 %v3063_v20, %v7360_v2  ;;  %v3015_v25 = vmul.f32 %v6389_v18, %v3007_v36  ;;  %v3293_v37 = vpop.permute.xlu1 %3292 }
 0x685   :  { %v3045_v43 = vadd.f32 %v3041_v44, %v3017_v13  ;;  %v2991_v26 = vadd.f32 %v2987_v59, %v2963_v46  ;;  %v3062_v8 = vsel %vm599_vm3, %v3053_v7, %v6727_v30  ;;  %v3042_v29 = vmul.f32 %v6417_v49, %v3031_v9  ;;  %v6785_v13 = vpop.permute.xlu0 %3680 }
 0x686   :  { %v3018_v39 = vadd.f32 %v3014_v5, %v2990_v1  ;;  %v3071_v35 = vrot.slane %v3064_v63, %v4578_v60  ;;  %v3095_v3 = vrot.slane %v3064_v63, %v4598_v11  ;;  %v3043_v24 = vmul.f32 %v6417_v49, %v3035_v52  ;;  %v7362_v52 = vld [vmem:[#allocation33_spill] sm:$0xff] }
 0x687   :  { %v3019_v58 = vadd.f32 %v3015_v25, %v2991_v26  ;;  %v3123_v20 = vrot.slane %v3064_v63, %v4608_v14  ;;  %v3151_v62 = vrot.slane %v3064_v63, %v4610_v15  ;;  %v3065_v55 = vmul.f32 %v3062_v8, %v7361_v33  ;;  %v7363_v26 = vld [vmem:[#allocation34_spill] sm:$0xff] }
 0x688   :  { %v3046_v18 = vadd.f32 %v3042_v29, %v3018_v39  ;;  %v3088_v23 = vmul.f32 %v6413_v38, %v3071_v35  ;;  %v3112_v7 = vmul.f32 %v6391_v22, %v3095_v3  ;;  %v2922_v44 = vadd.f32 %v2918_v12, %v6713_v40  ;;  %v6798_v8 = vpop.permute.xlu1 %3296 }
 0x689   :  { %v6777_v17 = vadd.f32 %v3045_v43, %v6685_v53  ;;  %v3047_v51 = vadd.f32 %v3043_v24, %v3019_v58  ;;  %v3140_v49 = vmul.f32 %v6393_v0, %v3123_v20  ;;  %v3075_v46 = vrot.slane %v3065_v55, %v4578_v60 }
 0x68a   :  { %v3116_v19 = vadd.f32 %v3112_v7, %v3088_v23  ;;  %v3099_v41 = vrot.slane %v3065_v55, %v4598_v11  ;;  %v3060_v36 = vsel %vm599_vm3, %v3057_v34, %v6637_v42  ;;  %v3168_v59 = vmul.f32 %v6425_v45, %v3151_v62  ;;  %v6812_v23 = vpop.permute.xlu0 %3682 }
 0x68b   :  { %v3127_v40 = vrot.slane %v3065_v55, %v4608_v14  ;;  %v3155_v53 = vrot.slane %v3065_v55, %v4610_v15  ;;  %v3061_v12 = vsel %vm599_vm3, %v6727_v30, %v3057_v34  ;;  %v3050_v9 = vadd.f32 %v3046_v18, %v2922_v44 }
 0x68c   :  { %v3089_v1 = vmul.f32 %v6413_v38, %v3075_v46  ;;  %v3113_v5 = vmul.f32 %v6391_v22, %v3099_v41  ;;  %v3066_v2 = vmul.f32 %v3061_v12, %v7362_v52  ;;  %v3051_v42 = vadd.f32 %v3047_v51, %v2923_v47  ;;  %v7365_v52 = vld [vmem:[#allocation47_spill] sm:$0xff] }
 0x68d   :  { %v3144_v63 = vadd.f32 %v3140_v49, %v3116_v19  ;;  %v3141_v43 = vmul.f32 %v6393_v0, %v3127_v40  ;;  %v3067_v25 = vmul.f32 %v3060_v36, %v7363_v26  ;;  %v3169_v29 = vmul.f32 %v6425_v45, %v3155_v53  ;;  %v7364_v40 = vld [vmem:[#allocation46_spill] sm:$0xff] }
 0x68e   :  { %v3117_v39 = vadd.f32 %v3113_v5, %v3089_v1  ;;  %v3079_v30 = vrot.slane %v3066_v2, %v4578_v60  ;;  %v3103_v34 = vrot.slane %v3066_v2, %v4598_v11  ;;  %v3131_v47 = vrot.slane %v3066_v2, %v4608_v14 }
 0x68f   :  { %v3083_v35 = vrot.slane %v3067_v25, %v4578_v60  ;;  %v3107_v3 = vrot.slane %v3067_v25, %v4598_v11  ;;  %v3135_v58 = vrot.slane %v3067_v25, %v4608_v14  ;;  %v3302_v18 = vsel %vm920_vm4, %v3293_v37, %v6657_v32 }
 0x690   :  { %v3145_v24 = vadd.f32 %v3141_v43, %v3117_v39  ;;  %v3090_v20 = vmul.f32 %v6413_v38, %v3079_v30  ;;  %v3114_v62 = vmul.f32 %v6391_v22, %v3103_v34  ;;  %v3172_v7 = vadd.f32 %v3168_v59, %v3144_v63  ;;  %v4141_v39 = vld [vmem:[#allocation7 + $0x30] ss:$0 sm:$0xff] }
 0x691   :  { %v3091_v33 = vmul.f32 %v6413_v38, %v3083_v35  ;;  %v3115_v55 = vmul.f32 %v6391_v22, %v3107_v3  ;;  %v3142_v44 = vmul.f32 %v6393_v0, %v3131_v47  ;;  %v3143_v49 = vmul.f32 %v6393_v0, %v3135_v58  ;;  %v3423_v38 = vpop.permute.xlu1 %3422 }
 0x692   :  { %v3118_v51 = vadd.f32 %v3114_v62, %v3090_v20  ;;  %v3159_v19 = vrot.slane %v3066_v2, %v4610_v15  ;;  %v3163_v46 = vrot.slane %v3067_v25, %v4610_v15  ;;  %v3303_v36 = vsel %vm920_vm4, %v6679_v16, %v3293_v37 }
 0x693   :  { %v3119_v41 = vadd.f32 %v3115_v55, %v3091_v33  ;;  %v3304_v59 = vmul.f32 %v3302_v18, %v7364_v40  ;;  %v3684_v22 = vsel %vm1307_vm6, %v6785_v13, %v6812_v23  ;;  %v3173_v53 = vadd.f32 %v3169_v29, %v3145_v24 }
 0x694   :  { %v3146_v12 = vadd.f32 %v3142_v44, %v3118_v51  ;;  %v3170_v0 = vmul.f32 %v6425_v45, %v3159_v19  ;;  %v3171_v1 = vmul.f32 %v6425_v45, %v3163_v46  ;;  %v3307_v2 = vmul.f32 %v3303_v36, %v7365_v52 }
 0x695   :  { %v3147_v5 = vadd.f32 %v3143_v49, %v3119_v41  ;;  %v3311_v63 = vrot.slane %v3304_v59, %v4578_v60  ;;  %v3335_v37 = vrot.slane %v3304_v59, %v4598_v11  ;;  %v3363_v26 = vrot.slane %v3304_v59, %v4608_v14  ;;  %v3427_v55 = vpop.permute.xlu1 %3426 }
 0x696   :  { %v3174_v43 = vadd.f32 %v3170_v0, %v3146_v12  ;;  %v3391_v25 = vrot.slane %v3304_v59, %v4610_v15  ;;  %v6835_v30 = vmul.f32 %v4141_v39, %v3684_v22  ;;  %v3323_v34 = vrot.slane %v3307_v2, %v4578_v60  ;;  %v7366_v22 = vld [vmem:[#allocation48_spill] sm:$0xff]  ;;  %v7367_v12 = vld [vmem:[#allocation49_spill] sm:$0xff] }
 0x697   :  { %v3175_v29 = vadd.f32 %v3171_v1, %v3147_v5  ;;  %v3328_v45 = vmul.f32 %v6399_v21, %v3311_v63  ;;  %v3347_v35 = vrot.slane %v3307_v2, %v4598_v11  ;;  %v6841_v3 = vadd.f32 %v3172_v7, %v6694_v50 }
 0x698   :  { %v6844_v47 = vadd.f32 %v3173_v53, %v6777_v17  ;;  %v3352_v58 = vmul.f32 %v6429_v57, %v3335_v37  ;;  %v3375_v24 = vrot.slane %v3307_v2, %v4608_v14  ;;  %v6848_v20 = vadd.f32 %v3174_v43, %v3050_v9 }
 0x699   :  { %v3331_v62 = vmul.f32 %v6399_v21, %v3323_v34  ;;  %v3355_v18 = vmul.f32 %v6429_v57, %v3347_v35  ;;  %v3403_v33 = vrot.slane %v3307_v2, %v4610_v15  ;;  %v6853_v44 = vadd.f32 %v3175_v29, %v3051_v42  ;;  %v6892_v37 = vpop.permute.xlu1 %3548 }
 0x69a   :  { %v3356_v50 = vadd.f32 %v3352_v58, %v3328_v45  ;;  %v3380_v7 = vmul.f32 %v6510_v56, %v3363_v26  ;;  %v3703_v17 = vrot.slane %v6835_v30, %v4578_v60  ;;  %v3383_v49 = vmul.f32 %v6510_v56, %v3375_v24 }
 0x69b   :  { %v3359_v51 = vadd.f32 %v3355_v18, %v3331_v62  ;;  %v3408_v9 = vmul.f32 %v6415_v31, %v3391_v25  ;;  %v3727_v19 = vrot.slane %v6835_v30, %v4598_v11  ;;  %v3411_v41 = vmul.f32 %v6415_v31, %v3403_v33 }
 0x69c   :  { %v3384_v46 = vadd.f32 %v3380_v7, %v3356_v50  ;;  %v3300_v42 = vsel %vm920_vm4, %v6798_v8, %v6679_v16  ;;  %v3301_v36 = vsel %vm920_vm4, %v6657_v32, %v6798_v8  ;;  %v6872_v40 = vmul.f32 %v6517_v54, %v3703_v17  ;;  %v7368_v50 = vld [vmem:[#allocation50_spill] sm:$0xff] }
 0x69d   :  { %v3755_v59 = vrot.slane %v6835_v30, %v4608_v14  ;;  %v3305_v53 = vmul.f32 %v3301_v36, %v7366_v22  ;;  %v3306_v0 = vmul.f32 %v3300_v42, %v7367_v12  ;;  %v3387_v1 = vadd.f32 %v3383_v49, %v3359_v51 }
 0x69e   :  { %v6878_v5 = vadd.f32 %v3408_v9, %v3384_v46  ;;  %v6881_v16 = vmul.f32 %v6431_v28, %v3727_v19  ;;  %v3429_v32 = vsel %vm1049_vm5, %v3423_v38, %v6738_v10  ;;  %v3430_v63 = vsel %vm1049_vm5, %v6711_v27, %v3423_v38 }
 0x69f   :  { %v3315_v8 = vrot.slane %v3305_v53, %v4578_v60  ;;  %v3319_v52 = vrot.slane %v3306_v0, %v4578_v60  ;;  %v3339_v2 = vrot.slane %v3305_v53, %v4598_v11  ;;  %v3343_v43 = vrot.slane %v3306_v0, %v4598_v11 }
 0x6a0   :  { %v3367_v26 = vrot.slane %v3305_v53, %v4608_v14  ;;  %v3371_v25 = vrot.slane %v3306_v0, %v4608_v14  ;;  %v3395_v39 = vrot.slane %v3305_v53, %v4610_v15  ;;  %v3399_v35 = vrot.slane %v3306_v0, %v4610_v15  ;;  %v7370_v53 = vld [vmem:[#allocation52_spill] sm:$0xff] }
 0x6a1   :  { %v3329_v29 = vmul.f32 %v6399_v21, %v3315_v8  ;;  %v3330_v34 = vmul.f32 %v6399_v21, %v3319_v52  ;;  %v3353_v45 = vmul.f32 %v6429_v57, %v3339_v2  ;;  %v6902_v58 = vadd.f32 %v3411_v41, %v3387_v1  ;;  %v7369_v21 = vld [vmem:[#allocation51_spill] sm:$0xff]  ;;  %v3551_v41 = vpop.permute.xlu1 %3550  ;;  %v7372_v52 = vld [vmem:[#allocation53_spill] sm:$0xff] }
 0x6a2   :  { %v3354_v38 = vmul.f32 %v6429_v57, %v3343_v43  ;;  %v3381_v24 = vmul.f32 %v6510_v56, %v3367_v26  ;;  %v3428_v62 = vsel %vm1049_vm5, %v6738_v10, %v3427_v55  ;;  %v3382_v33 = vmul.f32 %v6510_v56, %v3371_v25 }
 0x6a3   :  { %v3357_v18 = vadd.f32 %v3353_v45, %v3329_v29  ;;  %v3432_v7 = vmul.f32 %v3430_v63, %v7368_v50  ;;  %v3433_v17 = vmul.f32 %v3429_v32, %v7369_v21  ;;  %v3409_v49 = vmul.f32 %v6415_v31, %v3395_v39  ;;  %v7373_v39 = vld [vmem:[#allocation54_spill] sm:$0xff]  ;;  %v7374_v50 = vld [vmem:[#allocation37_spill] sm:$0xff] }
 0x6a4   :  { %v3358_v51 = vadd.f32 %v3354_v38, %v3330_v34  ;;  %v3410_v9 = vmul.f32 %v6415_v31, %v3399_v35  ;;  %v3431_v57 = vsel %vm1049_vm5, %v3427_v55, %v6711_v27  ;;  %v3434_v12 = vmul.f32 %v3428_v62, %v7370_v53  ;;  %v7371_v27 = vld [vmem:[#allocation45_spill] sm:$0xff] }
 0x6a5   :  { %v3385_v19 = vadd.f32 %v3381_v24, %v3357_v18  ;;  %v3439_v46 = vrot.slane %v3432_v7, %v4578_v60  ;;  %v3443_v10 = vrot.slane %v3433_v17, %v4578_v60  ;;  %v3463_v56 = vrot.slane %v3432_v7, %v4598_v11 }
 0x6a6   :  { %v3386_v42 = vadd.f32 %v3382_v33, %v3358_v51  ;;  %v3467_v36 = vrot.slane %v3433_v17, %v4598_v11  ;;  %v3491_v22 = vrot.slane %v3432_v7, %v4608_v14  ;;  %v3495_v1 = vrot.slane %v3433_v17, %v4608_v14 }
 0x6a7   :  { %v3456_v31 = vmul.f32 %v6407_v48, %v3439_v46  ;;  %v3457_v0 = vmul.f32 %v6407_v48, %v3443_v10  ;;  %v3480_v55 = vmul.f32 %v7371_v27, %v3463_v56  ;;  %v6927_v32 = vadd.f32 %v3409_v49, %v3385_v19  ;;  %v3555_v46 = vpop.permute.xlu1 %3554 }
 0x6a8   :  { %v3481_v8 = vmul.f32 %v7371_v27, %v3467_v36  ;;  %v3508_v2 = vmul.f32 %v7372_v52, %v3491_v22  ;;  %v3557_v63 = vsel %vm1178_vm7, %v3551_v41, %v6760_v4  ;;  %v3519_v26 = vrot.slane %v3432_v7, %v4610_v15 }
 0x6a9   :  { %v3484_v43 = vadd.f32 %v3480_v55, %v3456_v31  ;;  %v3523_v25 = vrot.slane %v3433_v17, %v4610_v15  ;;  %v3435_v29 = vmul.f32 %v3431_v57, %v7373_v39  ;;  %v3447_v45 = vrot.slane %v3434_v12, %v4578_v60 }
 0x6aa   :  { %v3485_v34 = vadd.f32 %v3481_v8, %v3457_v0  ;;  %v3471_v35 = vrot.slane %v3434_v12, %v4598_v11  ;;  %v3499_v38 = vrot.slane %v3434_v12, %v4608_v14  ;;  %v6940_v24 = vadd.f32 %v3410_v9, %v3386_v42  ;;  %v7375_v0 = vld [vmem:[#allocation56_spill] sm:$0xff] }
 0x6ab   :  { %v3509_v62 = vmul.f32 %v7372_v52, %v3495_v1  ;;  %v3512_v18 = vadd.f32 %v3508_v2, %v3484_v43  ;;  %v3451_v33 = vrot.slane %v3435_v29, %v4578_v60  ;;  %v3536_v7 = vmul.f32 %v7374_v50, %v3519_v26 }
 0x6ac   :  { %v3458_v21 = vmul.f32 %v6407_v48, %v3447_v45  ;;  %v3475_v17 = vrot.slane %v3435_v29, %v4598_v11  ;;  %v3482_v51 = vmul.f32 %v7371_v27, %v3471_v35  ;;  %v3537_v57 = vmul.f32 %v7374_v50, %v3523_v25  ;;  %v7378_v35 = vld [vmem:[#allocation61_spill] sm:$0xff] }
 0x6ad   :  { %v3513_v49 = vadd.f32 %v3509_v62, %v3485_v34  ;;  %v3459_v19 = vmul.f32 %v6407_v48, %v3451_v33  ;;  %v3503_v9 = vrot.slane %v3435_v29, %v4608_v14  ;;  %v3510_v42 = vmul.f32 %v7372_v52, %v3499_v38  ;;  %v7377_v34 = vld [vmem:[#allocation58_spill] sm:$0xff] }
 0x6ae   :  { %v3483_v10 = vmul.f32 %v7371_v27, %v3475_v17  ;;  %v3486_v56 = vadd.f32 %v3482_v51, %v3458_v21  ;;  %v3527_v36 = vrot.slane %v3434_v12, %v4610_v15  ;;  %v6954_v22 = vadd.f32 %v3536_v7, %v3512_v18  ;;  %v7376_v27 = vld [vmem:[#allocation55_spill] sm:$0xff]  ;;  %v3677_v18 = vpop.permute.xlu1 %3676 }
 0x6af   :  { %v3531_v53 = vrot.slane %v3435_v29, %v4610_v15  ;;  %v3558_v31 = vsel %vm1178_vm7, %v6892_v37, %v3551_v41  ;;  %v3561_v48 = vmul.f32 %v3557_v63, %v7375_v0  ;;  %v3511_v1 = vmul.f32 %v7372_v52, %v3503_v9  ;;  %v7381_v0 = vld [vmem:[#allocation30_spill] sm:$0xff] }
 0x6b0   :  { %v3487_v55 = vadd.f32 %v3483_v10, %v3459_v19  ;;  %v3514_v8 = vadd.f32 %v3510_v42, %v3486_v56  ;;  %v3560_v2 = vmul.f32 %v3558_v31, %v7376_v27  ;;  %v6963_v43 = vadd.f32 %v3537_v57, %v3513_v49  ;;  %v7379_v57 = vld [vmem:[#allocation60_spill] sm:$0xff]  ;;  %v7380_v42 = vld [vmem:[#allocation57_spill] sm:$0xff] }
 0x6b1   :  { %v3571_v12 = vrot.slane %v3561_v48, %v4578_v60  ;;  %v3595_v26 = vrot.slane %v3561_v48, %v4598_v11  ;;  %v3623_v25 = vrot.slane %v3561_v48, %v4608_v14  ;;  %v3538_v29 = vmul.f32 %v7374_v50, %v3527_v36 }
 0x6b2   :  { %v3515_v39 = vadd.f32 %v3511_v1, %v3487_v55  ;;  %v3567_v41 = vrot.slane %v3560_v2, %v4578_v60  ;;  %v3591_v63 = vrot.slane %v3560_v2, %v4598_v11  ;;  %v3539_v52 = vmul.f32 %v7374_v50, %v3531_v53  ;;  %v7382_v1 = vld [vmem:[#allocation59_spill] sm:$0xff] }
 0x6b3   :  { %v3585_v45 = vmul.f32 %v7377_v34, %v3571_v12  ;;  %v3609_v38 = vmul.f32 %v7378_v35, %v3595_v26  ;;  %v3619_v62 = vrot.slane %v3560_v2, %v4608_v14  ;;  %v6975_v33 = vadd.f32 %v3538_v29, %v3514_v8 }
 0x6b4   :  { %v3584_v7 = vmul.f32 %v7377_v34, %v3567_v41  ;;  %v3608_v21 = vmul.f32 %v7378_v35, %v3591_v63  ;;  %v3647_v17 = vrot.slane %v3560_v2, %v4610_v15  ;;  %v6980_v51 = vadd.f32 %v3539_v52, %v3515_v39 }
 0x6b5   :  { %v3613_v49 = vadd.f32 %v3609_v38, %v3585_v45  ;;  %v3637_v50 = vmul.f32 %v7379_v57, %v3623_v25  ;;  %v3556_v19 = vsel %vm1178_vm7, %v6760_v4, %v3555_v46  ;;  %v3636_v9 = vmul.f32 %v7379_v57, %v3619_v62  ;;  %v3679_v25 = vpop.permute.xlu1 %3678 }
 0x6b6   :  { %v3651_v10 = vrot.slane %v3561_v48, %v4610_v15  ;;  %v3559_v56 = vsel %vm1178_vm7, %v3555_v46, %v6892_v37  ;;  %v3562_v36 = vmul.f32 %v3556_v19, %v7380_v42  ;;  %v3612_v53 = vadd.f32 %v3608_v21, %v3584_v7  ;;  %v4142_v21 = vld [vmem:[#allocation7 + $0x38] ss:$0 sm:$0xff]  ;;  %v7383_v42 = vld [vmem:[#allocation23_spill] sm:$0xff] }
 0x6b7   :  { %v3641_v31 = vadd.f32 %v3637_v50, %v3613_v49  ;;  %v3664_v55 = vmul.f32 %v7381_v0, %v3647_v17  ;;  %v3563_v8 = vmul.f32 %v3559_v56, %v7382_v1  ;;  %v3687_v48 = vsel %vm1307_vm6, %v6812_v23, %v3677_v18 }
 0x6b8   :  { %v3575_v27 = vrot.slane %v3562_v36, %v4578_v60  ;;  %v3599_v4 = vrot.slane %v3562_v36, %v4598_v11  ;;  %v3627_v2 = vrot.slane %v3562_v36, %v4608_v14  ;;  %v3655_v26 = vrot.slane %v3562_v36, %v4610_v15 }
 0x6b9   :  { %v3579_v37 = vrot.slane %v3563_v8, %v4578_v60  ;;  %v3603_v46 = vrot.slane %v3563_v8, %v4598_v11  ;;  %v3631_v12 = vrot.slane %v3563_v8, %v4608_v14  ;;  %v3665_v39 = vmul.f32 %v7381_v0, %v3651_v10 }
 0x6ba   :  { %v3586_v29 = vmul.f32 %v7377_v34, %v3575_v27  ;;  %v3610_v41 = vmul.f32 %v7378_v35, %v3599_v4  ;;  %v3659_v63 = vrot.slane %v3563_v8, %v4610_v15  ;;  %v3640_v52 = vadd.f32 %v3636_v9, %v3612_v53  ;;  %v4143_v9 = vld [vmem:[#allocation7 + $0x28] ss:$0 sm:$0xff]  ;;  %v4144_v53 = vld [vmem:[#allocation7 + $0x20] ss:$0 sm:$0xff] }
 0x6bb   :  { %v3587_v23 = vmul.f32 %v7377_v34, %v3579_v37  ;;  %v3611_v45 = vmul.f32 %v7378_v35, %v3603_v46  ;;  %v3638_v38 = vmul.f32 %v7379_v57, %v3627_v2  ;;  %v3639_v7 = vmul.f32 %v7379_v57, %v3631_v12 }
 0x6bc   :  { %v3614_v62 = vadd.f32 %v3610_v41, %v3586_v29  ;;  %v7012_v17 = vmul.f32 %v4142_v21, %v3687_v48  ;;  %v3685_v49 = vsel %vm1307_vm6, %v3679_v25, %v6785_v13  ;;  %v3666_v19 = vmul.f32 %v7381_v0, %v3655_v26  ;;  %v7384_v26 = vld [vmem:[#allocation18_spill] sm:$0xff]  ;;  %v7385_v29 = vld [vmem:[#allocation19_spill] sm:$0xff]  ;;  %v7386_v21 = vld [vmem:[#allocation32_spill] sm:$0xff] }
 0x6bd   :  { %v3615_v50 = vadd.f32 %v3611_v45, %v3587_v23  ;;  %v3686_v34 = vsel %vm1307_vm6, %v3677_v18, %v3679_v25  ;;  %v3689_v35 = vmul.f32 %v4143_v9, %v3685_v49  ;;  %v3667_v10 = vmul.f32 %v7381_v0, %v3659_v63 }
 0x6be   :  { %v3707_v57 = vrot.slane %v7012_v17, %v4578_v60  ;;  %v3731_v56 = vrot.slane %v7012_v17, %v4598_v11  ;;  %v3288_v36 = vadd.f32 %v7383_v42, %v6841_v3  ;;  %v3642_v13 = vadd.f32 %v3638_v38, %v3614_v62 }
 0x6bf   :  { %v3688_v1 = vmul.f32 %v4144_v53, %v3686_v34  ;;  %v3699_v8 = vrot.slane %v3689_v35, %v4578_v60  ;;  %v3723_v61 = vrot.slane %v3689_v35, %v4598_v11  ;;  %v3643_v18 = vadd.f32 %v3639_v7, %v3615_v50 }
 0x6c0   :  { %v3715_v27 = vmul.f32 %v6517_v54, %v3707_v57  ;;  %v3739_v0 = vmul.f32 %v6431_v28, %v3731_v56  ;;  %v3759_v4 = vrot.slane %v7012_v17, %v4608_v14  ;;  %v3751_v12 = vrot.slane %v3689_v35, %v4608_v14 }
 0x6c1   :  { %v3695_v2 = vrot.slane %v3688_v1, %v4578_v60  ;;  %v3713_v48 = vmul.f32 %v6517_v54, %v3699_v8  ;;  %v3719_v3 = vrot.slane %v3688_v1, %v4598_v11  ;;  %v3737_v37 = vmul.f32 %v6431_v28, %v3723_v61 }
 0x6c2   :  { %v3747_v46 = vrot.slane %v3688_v1, %v4608_v14  ;;  %v3289_v25 = vadd.f32 %v7384_v26, %v6844_v47  ;;  %v3290_v41 = vadd.f32 %v7385_v29, %v6848_v20  ;;  %v3416_v23 = vadd.f32 %v6878_v5, %v3288_v36 }
 0x6c3   :  { %v3712_v63 = vmul.f32 %v6517_v54, %v3695_v2  ;;  %v3736_v60 = vmul.f32 %v6431_v28, %v3719_v3  ;;  %v3668_v45 = vadd.f32 %v3664_v55, %v3640_v52  ;;  %v3775_v11 = vrot.slane %v3688_v1, %v4610_v15  ;;  %v3790_v55 = vpop.permute.xlu1 %3789 }
 0x6c4   :  { %v3417_v38 = vadd.f32 %v6927_v32, %v3289_v25  ;;  %v3418_v62 = vadd.f32 %v6940_v24, %v3290_v41  ;;  %v3669_v7 = vadd.f32 %v3665_v39, %v3641_v31  ;;  %v3764_v49 = vmul.f32 %v7386_v21, %v3747_v46 }
 0x6c5   :  { %v3544_v47 = vadd.f32 %v6954_v22, %v3416_v23  ;;  %v3740_v50 = vadd.f32 %v3736_v60, %v3712_v63  ;;  %v3741_v20 = vadd.f32 %v3737_v37, %v3713_v48  ;;  %v3670_v34 = vadd.f32 %v3666_v19, %v3642_v13 }
 0x6c6   :  { %v3545_v54 = vadd.f32 %v6963_v43, %v3417_v38  ;;  %v3546_v28 = vadd.f32 %v6975_v33, %v3418_v62  ;;  %v3742_v5 = vadd.f32 %v6881_v16, %v6872_v40  ;;  %v3743_v32 = vadd.f32 %v3739_v0, %v3715_v27 }
 0x6c7   :  { %v3672_v52 = vadd.f32 %v3668_v45, %v3544_v47  ;;  %v3765_v24 = vmul.f32 %v7386_v21, %v3751_v12  ;;  %v3766_v22 = vmul.f32 %v7386_v21, %v3755_v59  ;;  %v3767_v39 = vmul.f32 %v7386_v21, %v3759_v4 }
 0x6c8   :  { %v3673_v31 = vadd.f32 %v3669_v7, %v3545_v54  ;;  %v3779_v43 = vrot.slane %v3689_v35, %v4610_v15  ;;  %v3783_v33 = vrot.slane %v6835_v30, %v4610_v15  ;;  %v3768_v19 = vadd.f32 %v3764_v49, %v3740_v50  ;;  %v4145_v54 = vld [vmem:[%s7098_s2] sm:$0xf]  ;;  %s4362_s2 = smov [#allocation8]  }
 0x6c9   :  { %v3769_v40 = vadd.f32 %v3765_v24, %v3741_v20  ;;  %v3770_v16 = vadd.f32 %v3766_v22, %v3742_v5  ;;  %v3787_v9 = vrot.slane %v7012_v17, %v4610_v15  ;;  %v3792_v57 = vmul.f32 %v3790_v55, %v3775_v11  ;;  %v4146_v5 = vld [vmem:[%s7099_s3] sm:$0xf]  ;;  %s3875_s23 = sshll.u32 %s4362_s2, 4  ;;  %s3876_s23 = int_to_ptr.vmem [resolvable:$true] %s3875_s23 }
 0x6ca   :  { %v3793_v56 = vmul.f32 %v3790_v55, %v3779_v43  ;;  %v3794_v42 = vmul.f32 %v3790_v55, %v3783_v33  ;;  %v3291_v14 = vadd.f32 %v6683_v6, %v6853_v44  ;;  %v3674_v59 = vadd.f32 %v3670_v34, %v3546_v28  ;;  %s4213_s3 = scalar_lea.vmem %s3876_s23, 256  ;;  %p4218_p11 = scmp.lt.s32.totalorder %s3876_s23, %s3876_s23 }
 0x6cb   :  { %v3771_v36 = vadd.f32 %v3767_v39, %v3743_v32  ;;  %v3795_v13 = vmul.f32 %v3790_v55, %v3787_v9  ;;  %v3671_v53 = vadd.f32 %v3667_v10, %v3643_v18  ;;  %v3796_v35 = vadd.f32 %v3792_v57, %v3768_v19  ;;  %p4214_p10 = scmp.ne.s32.totalorder %s3876_s23, %s4213_s3  ;;  %p4219_p12 = scmp.lt.s32.totalorder %s4213_s3, %s4213_s3 }
 0x6cc   :  { %v3797_v1 = vadd.f32 %v3793_v56, %v3769_v40  ;;  %v3798_v8 = vadd.f32 %v3794_v42, %v3770_v16  ;;  %v3419_v30 = vadd.f32 %v6902_v58, %v3291_v14 }
 0x6cd   :  { %v3799_v61 = vadd.f32 %v3795_v13, %v3771_v36  ;;  %v3800_v27 = vadd.f32 %v3796_v35, %v3672_v52  ;;  %p4220_p13 = por %p4219_p12, %p4218_p11 }
 0x6ce   :  { %v3801_v0 = vadd.f32 %v3797_v1, %v3673_v31  ;;  %v3802_v4 = vadd.f32 %v3798_v8, %v3674_v59  ;;  %v3547_v15 = vadd.f32 %v6980_v51, %v3419_v30 }
 0x6cf   :  { %v3804_v2 = vsel %vm1428_vm8, %v3800_v27, 0.0  ;;  %p4221_p0 = pnand %p4220_p13, %p4214_p10 }
 0x6d0   :  { %v3675_v17 = vadd.f32 %v3671_v53, %v3547_v15  ;;  %v3805_v6 = vsel %vm1428_vm8, %v3801_v0, 0.0  ;;  %v3807_v10 = vsel %vm1428_vm8, %v3802_v4, 0.0 }
 0x6d1   :  { %v3806_v44 = vadd.f32 %v3805_v6, %v3804_v2 }
 0x6d2   :  { %v3803_v48 = vadd.f32 %v3799_v61, %v3675_v17 }
 0x6d3   :  { %v3808_v18 = vadd.f32 %v3807_v10, %v3806_v44 }
 0x6d4   :  { %v3809_v3 = vsel %vm1428_vm8, %v3803_v48, 0.0 }
 0x6d5   :  { %v3810_v37 = vadd.f32 %v3809_v3, %v3808_v18 }
 0x6d7   :  { %3811 = vadd.xlane.f32.xlu0 %v3810_v37 }
 0x764   :  { %v3812_v58 = vpop.xlane.xlu0 %3811 }
 0x765   :  { %v3813_v46 = vmul.f32 0.001953125, %v3812_v58 }
 0x767   :  { %v3814_v12 = vsub.f32 %v3800_v27, %v3813_v46  ;;  %v3815_v26 = vsub.f32 %v3801_v0, %v3813_v46  ;;  %v3816_v25 = vsub.f32 %v3802_v4, %v3813_v46  ;;  %v3817_v51 = vsub.f32 %v3803_v48, %v3813_v46 }
 0x769   :  { %v3818_v29 = vmul.f32 %v3814_v12, %v3814_v12  ;;  %v3819_v41 = vmul.f32 %v3815_v26, %v3815_v26  ;;  %v3820_v63 = vmul.f32 %v3816_v25, %v3816_v25  ;;  %v3821_v60 = vmul.f32 %v3817_v51, %v3817_v51 }
 0x76b   :  { %v3822_v23 = vsel %vm1428_vm8, %v3818_v29, 0.0  ;;  %v3823_v45 = vsel %vm1428_vm8, %v3819_v41, 0.0  ;;  %v3825_v38 = vsel %vm1428_vm8, %v3820_v63, 0.0  ;;  %v3827_v7 = vsel %vm1428_vm8, %v3821_v60, 0.0 }
 0x76c   :  { %v3824_v11 = vadd.f32 %v3823_v45, %v3822_v23 }
 0x76e   :  { %v3826_v62 = vadd.f32 %v3825_v38, %v3824_v11 }
 0x770   :  { %v3828_v21 = vadd.f32 %v3827_v7, %v3826_v62 }
 0x772   :  { %3829 = vadd.xlane.f32.xlu1 %v3828_v21 }
 0x7ff   :  { %v3830_v49 = vpop.xlane.xlu1 %3829 }
 0x800   :  { %v3831_v47 = vmul.f32 0.001953125, %v3830_v49 }
 0x802   :  { %v3832_v50 = vadd.f32 1e-05, %v3831_v47 }
 0x804   :  { %4131 = vrsqrt.f32 %v3832_v50 }
 0x80e   :  { %v4132_v20 = vpop.eup %4131 }
 0x80f   :  { %v3834_v28 = vmul.f32 %v4145_v54, %v4132_v20 }
 0x811   :  { %3839 = vperm.xlu0 %4123, %v3834_v28   ;;  %v3835_v34 = vmul.f32 %v3834_v28, %v3813_v46 }
 0x813   :  { %v3836_v55 = vsub.f32 %v4146_v5, %v3835_v34 }
 0x815   :  { %3848 = vperm.xlu1 %4124, %v3836_v55  }
 0x890   :  { %v3840_v52 = vpop.permute.xlu0 %3839 }
 0x891   :  { %v3842_v32 = vmul.f32 %v3840_v52, %v3800_v27  ;;  %v3843_v24 = vmul.f32 %v3840_v52, %v3801_v0  ;;  %v3844_v22 = vmul.f32 %v3840_v52, %v3802_v4  ;;  %v3845_v31 = vmul.f32 %v3840_v52, %v3803_v48 }
 0x894   :  { %v3849_v39 = vpop.permute.xlu1 %3848 }
 0x895   :  { %v3851_v43 = vadd.f32 %v3849_v39, %v3842_v32  ;;  %v3852_v33 = vadd.f32 %v3849_v39, %v3843_v24  ;;  %v3853_v19 = vadd.f32 %v3849_v39, %v3844_v22  ;;  %v3854_v40 = vadd.f32 %v3849_v39, %v3845_v31 }
 0x897   :  { %v3855_v16 = vmax.f32 %v3851_v43, 0.0  ;;  %v3856_v9 = vmax.f32 %v3852_v33, 0.0  ;;  %v3857_v57 = vmax.f32 %v3853_v19, 0.0  ;;  %v3858_v56 = vmax.f32 %v3854_v40, 0.0 }
 0x899   :  { %v3863_v42 = vcombine.low %v3855_v16, %v3856_v9  ;;  %v3864_v14 = vcombine.low %v3857_v57, %v3858_v56 }
 0x89b   :  { %3867 = vst [vmem:[#allocation8] sm:$0xff] %v3863_v42  ;;  %3868 = vst [vmem:[#allocation8 + $0x8] sm:$0xff] %v3864_v14 }
 0x89c   :  { %4224 = shalt.err (!%p4221_p0)
}
 0x89d   :  { %s4225_s26 = scalar_lea.hbm %s7101_s5, 256 }
 0x89e   :  { %p4226_p1 = scmp.ne.s32.totalorder %s7101_s5, %s4225_s26  ;;  %p4229_p2 = scmp.lt.u32.totalorder %s4225_s26, %s7101_s5 }
 0x8a0   :  { %p4231_p3 = pnand %p4229_p2, %p4226_p1 }
 0x8a2   :  { %4234 = shalt.err (!%p4231_p3)
}
 0x8a3   :  { %3878 = dma.vmem_to_hbm [thread:$0]  %s3876_s23, 256, %s7101_s5, [#allocation4]  }
 0x8a4   :  { %4239 = dma.done.wait [#allocation4], 256  }
 0x8a5   :  { %4240 = vsyncadd [#allocation4], 4294967040 }
 0x8a6   :  { %3882 = vsyncpa [#allocation3], 1 }
 0x8a7   :  { %3883 = vsyncpa [#allocation6], 1 }
 0x8a8   :  { %3884 = vsyncpa [#allocation4], 1 }

</bundles_post_ra>
